<compile_context>
chip_gen: v7x
topology: tpu7x:2x2x1
jax: 0.10.0
libtpu: 0.0.40
codegen_flags: <defaults>
</compile_context>

<pallas_src>
import functools

import jax
import jax.numpy as jnp
from jax import lax
from jax.experimental import pallas as pl
from jax.experimental.pallas import tpu as pltpu

BN_EPS = 1e-5


# ----------------------------------------------------------------------------
# The fused Pallas kernel
# ----------------------------------------------------------------------------
def _vqvae_fused_kernel(p1_ref, w1_ref, bn1_ref, w2_ref, bn2_ref, w3t_ref,
                        b3_ref, emb_ref, wt1_ref, bnt1_ref, wt2_ref,
                        bt2_ref, out_ref, loss_ref, *, n):
    m = n * 16                       # one row per (n, r, c) of the 4x4 grid

    # ---- boundary-validity masks: built and pre-broadcast ONCE -------------
    idx = lax.broadcasted_iota(jnp.int32, (m, 1), 0)
    rr = (idx >> 2) & 3              # grid row of each flat row
    cc = idx & 3                     # grid col of each flat row
    mask16, mask2 = {}, {}
    for dh in (-1, 0, 1):
        vr = (rr + dh >= 0) & (rr + dh < 4)
        for dw in (-1, 0, 1):
            if dh == 0 and dw == 0:
                continue
            v = vr & (cc + dw >= 0) & (cc + dw < 4)
            mask16[(dh, dw)] = jnp.broadcast_to(v, (m, 16))
            mask2[(dh, dw)] = jnp.broadcast_to(v, (m, 2))

    def make_shifter(block):
        """Zero-pad `block` once; shifted views are static slices of it."""
        f = block.shape[1]
        zp = jnp.zeros((8, f), jnp.float32)
        ext = jnp.concatenate([zp, block, zp], axis=0)       # single concat

        def get(dh, dw, lo=0, width=None):
            w = f if width is None else width
            off = 8 + 4 * dh + dw
            return ext[off:off + m, lo:lo + w]
        return get

    def bn_relu(y, gb, groups):
        """Training-mode BatchNorm2d + ReLU.  `y` is (m, groups*C) with lanes
        ordered (phase_group, channel); stats are taken over rows AND the
        phase groups (== over N,H,W).  Both moments come from one reduction
        pass over the lane-stacked [y, y*y]."""
        GC = y.shape[1]
        C = GC // groups
        mo = jnp.mean(jnp.concatenate([y, y * y], axis=1),
                      axis=0, keepdims=True)                 # (1, 2*GC)
        mu_gc, mu2_gc = mo[:, :GC], mo[:, GC:]
        if groups == 1:
            mu, mu2 = mu_gc, mu2_gc
        else:
            mu = sum(mu_gc[:, g * C:(g + 1) * C] for g in range(groups)) / groups
            mu2 = sum(mu2_gc[:, g * C:(g + 1) * C] for g in range(groups)) / groups
        inv = lax.rsqrt(mu2 - mu * mu + BN_EPS)
        scale = gb[0:1, :] * inv
        shiftb = gb[1:2, :] - mu * scale
        if groups > 1:
            scale = jnp.concatenate([scale] * groups, axis=1)
            shiftb = jnp.concatenate([shiftb] * groups, axis=1)
        return jnp.maximum(y * scale + shiftb, 0.0)

    # ============================ encoder ===================================
    # conv1 1->16 k4 s2 p1: one (m,64)x(64,64) block-diagonal GEMM producing
    # the lane-dense (m,64) activation (4 phases x 16 ch along lanes).
    # (conv bias dropped: cancels exactly under training-mode BN.)
    h1 = jnp.dot(p1_ref[...], w1_ref[...], preferred_element_type=jnp.float32)
    h1 = bn_relu(h1, bn1_ref[...], groups=4)                 # (m, 64)

    # conv2 16->4 k4 s2 p1: all 16 taps gathered into one (m,256) patch
    # (static slices of the single padded h1 + pre-broadcast masks), then a
    # single (m,256)x(256,4) MXU GEMM.
    h1get = make_shifter(h1)
    tapmap = {0: (1, -1), 1: (0, 0), 2: (1, 0), 3: (0, 1)}   # kidx -> (phase, shift)
    blocks = []
    for i in range(4):
        s, dh = tapmap[i]
        for j in range(4):
            t, dw = tapmap[j]
            blk = h1get(dh, dw, lo=(2 * s + t) * 16, width=16)
            if (dh, dw) != (0, 0):
                blk = jnp.where(mask16[(dh, dw)], blk, 0.0)
            blocks.append(blk)
    patch2 = jnp.concatenate(blocks, axis=1)                 # (m, 256)
    h2 = jnp.dot(patch2, w2_ref[...], preferred_element_type=jnp.float32)
    h2 = bn_relu(h2, bn2_ref[...], groups=1)                 # (m, 4)

    # conv3 1x1 4->2: K=4 / N=2 stays on the VPU.
    w3t = w3t_ref[...]                                       # (2, 4) [co, ci]
    c0 = jnp.sum(h2 * w3t[0:1, :], axis=1, keepdims=True)
    c1 = jnp.sum(h2 * w3t[1:2, :], axis=1, keepdims=True)
    z = jnp.concatenate([c0, c1], axis=1) + b3_ref[...]      # (m, 2) latent

    # ================= vector quantization (pure VPU) =======================
    emb = emb_ref[...]                                       # (3, 2) codebook
    d0 = jnp.sum((z - emb[0:1, :]) ** 2, axis=1, keepdims=True)
    d1 = jnp.sum((z - emb[1:2, :]) ** 2, axis=1, keepdims=True)
    d2 = jnp.sum((z - emb[2:3, :]) ** 2, axis=1, keepdims=True)
    pick0 = (d0 <= d1) & (d0 <= d2)                          # lowest index wins
    pick1 = d1 <= d2                                         # ties (torch.argmin)
    qv = jnp.where(pick0, emb[0:1, :],
                   jnp.where(pick1, emb[1:2, :], emb[2:3, :]))   # (m, 2)
    diff = qv - z
    # codebook_loss + 0.2*commitment_loss: both equal MSE(q, z) in forward value.
    loss_ref[0, 0] = 1.2 * jnp.sum(diff * diff) / (m * 2)
    # straight-through: the decoder consumes q itself in the forward pass.

    # ============================ decoder ===================================
    # ConvT1 2->16 k4 s2 p1 via sub-pixel phases: one (m,24)x(24,64) GEMM over
    # the 9 shifted latent blocks (K padded 18->24), producing lane-dense h3.
    qget = make_shifter(qv)
    qblocks = []
    for dh in (-1, 0, 1):
        for dw in (-1, 0, 1):
            b = qget(dh, dw)
            if (dh, dw) != (0, 0):
                b = jnp.where(mask2[(dh, dw)], b, 0.0)
            qblocks.append(b)
    qblocks.append(jnp.zeros((m, 6), jnp.float32))           # K: 18 -> 24
    patch_t1 = jnp.concatenate(qblocks, axis=1)              # (m, 24)
    h3 = jnp.dot(patch_t1, wt1_ref[...], preferred_element_type=jnp.float32)
    h3 = bn_relu(h3, bnt1_ref[...], groups=4)                # (m, 64)

    # ConvT2 16->1 k4 s2 p1 + Tanh: 16 shifted h3 phase blocks -> one (m,256)
    # patch -> one (m,256)x(256,16) GEMM; scalar bias + a single full-width
    # tanh afterwards (no per-lane EUP pushes, no shift memo).
    h3get = make_shifter(h3)
    tblocks = []
    for eh in (-1, 0, 1, 2):
        phi = eh % 2
        gh = (eh - phi) // 2
        for ew in (-1, 0, 1, 2):
            psi = ew % 2
            gw = (ew - psi) // 2
            b = h3get(gh, gw, lo=(2 * phi + psi) * 16, width=16)
            if (gh, gw) != (0, 0):
                b = jnp.where(mask16[(gh, gw)], b, 0.0)
            tblocks.append(b)
    patch_t2 = jnp.concatenate(tblocks, axis=1)              # (m, 256)
    pre = jnp.dot(patch_t2, wt2_ref[...], preferred_element_type=jnp.float32)
    # Output layout: rows (n, oh//4, ow//4), lanes (oh%4)*4 + (ow%4).
    out_ref[...] = jnp.tanh(pre + bt2_ref[0, 0])


# ----------------------------------------------------------------------------
# Wrapper: one-time input patch extraction, weight packing, output relayout
# ----------------------------------------------------------------------------
def _conv1_patches(x):
    """Lane-dense im2col for conv1: rows (n, r, c) over the 4x4 latent grid,
    lanes (phase_s, phase_t, kh, kw) -> 64 lanes."""
    N = x.shape[0]
    xp = jnp.pad(x, ((0, 0), (1, 1), (1, 1)))                # (N, 18, 18)
    cols = []
    for s in range(2):
        for t in range(2):
            for i in range(4):
                for j in range(4):
                    sl = lax.slice(xp, (0, 2 * s + i, 2 * t + j),
                                   (N, 2 * s + i + 13, 2 * t + j + 13),
                                   (1, 4, 4))                # (N, 4, 4)
                    cols.append(sl.reshape(N * 16))
    return jnp.stack(cols, axis=-1)                          # (N*16, 64)


def pack_params(raw):
    """Re-layout PyTorch-shaped weights into the forms the kernel consumes.
    b1/b2/bt1 are NOT packed: a bias feeding training-mode BN cancels exactly."""
    # conv1: block-diagonal (64,64) so the GEMM emits the lane-dense (m,64).
    w1m = jnp.transpose(raw["w1"], (2, 3, 1, 0)).reshape(16, 16)
    w1blk = jnp.kron(jnp.eye(4, dtype=jnp.float32), w1m)

    # ConvT1: (24,64); rows (dh,dw,ci) [9 shifts x 2 ci, zero-padded to 24],
    # cols (phase p, phase t, co).
    wt1 = raw["wt1"]                                         # (2, 16, 4, 4)
    wt1g = jnp.zeros((24, 64), jnp.float32)
    for dh in (-1, 0, 1):
        for dw in (-1, 0, 1):
            for ci in range(2):
                row = ((dh + 1) * 3 + (dw + 1)) * 2 + ci
                for p in range(2):
                    a = dh + 1 - p
                    if a not in (0, 1):
                        continue
                    for t in range(2):
                        b = dw + 1 - t
                        if b not in (0, 1):
                            continue
                        kh, kw = 3 - p - 2 * a, 3 - t - 2 * b
                        col = (2 * p + t) * 16
                        wt1g = wt1g.at[row, col:col + 16].set(wt1[ci, :, kh, kw])

    # ConvT2: (256,16); row blocks indexed by (eh,ew) in {-1..2}^2 x ci,
    # cols = output sub-pixel lane (oh%4)*4 + (ow%4).
    wt2 = raw["wt2"]                                         # (16, 1, 4, 4)
    wt2g = jnp.zeros((256, 16), jnp.float32)
    for eh in range(-1, 3):
        for ew in range(-1, 3):
            base = ((eh + 1) * 4 + (ew + 1)) * 16
            for sg in range(2):
                for pp in range(2):
                    a = eh + 1 - sg - pp
                    if a not in (0, 1):
                        continue
                    kh = 3 - pp - 2 * a
                    for tu in range(2):
                        for qq in range(2):
                            b = ew + 1 - tu - qq
                            if b not in (0, 1):
                                continue
                            kw = 3 - qq - 2 * b
                            lane = (2 * sg + pp) * 4 + (2 * tu + qq)
                            wt2g = wt2g.at[base:base + 16, lane].set(
                                wt2[:, 0, kh, kw])

    return dict(
        w1blk=w1blk,                                         # (64, 64)
        bn1=jnp.stack([raw["g1"], raw["be1"]]),              # (2, 16)
        w2m=jnp.transpose(raw["w2"], (2, 3, 1, 0)).reshape(256, 4),
        bn2=jnp.stack([raw["g2"], raw["be2"]]),              # (2, 4)
        w3t=raw["w3"][:, :, 0, 0],                           # (2, 4) [co, ci]
        b3=raw["b3"][None, :],                               # (1, 2)
        emb=raw["emb"],                                      # (3, 2)
        wt1g=wt1g,                                           # (24, 64)
        bnt1=jnp.stack([raw["gt1"], raw["bet1"]]),           # (2, 16)
        wt2g=wt2g,                                           # (256, 16)
        bt2=raw["bt2"].reshape(1, 1),                        # (1, 1) -> SMEM
    )


def vqvae_forward(x_nchw, params):
    N = x_nchw.shape[0]
    x = x_nchw[:, 0].astype(jnp.float32)     # Cin == 1: just squeeze
    patches1 = _conv1_patches(x)

    vmem = pl.BlockSpec(memory_space=pltpu.MemorySpace.VMEM)
    smem = pl.BlockSpec(memory_space=pltpu.MemorySpace.SMEM)
    out_flat, loss = pl.pallas_call(
        functools.partial(_vqvae_fused_kernel, n=N),
        out_shape=(jax.ShapeDtypeStruct((N * 16, 16), jnp.float32),
                   jax.ShapeDtypeStruct((1, 1), jnp.float32)),
        in_specs=[vmem] * 11 + [smem],
        out_specs=(vmem, smem),
    )(patches1, params["w1blk"], params["bn1"], params["w2m"], params["bn2"],
      params["w3t"], params["b3"], params["emb"], params["wt1g"],
      params["bnt1"], params["wt2g"], params["bt2"])

    # kernel output: rows (n, oh//4, ow//4), lanes (oh%4)*4 + (ow%4)
    out = out_flat.reshape(N, 4, 4, 4, 4).transpose(0, 1, 3, 2, 4)
    out = out.reshape(N, 1, 16, 16)
    return out, loss[0, 0]


# ----------------------------------------------------------------------------
# Deterministic parameter init (shapes mirror the PyTorch __init__)
# ----------------------------------------------------------------------------
def init_params(key):
    ks = jax.random.split(key, 10)
    return dict(
        w1=0.1 * jax.random.normal(ks[0], (16, 1, 4, 4), jnp.float32),
        b1=0.05 * jax.random.normal(ks[1], (16,), jnp.float32),
        g1=jnp.ones((16,), jnp.float32), be1=jnp.zeros((16,), jnp.float32),
        w2=0.1 * jax.random.normal(ks[2], (4, 16, 4, 4), jnp.float32),
        b2=0.05 * jax.random.normal(ks[3], (4,), jnp.float32),
        g2=jnp.ones((4,), jnp.float32), be2=jnp.zeros((4,), jnp.float32),
        w3=0.1 * jax.random.normal(ks[4], (2, 4, 1, 1), jnp.float32),
        b3=0.05 * jax.random.normal(ks[5], (2,), jnp.float32),
        emb=jax.random.normal(ks[6], (3, 2), jnp.float32),      # Embedding(3, 2)
        wt1=0.1 * jax.random.normal(ks[7], (2, 16, 4, 4), jnp.float32),
        bt1=0.05 * jax.random.normal(ks[8], (16,), jnp.float32),
        gt1=jnp.ones((16,), jnp.float32), bet1=jnp.zeros((16,), jnp.float32),
        wt2=0.1 * jax.random.normal(ks[9], (16, 1, 4, 4), jnp.float32),
        bt2=jnp.zeros((1,), jnp.float32),
    )


if __name__ == "__main__":
    key = jax.random.PRNGKey(0)
    k_in, k_par = jax.random.split(key)
    x = jax.random.normal(k_in, (2, 1, 16, 16), jnp.float32)    # NCHW, 1 channel
    params = pack_params(init_params(k_par))

    fwd = jax.jit(vqvae_forward)
    out, q_loss = fwd(x, params)
    out = jax.block_until_ready(out)
    q_loss = jax.block_until_ready(q_loss)

    assert out.shape == (2, 1, 16, 16), out.shape
    assert out.dtype == jnp.float32
    assert q_loss.shape == ()
    print("KERNEL_OK")
</pallas_src>

<mosaic_0001>
module attributes {stable_mosaic.version = 11 : i64} {
  func.func @_vqvae_fused_kernel(%arg0: memref<32x64xf32, #tpu.memory_space<vmem>>, %arg1: memref<64x64xf32, #tpu.memory_space<vmem>>, %arg2: memref<2x16xf32, #tpu.memory_space<vmem>>, %arg3: memref<256x4xf32, #tpu.memory_space<vmem>>, %arg4: memref<2x4xf32, #tpu.memory_space<vmem>>, %arg5: memref<2x4xf32, #tpu.memory_space<vmem>>, %arg6: memref<1x2xf32, #tpu.memory_space<vmem>>, %arg7: memref<3x2xf32, #tpu.memory_space<vmem>>, %arg8: memref<24x64xf32, #tpu.memory_space<vmem>>, %arg9: memref<2x16xf32, #tpu.memory_space<vmem>>, %arg10: memref<256x16xf32, #tpu.memory_space<vmem>>, %arg11: memref<1x1xf32, #tpu.memory_space<smem>>, %arg12: memref<32x16xf32, #tpu.memory_space<vmem>>, %arg13: memref<1x1xf32, #tpu.memory_space<smem>>) attributes {dimension_semantics = [], scalar_prefetch = 0 : i64, scratch_operands = 0 : i64, tpu.core_type = #tpu.core_type<tc>} {
    %0 = tpu.iota {dimensions = array<i32: 0>} : vector<32x1xi32>
    %c2_i32 = arith.constant 2 : i32
    %1 = vector.broadcast %c2_i32 : i32 to vector<32x1xi32>
    %2 = arith.shrsi %0, %1 : vector<32x1xi32>
    %c3_i32 = arith.constant 3 : i32
    %3 = vector.broadcast %c3_i32 : i32 to vector<32x1xi32>
    %4 = arith.andi %2, %3 : vector<32x1xi32>
    %c3_i32_0 = arith.constant 3 : i32
    %5 = vector.broadcast %c3_i32_0 : i32 to vector<32x1xi32>
    %6 = arith.andi %0, %5 : vector<32x1xi32>
    %c-1_i32 = arith.constant -1 : i32
    %7 = vector.broadcast %c-1_i32 : i32 to vector<32x1xi32>
    %8 = arith.addi %4, %7 : vector<32x1xi32>
    %c0_i32 = arith.constant 0 : i32
    %9 = vector.broadcast %c0_i32 : i32 to vector<32x1xi32>
    %10 = arith.cmpi sge, %8, %9 : vector<32x1xi32>
    %c-1_i32_1 = arith.constant -1 : i32
    %11 = vector.broadcast %c-1_i32_1 : i32 to vector<32x1xi32>
    %12 = arith.addi %4, %11 : vector<32x1xi32>
    %c4_i32 = arith.constant 4 : i32
    %13 = vector.broadcast %c4_i32 : i32 to vector<32x1xi32>
    %14 = arith.cmpi slt, %12, %13 : vector<32x1xi32>
    %15 = arith.andi %10, %14 : vector<32x1xi1>
    %c-1_i32_2 = arith.constant -1 : i32
    %16 = vector.broadcast %c-1_i32_2 : i32 to vector<32x1xi32>
    %17 = arith.addi %6, %16 : vector<32x1xi32>
    %c0_i32_3 = arith.constant 0 : i32
    %18 = vector.broadcast %c0_i32_3 : i32 to vector<32x1xi32>
    %19 = arith.cmpi sge, %17, %18 : vector<32x1xi32>
    %20 = arith.andi %15, %19 : vector<32x1xi1>
    %c-1_i32_4 = arith.constant -1 : i32
    %21 = vector.broadcast %c-1_i32_4 : i32 to vector<32x1xi32>
    %22 = arith.addi %6, %21 : vector<32x1xi32>
    %c4_i32_5 = arith.constant 4 : i32
    %23 = vector.broadcast %c4_i32_5 : i32 to vector<32x1xi32>
    %24 = arith.cmpi slt, %22, %23 : vector<32x1xi32>
    %25 = arith.andi %20, %24 : vector<32x1xi1>
    %26 = vector.shape_cast %25 : vector<32x1xi1> to vector<32x1xi1>
    %27 = vector.broadcast %26 : vector<32x1xi1> to vector<32x16xi1>
    %28 = vector.shape_cast %25 : vector<32x1xi1> to vector<32x1xi1>
    %29 = vector.broadcast %28 : vector<32x1xi1> to vector<32x2xi1>
    %c0_i32_6 = arith.constant 0 : i32
    %30 = vector.broadcast %c0_i32_6 : i32 to vector<32x1xi32>
    %31 = arith.addi %6, %30 : vector<32x1xi32>
    %c0_i32_7 = arith.constant 0 : i32
    %32 = vector.broadcast %c0_i32_7 : i32 to vector<32x1xi32>
    %33 = arith.cmpi sge, %31, %32 : vector<32x1xi32>
    %34 = arith.andi %15, %33 : vector<32x1xi1>
    %c0_i32_8 = arith.constant 0 : i32
    %35 = vector.broadcast %c0_i32_8 : i32 to vector<32x1xi32>
    %36 = arith.addi %6, %35 : vector<32x1xi32>
    %c4_i32_9 = arith.constant 4 : i32
    %37 = vector.broadcast %c4_i32_9 : i32 to vector<32x1xi32>
    %38 = arith.cmpi slt, %36, %37 : vector<32x1xi32>
    %39 = arith.andi %34, %38 : vector<32x1xi1>
    %40 = vector.shape_cast %39 : vector<32x1xi1> to vector<32x1xi1>
    %41 = vector.broadcast %40 : vector<32x1xi1> to vector<32x16xi1>
    %42 = vector.shape_cast %39 : vector<32x1xi1> to vector<32x1xi1>
    %43 = vector.broadcast %42 : vector<32x1xi1> to vector<32x2xi1>
    %c1_i32 = arith.constant 1 : i32
    %44 = vector.broadcast %c1_i32 : i32 to vector<32x1xi32>
    %45 = arith.addi %6, %44 : vector<32x1xi32>
    %c0_i32_10 = arith.constant 0 : i32
    %46 = vector.broadcast %c0_i32_10 : i32 to vector<32x1xi32>
    %47 = arith.cmpi sge, %45, %46 : vector<32x1xi32>
    %48 = arith.andi %15, %47 : vector<32x1xi1>
    %c1_i32_11 = arith.constant 1 : i32
    %49 = vector.broadcast %c1_i32_11 : i32 to vector<32x1xi32>
    %50 = arith.addi %6, %49 : vector<32x1xi32>
    %c4_i32_12 = arith.constant 4 : i32
    %51 = vector.broadcast %c4_i32_12 : i32 to vector<32x1xi32>
    %52 = arith.cmpi slt, %50, %51 : vector<32x1xi32>
    %53 = arith.andi %48, %52 : vector<32x1xi1>
    %54 = vector.shape_cast %53 : vector<32x1xi1> to vector<32x1xi1>
    %55 = vector.broadcast %54 : vector<32x1xi1> to vector<32x16xi1>
    %56 = vector.shape_cast %53 : vector<32x1xi1> to vector<32x1xi1>
    %57 = vector.broadcast %56 : vector<32x1xi1> to vector<32x2xi1>
    %c0_i32_13 = arith.constant 0 : i32
    %58 = vector.broadcast %c0_i32_13 : i32 to vector<32x1xi32>
    %59 = arith.addi %4, %58 : vector<32x1xi32>
    %c0_i32_14 = arith.constant 0 : i32
    %60 = vector.broadcast %c0_i32_14 : i32 to vector<32x1xi32>
    %61 = arith.cmpi sge, %59, %60 : vector<32x1xi32>
    %c0_i32_15 = arith.constant 0 : i32
    %62 = vector.broadcast %c0_i32_15 : i32 to vector<32x1xi32>
    %63 = arith.addi %4, %62 : vector<32x1xi32>
    %c4_i32_16 = arith.constant 4 : i32
    %64 = vector.broadcast %c4_i32_16 : i32 to vector<32x1xi32>
    %65 = arith.cmpi slt, %63, %64 : vector<32x1xi32>
    %66 = arith.andi %61, %65 : vector<32x1xi1>
    %c-1_i32_17 = arith.constant -1 : i32
    %67 = vector.broadcast %c-1_i32_17 : i32 to vector<32x1xi32>
    %68 = arith.addi %6, %67 : vector<32x1xi32>
    %c0_i32_18 = arith.constant 0 : i32
    %69 = vector.broadcast %c0_i32_18 : i32 to vector<32x1xi32>
    %70 = arith.cmpi sge, %68, %69 : vector<32x1xi32>
    %71 = arith.andi %66, %70 : vector<32x1xi1>
    %c-1_i32_19 = arith.constant -1 : i32
    %72 = vector.broadcast %c-1_i32_19 : i32 to vector<32x1xi32>
    %73 = arith.addi %6, %72 : vector<32x1xi32>
    %c4_i32_20 = arith.constant 4 : i32
    %74 = vector.broadcast %c4_i32_20 : i32 to vector<32x1xi32>
    %75 = arith.cmpi slt, %73, %74 : vector<32x1xi32>
    %76 = arith.andi %71, %75 : vector<32x1xi1>
    %77 = vector.shape_cast %76 : vector<32x1xi1> to vector<32x1xi1>
    %78 = vector.broadcast %77 : vector<32x1xi1> to vector<32x16xi1>
    %79 = vector.shape_cast %76 : vector<32x1xi1> to vector<32x1xi1>
    %80 = vector.broadcast %79 : vector<32x1xi1> to vector<32x2xi1>
    %c1_i32_21 = arith.constant 1 : i32
    %81 = vector.broadcast %c1_i32_21 : i32 to vector<32x1xi32>
    %82 = arith.addi %6, %81 : vector<32x1xi32>
    %c0_i32_22 = arith.constant 0 : i32
    %83 = vector.broadcast %c0_i32_22 : i32 to vector<32x1xi32>
    %84 = arith.cmpi sge, %82, %83 : vector<32x1xi32>
    %85 = arith.andi %66, %84 : vector<32x1xi1>
    %c1_i32_23 = arith.constant 1 : i32
    %86 = vector.broadcast %c1_i32_23 : i32 to vector<32x1xi32>
    %87 = arith.addi %6, %86 : vector<32x1xi32>
    %c4_i32_24 = arith.constant 4 : i32
    %88 = vector.broadcast %c4_i32_24 : i32 to vector<32x1xi32>
    %89 = arith.cmpi slt, %87, %88 : vector<32x1xi32>
    %90 = arith.andi %85, %89 : vector<32x1xi1>
    %91 = vector.shape_cast %90 : vector<32x1xi1> to vector<32x1xi1>
    %92 = vector.broadcast %91 : vector<32x1xi1> to vector<32x16xi1>
    %93 = vector.shape_cast %90 : vector<32x1xi1> to vector<32x1xi1>
    %94 = vector.broadcast %93 : vector<32x1xi1> to vector<32x2xi1>
    %c1_i32_25 = arith.constant 1 : i32
    %95 = vector.broadcast %c1_i32_25 : i32 to vector<32x1xi32>
    %96 = arith.addi %4, %95 : vector<32x1xi32>
    %c0_i32_26 = arith.constant 0 : i32
    %97 = vector.broadcast %c0_i32_26 : i32 to vector<32x1xi32>
    %98 = arith.cmpi sge, %96, %97 : vector<32x1xi32>
    %c1_i32_27 = arith.constant 1 : i32
    %99 = vector.broadcast %c1_i32_27 : i32 to vector<32x1xi32>
    %100 = arith.addi %4, %99 : vector<32x1xi32>
    %c4_i32_28 = arith.constant 4 : i32
    %101 = vector.broadcast %c4_i32_28 : i32 to vector<32x1xi32>
    %102 = arith.cmpi slt, %100, %101 : vector<32x1xi32>
    %103 = arith.andi %98, %102 : vector<32x1xi1>
    %c-1_i32_29 = arith.constant -1 : i32
    %104 = vector.broadcast %c-1_i32_29 : i32 to vector<32x1xi32>
    %105 = arith.addi %6, %104 : vector<32x1xi32>
    %c0_i32_30 = arith.constant 0 : i32
    %106 = vector.broadcast %c0_i32_30 : i32 to vector<32x1xi32>
    %107 = arith.cmpi sge, %105, %106 : vector<32x1xi32>
    %108 = arith.andi %103, %107 : vector<32x1xi1>
    %c-1_i32_31 = arith.constant -1 : i32
    %109 = vector.broadcast %c-1_i32_31 : i32 to vector<32x1xi32>
    %110 = arith.addi %6, %109 : vector<32x1xi32>
    %c4_i32_32 = arith.constant 4 : i32
    %111 = vector.broadcast %c4_i32_32 : i32 to vector<32x1xi32>
    %112 = arith.cmpi slt, %110, %111 : vector<32x1xi32>
    %113 = arith.andi %108, %112 : vector<32x1xi1>
    %114 = vector.shape_cast %113 : vector<32x1xi1> to vector<32x1xi1>
    %115 = vector.broadcast %114 : vector<32x1xi1> to vector<32x16xi1>
    %116 = vector.shape_cast %113 : vector<32x1xi1> to vector<32x1xi1>
    %117 = vector.broadcast %116 : vector<32x1xi1> to vector<32x2xi1>
    %c0_i32_33 = arith.constant 0 : i32
    %118 = vector.broadcast %c0_i32_33 : i32 to vector<32x1xi32>
    %119 = arith.addi %6, %118 : vector<32x1xi32>
    %c0_i32_34 = arith.constant 0 : i32
    %120 = vector.broadcast %c0_i32_34 : i32 to vector<32x1xi32>
    %121 = arith.cmpi sge, %119, %120 : vector<32x1xi32>
    %122 = arith.andi %103, %121 : vector<32x1xi1>
    %c0_i32_35 = arith.constant 0 : i32
    %123 = vector.broadcast %c0_i32_35 : i32 to vector<32x1xi32>
    %124 = arith.addi %6, %123 : vector<32x1xi32>
    %c4_i32_36 = arith.constant 4 : i32
    %125 = vector.broadcast %c4_i32_36 : i32 to vector<32x1xi32>
    %126 = arith.cmpi slt, %124, %125 : vector<32x1xi32>
    %127 = arith.andi %122, %126 : vector<32x1xi1>
    %128 = vector.shape_cast %127 : vector<32x1xi1> to vector<32x1xi1>
    %129 = vector.broadcast %128 : vector<32x1xi1> to vector<32x16xi1>
    %130 = vector.shape_cast %127 : vector<32x1xi1> to vector<32x1xi1>
    %131 = vector.broadcast %130 : vector<32x1xi1> to vector<32x2xi1>
    %c1_i32_37 = arith.constant 1 : i32
    %132 = vector.broadcast %c1_i32_37 : i32 to vector<32x1xi32>
    %133 = arith.addi %6, %132 : vector<32x1xi32>
    %c0_i32_38 = arith.constant 0 : i32
    %134 = vector.broadcast %c0_i32_38 : i32 to vector<32x1xi32>
    %135 = arith.cmpi sge, %133, %134 : vector<32x1xi32>
    %136 = arith.andi %103, %135 : vector<32x1xi1>
    %c1_i32_39 = arith.constant 1 : i32
    %137 = vector.broadcast %c1_i32_39 : i32 to vector<32x1xi32>
    %138 = arith.addi %6, %137 : vector<32x1xi32>
    %c4_i32_40 = arith.constant 4 : i32
    %139 = vector.broadcast %c4_i32_40 : i32 to vector<32x1xi32>
    %140 = arith.cmpi slt, %138, %139 : vector<32x1xi32>
    %141 = arith.andi %136, %140 : vector<32x1xi1>
    %142 = vector.shape_cast %141 : vector<32x1xi1> to vector<32x1xi1>
    %143 = vector.broadcast %142 : vector<32x1xi1> to vector<32x16xi1>
    %144 = vector.shape_cast %141 : vector<32x1xi1> to vector<32x1xi1>
    %145 = vector.broadcast %144 : vector<32x1xi1> to vector<32x2xi1>
    %c0 = arith.constant 0 : index
    %c0_41 = arith.constant 0 : index
    %146 = vector.load %arg0[%c0, %c0_41] : memref<32x64xf32, #tpu.memory_space<vmem>>, vector<32x64xf32>
    %c0_42 = arith.constant 0 : index
    %c0_43 = arith.constant 0 : index
    %147 = vector.load %arg1[%c0_42, %c0_43] : memref<64x64xf32, #tpu.memory_space<vmem>>, vector<64x64xf32>
    %cst = arith.constant dense<0.000000e+00> : vector<32x64xf32>
    %148 = tpu.matmul %146, %147, %cst {dimension_numbers = #tpu.dot_dimension_numbers<[1], [0], [0], [1], [0, 0, 1, 1], [], []>} : vector<32x64xf32>, vector<64x64xf32>, vector<32x64xf32> -> vector<32x64xf32>
    %c0_44 = arith.constant 0 : index
    %c0_45 = arith.constant 0 : index
    %149 = vector.load %arg2[%c0_44, %c0_45] : memref<2x16xf32, #tpu.memory_space<vmem>>, vector<2x16xf32>
    %150 = arith.mulf %148, %148 : vector<32x64xf32>
    %151 = tpu.concatenate %148, %150 in 1 : vector<32x64xf32>, vector<32x64xf32> -> vector<32x128xf32>
    %cst_46 = arith.constant dense<0.000000e+00> : vector<128xf32>
    %152 = vector.multi_reduction <add>, %151, %cst_46 [0] : vector<32x128xf32> to vector<128xf32>
    %153 = vector.shape_cast %152 : vector<128xf32> to vector<1x128xf32>
    %cst_47 = arith.constant 3.200000e+01 : f32
    %154 = vector.broadcast %cst_47 : f32 to vector<1x128xf32>
    %155 = arith.divf %153, %154 : vector<1x128xf32>
    %156 = vector.extract_strided_slice %155 {offsets = [0, 0], sizes = [1, 64], strides = [1, 1]} : vector<1x128xf32> to vector<1x64xf32>
    %157 = vector.extract_strided_slice %155 {offsets = [0, 64], sizes = [1, 64], strides = [1, 1]} : vector<1x128xf32> to vector<1x64xf32>
    %158 = vector.extract_strided_slice %156 {offsets = [0, 0], sizes = [1, 16], strides = [1, 1]} : vector<1x64xf32> to vector<1x16xf32>
    %cst_48 = arith.constant 0.000000e+00 : f32
    %159 = vector.broadcast %cst_48 : f32 to vector<1x16xf32>
    %160 = arith.addf %159, %158 : vector<1x16xf32>
    %161 = vector.extract_strided_slice %156 {offsets = [0, 16], sizes = [1, 16], strides = [1, 1]} : vector<1x64xf32> to vector<1x16xf32>
    %162 = arith.addf %160, %161 : vector<1x16xf32>
    %163 = vector.extract_strided_slice %156 {offsets = [0, 32], sizes = [1, 16], strides = [1, 1]} : vector<1x64xf32> to vector<1x16xf32>
    %164 = arith.addf %162, %163 : vector<1x16xf32>
    %165 = vector.extract_strided_slice %156 {offsets = [0, 48], sizes = [1, 16], strides = [1, 1]} : vector<1x64xf32> to vector<1x16xf32>
    %166 = arith.addf %164, %165 : vector<1x16xf32>
    %cst_49 = arith.constant 4.000000e+00 : f32
    %167 = vector.broadcast %cst_49 : f32 to vector<1x16xf32>
    %168 = arith.divf %166, %167 : vector<1x16xf32>
    %169 = vector.extract_strided_slice %157 {offsets = [0, 0], sizes = [1, 16], strides = [1, 1]} : vector<1x64xf32> to vector<1x16xf32>
    %cst_50 = arith.constant 0.000000e+00 : f32
    %170 = vector.broadcast %cst_50 : f32 to vector<1x16xf32>
    %171 = arith.addf %170, %169 : vector<1x16xf32>
    %172 = vector.extract_strided_slice %157 {offsets = [0, 16], sizes = [1, 16], strides = [1, 1]} : vector<1x64xf32> to vector<1x16xf32>
    %173 = arith.addf %171, %172 : vector<1x16xf32>
    %174 = vector.extract_strided_slice %157 {offsets = [0, 32], sizes = [1, 16], strides = [1, 1]} : vector<1x64xf32> to vector<1x16xf32>
    %175 = arith.addf %173, %174 : vector<1x16xf32>
    %176 = vector.extract_strided_slice %157 {offsets = [0, 48], sizes = [1, 16], strides = [1, 1]} : vector<1x64xf32> to vector<1x16xf32>
    %177 = arith.addf %175, %176 : vector<1x16xf32>
    %cst_51 = arith.constant 4.000000e+00 : f32
    %178 = vector.broadcast %cst_51 : f32 to vector<1x16xf32>
    %179 = arith.divf %177, %178 : vector<1x16xf32>
    %180 = arith.mulf %168, %168 : vector<1x16xf32>
    %181 = arith.subf %179, %180 : vector<1x16xf32>
    %cst_52 = arith.constant 9.99999974E-6 : f32
    %182 = vector.broadcast %cst_52 : f32 to vector<1x16xf32>
    %183 = arith.addf %181, %182 : vector<1x16xf32>
    %184 = math.rsqrt %183 : vector<1x16xf32>
    %185 = vector.extract_strided_slice %149 {offsets = [0, 0], sizes = [1, 16], strides = [1, 1]} : vector<2x16xf32> to vector<1x16xf32>
    %186 = arith.mulf %185, %184 : vector<1x16xf32>
    %187 = vector.extract_strided_slice %149 {offsets = [1, 0], sizes = [1, 16], strides = [1, 1]} : vector<2x16xf32> to vector<1x16xf32>
    %188 = arith.mulf %168, %186 : vector<1x16xf32>
    %189 = arith.subf %187, %188 : vector<1x16xf32>
    %190 = tpu.concatenate %186, %186, %186, %186 in 1 : vector<1x16xf32>, vector<1x16xf32>, vector<1x16xf32>, vector<1x16xf32> -> vector<1x64xf32>
    %191 = tpu.concatenate %189, %189, %189, %189 in 1 : vector<1x16xf32>, vector<1x16xf32>, vector<1x16xf32>, vector<1x16xf32> -> vector<1x64xf32>
    %192 = vector.broadcast %190 : vector<1x64xf32> to vector<32x64xf32>
    %193 = arith.mulf %148, %192 : vector<32x64xf32>
    %194 = vector.broadcast %191 : vector<1x64xf32> to vector<32x64xf32>
    %195 = arith.addf %193, %194 : vector<32x64xf32>
    %cst_53 = arith.constant 0.000000e+00 : f32
    %196 = vector.broadcast %cst_53 : f32 to vector<32x64xf32>
    %197 = arith.maximumf %195, %196 : vector<32x64xf32>
    %cst_54 = arith.constant 0.000000e+00 : f32
    %198 = vector.broadcast %cst_54 : f32 to vector<8x64xf32>
    %199 = tpu.concatenate %198, %197, %198 in 0 : vector<8x64xf32>, vector<32x64xf32>, vector<8x64xf32> -> vector<48x64xf32>
    %200 = vector.extract_strided_slice %199 {offsets = [3, 48], sizes = [32, 16], strides = [1, 1]} : vector<48x64xf32> to vector<32x16xf32>
    %cst_55 = arith.constant 0.000000e+00 : f32
    %201 = vector.broadcast %cst_55 : f32 to vector<32x16xf32>
    %202 = arith.select %27, %200, %201 : vector<32x16xi1>, vector<32x16xf32>
    %203 = vector.extract_strided_slice %199 {offsets = [4, 32], sizes = [32, 16], strides = [1, 1]} : vector<48x64xf32> to vector<32x16xf32>
    %cst_56 = arith.constant 0.000000e+00 : f32
    %204 = vector.broadcast %cst_56 : f32 to vector<32x16xf32>
    %205 = arith.select %41, %203, %204 : vector<32x16xi1>, vector<32x16xf32>
    %206 = vector.extract_strided_slice %199 {offsets = [4, 48], sizes = [32, 16], strides = [1, 1]} : vector<48x64xf32> to vector<32x16xf32>
    %cst_57 = arith.constant 0.000000e+00 : f32
    %207 = vector.broadcast %cst_57 : f32 to vector<32x16xf32>
    %208 = arith.select %41, %206, %207 : vector<32x16xi1>, vector<32x16xf32>
    %209 = vector.extract_strided_slice %199 {offsets = [5, 32], sizes = [32, 16], strides = [1, 1]} : vector<48x64xf32> to vector<32x16xf32>
    %cst_58 = arith.constant 0.000000e+00 : f32
    %210 = vector.broadcast %cst_58 : f32 to vector<32x16xf32>
    %211 = arith.select %55, %209, %210 : vector<32x16xi1>, vector<32x16xf32>
    %212 = vector.extract_strided_slice %199 {offsets = [7, 16], sizes = [32, 16], strides = [1, 1]} : vector<48x64xf32> to vector<32x16xf32>
    %cst_59 = arith.constant 0.000000e+00 : f32
    %213 = vector.broadcast %cst_59 : f32 to vector<32x16xf32>
    %214 = arith.select %78, %212, %213 : vector<32x16xi1>, vector<32x16xf32>
    %215 = vector.extract_strided_slice %199 {offsets = [8, 0], sizes = [32, 16], strides = [1, 1]} : vector<48x64xf32> to vector<32x16xf32>
    %216 = vector.extract_strided_slice %199 {offsets = [8, 16], sizes = [32, 16], strides = [1, 1]} : vector<48x64xf32> to vector<32x16xf32>
    %217 = vector.extract_strided_slice %199 {offsets = [9, 0], sizes = [32, 16], strides = [1, 1]} : vector<48x64xf32> to vector<32x16xf32>
    %cst_60 = arith.constant 0.000000e+00 : f32
    %218 = vector.broadcast %cst_60 : f32 to vector<32x16xf32>
    %219 = arith.select %92, %217, %218 : vector<32x16xi1>, vector<32x16xf32>
    %220 = vector.extract_strided_slice %199 {offsets = [7, 48], sizes = [32, 16], strides = [1, 1]} : vector<48x64xf32> to vector<32x16xf32>
    %cst_61 = arith.constant 0.000000e+00 : f32
    %221 = vector.broadcast %cst_61 : f32 to vector<32x16xf32>
    %222 = arith.select %78, %220, %221 : vector<32x16xi1>, vector<32x16xf32>
    %223 = vector.extract_strided_slice %199 {offsets = [8, 32], sizes = [32, 16], strides = [1, 1]} : vector<48x64xf32> to vector<32x16xf32>
    %224 = vector.extract_strided_slice %199 {offsets = [8, 48], sizes = [32, 16], strides = [1, 1]} : vector<48x64xf32> to vector<32x16xf32>
    %225 = vector.extract_strided_slice %199 {offsets = [9, 32], sizes = [32, 16], strides = [1, 1]} : vector<48x64xf32> to vector<32x16xf32>
    %cst_62 = arith.constant 0.000000e+00 : f32
    %226 = vector.broadcast %cst_62 : f32 to vector<32x16xf32>
    %227 = arith.select %92, %225, %226 : vector<32x16xi1>, vector<32x16xf32>
    %228 = vector.extract_strided_slice %199 {offsets = [11, 16], sizes = [32, 16], strides = [1, 1]} : vector<48x64xf32> to vector<32x16xf32>
    %cst_63 = arith.constant 0.000000e+00 : f32
    %229 = vector.broadcast %cst_63 : f32 to vector<32x16xf32>
    %230 = arith.select %115, %228, %229 : vector<32x16xi1>, vector<32x16xf32>
    %231 = vector.extract_strided_slice %199 {offsets = [12, 0], sizes = [32, 16], strides = [1, 1]} : vector<48x64xf32> to vector<32x16xf32>
    %cst_64 = arith.constant 0.000000e+00 : f32
    %232 = vector.broadcast %cst_64 : f32 to vector<32x16xf32>
    %233 = arith.select %129, %231, %232 : vector<32x16xi1>, vector<32x16xf32>
    %234 = vector.extract_strided_slice %199 {offsets = [12, 16], sizes = [32, 16], strides = [1, 1]} : vector<48x64xf32> to vector<32x16xf32>
    %cst_65 = arith.constant 0.000000e+00 : f32
    %235 = vector.broadcast %cst_65 : f32 to vector<32x16xf32>
    %236 = arith.select %129, %234, %235 : vector<32x16xi1>, vector<32x16xf32>
    %237 = vector.extract_strided_slice %199 {offsets = [13, 0], sizes = [32, 16], strides = [1, 1]} : vector<48x64xf32> to vector<32x16xf32>
    %cst_66 = arith.constant 0.000000e+00 : f32
    %238 = vector.broadcast %cst_66 : f32 to vector<32x16xf32>
    %239 = arith.select %143, %237, %238 : vector<32x16xi1>, vector<32x16xf32>
    %240 = tpu.concatenate %202, %205, %208, %211, %214, %215, %216, %219, %222, %223, %224, %227, %230, %233, %236, %239 in 1 : vector<32x16xf32>, vector<32x16xf32>, vector<32x16xf32>, vector<32x16xf32>, vector<32x16xf32>, vector<32x16xf32>, vector<32x16xf32>, vector<32x16xf32>, vector<32x16xf32>, vector<32x16xf32>, vector<32x16xf32>, vector<32x16xf32>, vector<32x16xf32>, vector<32x16xf32>, vector<32x16xf32>, vector<32x16xf32> -> vector<32x256xf32>
    %c0_67 = arith.constant 0 : index
    %c0_68 = arith.constant 0 : index
    %241 = vector.load %arg3[%c0_67, %c0_68] : memref<256x4xf32, #tpu.memory_space<vmem>>, vector<256x4xf32>
    %cst_69 = arith.constant dense<0.000000e+00> : vector<32x4xf32>
    %242 = tpu.matmul %240, %241, %cst_69 {dimension_numbers = #tpu.dot_dimension_numbers<[1], [0], [0], [1], [0, 0, 1, 1], [], []>} : vector<32x256xf32>, vector<256x4xf32>, vector<32x4xf32> -> vector<32x4xf32>
    %c0_70 = arith.constant 0 : index
    %c0_71 = arith.constant 0 : index
    %243 = vector.load %arg4[%c0_70, %c0_71] : memref<2x4xf32, #tpu.memory_space<vmem>>, vector<2x4xf32>
    %244 = arith.mulf %242, %242 : vector<32x4xf32>
    %245 = tpu.concatenate %242, %244 in 1 : vector<32x4xf32>, vector<32x4xf32> -> vector<32x8xf32>
    %cst_72 = arith.constant dense<0.000000e+00> : vector<8xf32>
    %246 = vector.multi_reduction <add>, %245, %cst_72 [0] : vector<32x8xf32> to vector<8xf32>
    %247 = vector.shape_cast %246 : vector<8xf32> to vector<1x8xf32>
    %cst_73 = arith.constant 3.200000e+01 : f32
    %248 = vector.broadcast %cst_73 : f32 to vector<1x8xf32>
    %249 = arith.divf %247, %248 : vector<1x8xf32>
    %250 = vector.extract_strided_slice %249 {offsets = [0, 0], sizes = [1, 4], strides = [1, 1]} : vector<1x8xf32> to vector<1x4xf32>
    %251 = vector.extract_strided_slice %249 {offsets = [0, 4], sizes = [1, 4], strides = [1, 1]} : vector<1x8xf32> to vector<1x4xf32>
    %252 = arith.mulf %250, %250 : vector<1x4xf32>
    %253 = arith.subf %251, %252 : vector<1x4xf32>
    %cst_74 = arith.constant 9.99999974E-6 : f32
    %254 = vector.broadcast %cst_74 : f32 to vector<1x4xf32>
    %255 = arith.addf %253, %254 : vector<1x4xf32>
    %256 = math.rsqrt %255 : vector<1x4xf32>
    %257 = vector.extract_strided_slice %243 {offsets = [0, 0], sizes = [1, 4], strides = [1, 1]} : vector<2x4xf32> to vector<1x4xf32>
    %258 = arith.mulf %257, %256 : vector<1x4xf32>
    %259 = vector.extract_strided_slice %243 {offsets = [1, 0], sizes = [1, 4], strides = [1, 1]} : vector<2x4xf32> to vector<1x4xf32>
    %260 = arith.mulf %250, %258 : vector<1x4xf32>
    %261 = arith.subf %259, %260 : vector<1x4xf32>
    %262 = vector.broadcast %258 : vector<1x4xf32> to vector<32x4xf32>
    %263 = arith.mulf %242, %262 : vector<32x4xf32>
    %264 = vector.broadcast %261 : vector<1x4xf32> to vector<32x4xf32>
    %265 = arith.addf %263, %264 : vector<32x4xf32>
    %cst_75 = arith.constant 0.000000e+00 : f32
    %266 = vector.broadcast %cst_75 : f32 to vector<32x4xf32>
    %267 = arith.maximumf %265, %266 : vector<32x4xf32>
    %c0_76 = arith.constant 0 : index
    %c0_77 = arith.constant 0 : index
    %268 = vector.load %arg5[%c0_76, %c0_77] : memref<2x4xf32, #tpu.memory_space<vmem>>, vector<2x4xf32>
    %269 = vector.extract_strided_slice %268 {offsets = [0, 0], sizes = [1, 4], strides = [1, 1]} : vector<2x4xf32> to vector<1x4xf32>
    %270 = vector.broadcast %269 : vector<1x4xf32> to vector<32x4xf32>
    %271 = arith.mulf %267, %270 : vector<32x4xf32>
    %cst_78 = arith.constant dense<0.000000e+00> : vector<32xf32>
    %272 = vector.multi_reduction <add>, %271, %cst_78 [1] : vector<32x4xf32> to vector<32xf32>
    %273 = vector.shape_cast %272 : vector<32xf32> to vector<32x1xf32>
    %274 = vector.extract_strided_slice %268 {offsets = [1, 0], sizes = [1, 4], strides = [1, 1]} : vector<2x4xf32> to vector<1x4xf32>
    %275 = vector.broadcast %274 : vector<1x4xf32> to vector<32x4xf32>
    %276 = arith.mulf %267, %275 : vector<32x4xf32>
    %cst_79 = arith.constant dense<0.000000e+00> : vector<32xf32>
    %277 = vector.multi_reduction <add>, %276, %cst_79 [1] : vector<32x4xf32> to vector<32xf32>
    %278 = vector.shape_cast %277 : vector<32xf32> to vector<32x1xf32>
    %279 = tpu.concatenate %273, %278 in 1 : vector<32x1xf32>, vector<32x1xf32> -> vector<32x2xf32>
    %c0_80 = arith.constant 0 : index
    %c0_81 = arith.constant 0 : index
    %280 = vector.load %arg6[%c0_80, %c0_81] : memref<1x2xf32, #tpu.memory_space<vmem>>, vector<1x2xf32>
    %281 = vector.broadcast %280 : vector<1x2xf32> to vector<32x2xf32>
    %282 = arith.addf %279, %281 : vector<32x2xf32>
    %c0_82 = arith.constant 0 : index
    %c0_83 = arith.constant 0 : index
    %283 = vector.load %arg7[%c0_82, %c0_83] : memref<3x2xf32, #tpu.memory_space<vmem>>, vector<3x2xf32>
    %284 = vector.extract_strided_slice %283 {offsets = [0, 0], sizes = [1, 2], strides = [1, 1]} : vector<3x2xf32> to vector<1x2xf32>
    %285 = vector.broadcast %284 : vector<1x2xf32> to vector<32x2xf32>
    %286 = arith.subf %282, %285 : vector<32x2xf32>
    %287 = arith.mulf %286, %286 : vector<32x2xf32>
    %cst_84 = arith.constant dense<0.000000e+00> : vector<32xf32>
    %288 = vector.multi_reduction <add>, %287, %cst_84 [1] : vector<32x2xf32> to vector<32xf32>
    %289 = vector.shape_cast %288 : vector<32xf32> to vector<32x1xf32>
    %290 = vector.extract_strided_slice %283 {offsets = [1, 0], sizes = [1, 2], strides = [1, 1]} : vector<3x2xf32> to vector<1x2xf32>
    %291 = vector.broadcast %290 : vector<1x2xf32> to vector<32x2xf32>
    %292 = arith.subf %282, %291 : vector<32x2xf32>
    %293 = arith.mulf %292, %292 : vector<32x2xf32>
    %cst_85 = arith.constant dense<0.000000e+00> : vector<32xf32>
    %294 = vector.multi_reduction <add>, %293, %cst_85 [1] : vector<32x2xf32> to vector<32xf32>
    %295 = vector.shape_cast %294 : vector<32xf32> to vector<32x1xf32>
    %296 = vector.extract_strided_slice %283 {offsets = [2, 0], sizes = [1, 2], strides = [1, 1]} : vector<3x2xf32> to vector<1x2xf32>
    %297 = vector.broadcast %296 : vector<1x2xf32> to vector<32x2xf32>
    %298 = arith.subf %282, %297 : vector<32x2xf32>
    %299 = arith.mulf %298, %298 : vector<32x2xf32>
    %cst_86 = arith.constant dense<0.000000e+00> : vector<32xf32>
    %300 = vector.multi_reduction <add>, %299, %cst_86 [1] : vector<32x2xf32> to vector<32xf32>
    %301 = vector.shape_cast %300 : vector<32xf32> to vector<32x1xf32>
    %302 = arith.cmpf ole, %289, %295 : vector<32x1xf32>
    %303 = arith.cmpf ole, %289, %301 : vector<32x1xf32>
    %304 = arith.andi %302, %303 : vector<32x1xi1>
    %305 = arith.cmpf ole, %295, %301 : vector<32x1xf32>
    %306 = vector.extract_strided_slice %283 {offsets = [0, 0], sizes = [1, 2], strides = [1, 1]} : vector<3x2xf32> to vector<1x2xf32>
    %307 = vector.extract_strided_slice %283 {offsets = [1, 0], sizes = [1, 2], strides = [1, 1]} : vector<3x2xf32> to vector<1x2xf32>
    %308 = vector.extract_strided_slice %283 {offsets = [2, 0], sizes = [1, 2], strides = [1, 1]} : vector<3x2xf32> to vector<1x2xf32>
    %309 = vector.shape_cast %305 : vector<32x1xi1> to vector<32x1xi1>
    %310 = vector.broadcast %309 : vector<32x1xi1> to vector<32x2xi1>
    %311 = vector.shape_cast %307 : vector<1x2xf32> to vector<1x2xf32>
    %312 = vector.broadcast %311 : vector<1x2xf32> to vector<32x2xf32>
    %313 = vector.shape_cast %308 : vector<1x2xf32> to vector<1x2xf32>
    %314 = vector.broadcast %313 : vector<1x2xf32> to vector<32x2xf32>
    %315 = arith.select %310, %312, %314 : vector<32x2xi1>, vector<32x2xf32>
    %316 = vector.shape_cast %304 : vector<32x1xi1> to vector<32x1xi1>
    %317 = vector.broadcast %316 : vector<32x1xi1> to vector<32x2xi1>
    %318 = vector.shape_cast %306 : vector<1x2xf32> to vector<1x2xf32>
    %319 = vector.broadcast %318 : vector<1x2xf32> to vector<32x2xf32>
    %320 = arith.select %317, %319, %315 : vector<32x2xi1>, vector<32x2xf32>
    %321 = arith.subf %320, %282 : vector<32x2xf32>
    %322 = arith.mulf %321, %321 : vector<32x2xf32>
    %323 = vector.shape_cast %322 : vector<32x2xf32> to vector<1x32x2xf32>
    %cst_87 = arith.constant dense<0.000000e+00> : vector<1xf32>
    %324 = vector.multi_reduction <add>, %323, %cst_87 [1, 2] : vector<1x32x2xf32> to vector<1xf32>
    %325 = vector.shape_cast %324 : vector<1xf32> to vector<1x1x1xf32>
    %326 = vector.extract %325[0, 0, 0] : f32 from vector<1x1x1xf32>
    %cst_88 = arith.constant 1.200000e+00 : f32
    %327 = arith.mulf %cst_88, %326 : f32
    %cst_89 = arith.constant 6.400000e+01 : f32
    %328 = arith.divf %327, %cst_89 : f32
    %c0_90 = arith.constant 0 : index
    %c0_91 = arith.constant 0 : index
    %329 = memref.load %arg13[%c0_90, %c0_91] : memref<1x1xf32, #tpu.memory_space<smem>>
    memref.store %328, %arg13[%c0_90, %c0_91] : memref<1x1xf32, #tpu.memory_space<smem>>
    %cst_92 = arith.constant 0.000000e+00 : f32
    %330 = vector.broadcast %cst_92 : f32 to vector<8x2xf32>
    %331 = tpu.concatenate %330, %320, %330 in 0 : vector<8x2xf32>, vector<32x2xf32>, vector<8x2xf32> -> vector<48x2xf32>
    %332 = vector.extract_strided_slice %331 {offsets = [3, 0], sizes = [32, 2], strides = [1, 1]} : vector<48x2xf32> to vector<32x2xf32>
    %cst_93 = arith.constant 0.000000e+00 : f32
    %333 = vector.broadcast %cst_93 : f32 to vector<32x2xf32>
    %334 = arith.select %29, %332, %333 : vector<32x2xi1>, vector<32x2xf32>
    %335 = vector.extract_strided_slice %331 {offsets = [4, 0], sizes = [32, 2], strides = [1, 1]} : vector<48x2xf32> to vector<32x2xf32>
    %cst_94 = arith.constant 0.000000e+00 : f32
    %336 = vector.broadcast %cst_94 : f32 to vector<32x2xf32>
    %337 = arith.select %43, %335, %336 : vector<32x2xi1>, vector<32x2xf32>
    %338 = vector.extract_strided_slice %331 {offsets = [5, 0], sizes = [32, 2], strides = [1, 1]} : vector<48x2xf32> to vector<32x2xf32>
    %cst_95 = arith.constant 0.000000e+00 : f32
    %339 = vector.broadcast %cst_95 : f32 to vector<32x2xf32>
    %340 = arith.select %57, %338, %339 : vector<32x2xi1>, vector<32x2xf32>
    %341 = vector.extract_strided_slice %331 {offsets = [7, 0], sizes = [32, 2], strides = [1, 1]} : vector<48x2xf32> to vector<32x2xf32>
    %cst_96 = arith.constant 0.000000e+00 : f32
    %342 = vector.broadcast %cst_96 : f32 to vector<32x2xf32>
    %343 = arith.select %80, %341, %342 : vector<32x2xi1>, vector<32x2xf32>
    %344 = vector.extract_strided_slice %331 {offsets = [8, 0], sizes = [32, 2], strides = [1, 1]} : vector<48x2xf32> to vector<32x2xf32>
    %345 = vector.extract_strided_slice %331 {offsets = [9, 0], sizes = [32, 2], strides = [1, 1]} : vector<48x2xf32> to vector<32x2xf32>
    %cst_97 = arith.constant 0.000000e+00 : f32
    %346 = vector.broadcast %cst_97 : f32 to vector<32x2xf32>
    %347 = arith.select %94, %345, %346 : vector<32x2xi1>, vector<32x2xf32>
    %348 = vector.extract_strided_slice %331 {offsets = [11, 0], sizes = [32, 2], strides = [1, 1]} : vector<48x2xf32> to vector<32x2xf32>
    %cst_98 = arith.constant 0.000000e+00 : f32
    %349 = vector.broadcast %cst_98 : f32 to vector<32x2xf32>
    %350 = arith.select %117, %348, %349 : vector<32x2xi1>, vector<32x2xf32>
    %351 = vector.extract_strided_slice %331 {offsets = [12, 0], sizes = [32, 2], strides = [1, 1]} : vector<48x2xf32> to vector<32x2xf32>
    %cst_99 = arith.constant 0.000000e+00 : f32
    %352 = vector.broadcast %cst_99 : f32 to vector<32x2xf32>
    %353 = arith.select %131, %351, %352 : vector<32x2xi1>, vector<32x2xf32>
    %354 = vector.extract_strided_slice %331 {offsets = [13, 0], sizes = [32, 2], strides = [1, 1]} : vector<48x2xf32> to vector<32x2xf32>
    %cst_100 = arith.constant 0.000000e+00 : f32
    %355 = vector.broadcast %cst_100 : f32 to vector<32x2xf32>
    %356 = arith.select %145, %354, %355 : vector<32x2xi1>, vector<32x2xf32>
    %cst_101 = arith.constant 0.000000e+00 : f32
    %357 = vector.broadcast %cst_101 : f32 to vector<32x6xf32>
    %358 = tpu.concatenate %334, %337, %340, %343, %344, %347, %350, %353, %356, %357 in 1 : vector<32x2xf32>, vector<32x2xf32>, vector<32x2xf32>, vector<32x2xf32>, vector<32x2xf32>, vector<32x2xf32>, vector<32x2xf32>, vector<32x2xf32>, vector<32x2xf32>, vector<32x6xf32> -> vector<32x24xf32>
    %c0_102 = arith.constant 0 : index
    %c0_103 = arith.constant 0 : index
    %359 = vector.load %arg8[%c0_102, %c0_103] : memref<24x64xf32, #tpu.memory_space<vmem>>, vector<24x64xf32>
    %cst_104 = arith.constant dense<0.000000e+00> : vector<32x64xf32>
    %360 = tpu.matmul %358, %359, %cst_104 {dimension_numbers = #tpu.dot_dimension_numbers<[1], [0], [0], [1], [0, 0, 1, 1], [], []>} : vector<32x24xf32>, vector<24x64xf32>, vector<32x64xf32> -> vector<32x64xf32>
    %c0_105 = arith.constant 0 : index
    %c0_106 = arith.constant 0 : index
    %361 = vector.load %arg9[%c0_105, %c0_106] : memref<2x16xf32, #tpu.memory_space<vmem>>, vector<2x16xf32>
    %362 = arith.mulf %360, %360 : vector<32x64xf32>
    %363 = tpu.concatenate %360, %362 in 1 : vector<32x64xf32>, vector<32x64xf32> -> vector<32x128xf32>
    %cst_107 = arith.constant dense<0.000000e+00> : vector<128xf32>
    %364 = vector.multi_reduction <add>, %363, %cst_107 [0] : vector<32x128xf32> to vector<128xf32>
    %365 = vector.shape_cast %364 : vector<128xf32> to vector<1x128xf32>
    %cst_108 = arith.constant 3.200000e+01 : f32
    %366 = vector.broadcast %cst_108 : f32 to vector<1x128xf32>
    %367 = arith.divf %365, %366 : vector<1x128xf32>
    %368 = vector.extract_strided_slice %367 {offsets = [0, 0], sizes = [1, 64], strides = [1, 1]} : vector<1x128xf32> to vector<1x64xf32>
    %369 = vector.extract_strided_slice %367 {offsets = [0, 64], sizes = [1, 64], strides = [1, 1]} : vector<1x128xf32> to vector<1x64xf32>
    %370 = vector.extract_strided_slice %368 {offsets = [0, 0], sizes = [1, 16], strides = [1, 1]} : vector<1x64xf32> to vector<1x16xf32>
    %cst_109 = arith.constant 0.000000e+00 : f32
    %371 = vector.broadcast %cst_109 : f32 to vector<1x16xf32>
    %372 = arith.addf %371, %370 : vector<1x16xf32>
    %373 = vector.extract_strided_slice %368 {offsets = [0, 16], sizes = [1, 16], strides = [1, 1]} : vector<1x64xf32> to vector<1x16xf32>
    %374 = arith.addf %372, %373 : vector<1x16xf32>
    %375 = vector.extract_strided_slice %368 {offsets = [0, 32], sizes = [1, 16], strides = [1, 1]} : vector<1x64xf32> to vector<1x16xf32>
    %376 = arith.addf %374, %375 : vector<1x16xf32>
    %377 = vector.extract_strided_slice %368 {offsets = [0, 48], sizes = [1, 16], strides = [1, 1]} : vector<1x64xf32> to vector<1x16xf32>
    %378 = arith.addf %376, %377 : vector<1x16xf32>
    %cst_110 = arith.constant 4.000000e+00 : f32
    %379 = vector.broadcast %cst_110 : f32 to vector<1x16xf32>
    %380 = arith.divf %378, %379 : vector<1x16xf32>
    %381 = vector.extract_strided_slice %369 {offsets = [0, 0], sizes = [1, 16], strides = [1, 1]} : vector<1x64xf32> to vector<1x16xf32>
    %cst_111 = arith.constant 0.000000e+00 : f32
    %382 = vector.broadcast %cst_111 : f32 to vector<1x16xf32>
    %383 = arith.addf %382, %381 : vector<1x16xf32>
    %384 = vector.extract_strided_slice %369 {offsets = [0, 16], sizes = [1, 16], strides = [1, 1]} : vector<1x64xf32> to vector<1x16xf32>
    %385 = arith.addf %383, %384 : vector<1x16xf32>
    %386 = vector.extract_strided_slice %369 {offsets = [0, 32], sizes = [1, 16], strides = [1, 1]} : vector<1x64xf32> to vector<1x16xf32>
    %387 = arith.addf %385, %386 : vector<1x16xf32>
    %388 = vector.extract_strided_slice %369 {offsets = [0, 48], sizes = [1, 16], strides = [1, 1]} : vector<1x64xf32> to vector<1x16xf32>
    %389 = arith.addf %387, %388 : vector<1x16xf32>
    %cst_112 = arith.constant 4.000000e+00 : f32
    %390 = vector.broadcast %cst_112 : f32 to vector<1x16xf32>
    %391 = arith.divf %389, %390 : vector<1x16xf32>
    %392 = arith.mulf %380, %380 : vector<1x16xf32>
    %393 = arith.subf %391, %392 : vector<1x16xf32>
    %cst_113 = arith.constant 9.99999974E-6 : f32
    %394 = vector.broadcast %cst_113 : f32 to vector<1x16xf32>
    %395 = arith.addf %393, %394 : vector<1x16xf32>
    %396 = math.rsqrt %395 : vector<1x16xf32>
    %397 = vector.extract_strided_slice %361 {offsets = [0, 0], sizes = [1, 16], strides = [1, 1]} : vector<2x16xf32> to vector<1x16xf32>
    %398 = arith.mulf %397, %396 : vector<1x16xf32>
    %399 = vector.extract_strided_slice %361 {offsets = [1, 0], sizes = [1, 16], strides = [1, 1]} : vector<2x16xf32> to vector<1x16xf32>
    %400 = arith.mulf %380, %398 : vector<1x16xf32>
    %401 = arith.subf %399, %400 : vector<1x16xf32>
    %402 = tpu.concatenate %398, %398, %398, %398 in 1 : vector<1x16xf32>, vector<1x16xf32>, vector<1x16xf32>, vector<1x16xf32> -> vector<1x64xf32>
    %403 = tpu.concatenate %401, %401, %401, %401 in 1 : vector<1x16xf32>, vector<1x16xf32>, vector<1x16xf32>, vector<1x16xf32> -> vector<1x64xf32>
    %404 = vector.broadcast %402 : vector<1x64xf32> to vector<32x64xf32>
    %405 = arith.mulf %360, %404 : vector<32x64xf32>
    %406 = vector.broadcast %403 : vector<1x64xf32> to vector<32x64xf32>
    %407 = arith.addf %405, %406 : vector<32x64xf32>
    %cst_114 = arith.constant 0.000000e+00 : f32
    %408 = vector.broadcast %cst_114 : f32 to vector<32x64xf32>
    %409 = arith.maximumf %407, %408 : vector<32x64xf32>
    %cst_115 = arith.constant 0.000000e+00 : f32
    %410 = vector.broadcast %cst_115 : f32 to vector<8x64xf32>
    %411 = tpu.concatenate %410, %409, %410 in 0 : vector<8x64xf32>, vector<32x64xf32>, vector<8x64xf32> -> vector<48x64xf32>
    %412 = vector.extract_strided_slice %411 {offsets = [3, 48], sizes = [32, 16], strides = [1, 1]} : vector<48x64xf32> to vector<32x16xf32>
    %cst_116 = arith.constant 0.000000e+00 : f32
    %413 = vector.broadcast %cst_116 : f32 to vector<32x16xf32>
    %414 = arith.select %27, %412, %413 : vector<32x16xi1>, vector<32x16xf32>
    %415 = vector.extract_strided_slice %411 {offsets = [4, 32], sizes = [32, 16], strides = [1, 1]} : vector<48x64xf32> to vector<32x16xf32>
    %cst_117 = arith.constant 0.000000e+00 : f32
    %416 = vector.broadcast %cst_117 : f32 to vector<32x16xf32>
    %417 = arith.select %41, %415, %416 : vector<32x16xi1>, vector<32x16xf32>
    %418 = vector.extract_strided_slice %411 {offsets = [4, 48], sizes = [32, 16], strides = [1, 1]} : vector<48x64xf32> to vector<32x16xf32>
    %cst_118 = arith.constant 0.000000e+00 : f32
    %419 = vector.broadcast %cst_118 : f32 to vector<32x16xf32>
    %420 = arith.select %41, %418, %419 : vector<32x16xi1>, vector<32x16xf32>
    %421 = vector.extract_strided_slice %411 {offsets = [5, 32], sizes = [32, 16], strides = [1, 1]} : vector<48x64xf32> to vector<32x16xf32>
    %cst_119 = arith.constant 0.000000e+00 : f32
    %422 = vector.broadcast %cst_119 : f32 to vector<32x16xf32>
    %423 = arith.select %55, %421, %422 : vector<32x16xi1>, vector<32x16xf32>
    %424 = vector.extract_strided_slice %411 {offsets = [7, 16], sizes = [32, 16], strides = [1, 1]} : vector<48x64xf32> to vector<32x16xf32>
    %cst_120 = arith.constant 0.000000e+00 : f32
    %425 = vector.broadcast %cst_120 : f32 to vector<32x16xf32>
    %426 = arith.select %78, %424, %425 : vector<32x16xi1>, vector<32x16xf32>
    %427 = vector.extract_strided_slice %411 {offsets = [8, 0], sizes = [32, 16], strides = [1, 1]} : vector<48x64xf32> to vector<32x16xf32>
    %428 = vector.extract_strided_slice %411 {offsets = [8, 16], sizes = [32, 16], strides = [1, 1]} : vector<48x64xf32> to vector<32x16xf32>
    %429 = vector.extract_strided_slice %411 {offsets = [9, 0], sizes = [32, 16], strides = [1, 1]} : vector<48x64xf32> to vector<32x16xf32>
    %cst_121 = arith.constant 0.000000e+00 : f32
    %430 = vector.broadcast %cst_121 : f32 to vector<32x16xf32>
    %431 = arith.select %92, %429, %430 : vector<32x16xi1>, vector<32x16xf32>
    %432 = vector.extract_strided_slice %411 {offsets = [7, 48], sizes = [32, 16], strides = [1, 1]} : vector<48x64xf32> to vector<32x16xf32>
    %cst_122 = arith.constant 0.000000e+00 : f32
    %433 = vector.broadcast %cst_122 : f32 to vector<32x16xf32>
    %434 = arith.select %78, %432, %433 : vector<32x16xi1>, vector<32x16xf32>
    %435 = vector.extract_strided_slice %411 {offsets = [8, 32], sizes = [32, 16], strides = [1, 1]} : vector<48x64xf32> to vector<32x16xf32>
    %436 = vector.extract_strided_slice %411 {offsets = [8, 48], sizes = [32, 16], strides = [1, 1]} : vector<48x64xf32> to vector<32x16xf32>
    %437 = vector.extract_strided_slice %411 {offsets = [9, 32], sizes = [32, 16], strides = [1, 1]} : vector<48x64xf32> to vector<32x16xf32>
    %cst_123 = arith.constant 0.000000e+00 : f32
    %438 = vector.broadcast %cst_123 : f32 to vector<32x16xf32>
    %439 = arith.select %92, %437, %438 : vector<32x16xi1>, vector<32x16xf32>
    %440 = vector.extract_strided_slice %411 {offsets = [11, 16], sizes = [32, 16], strides = [1, 1]} : vector<48x64xf32> to vector<32x16xf32>
    %cst_124 = arith.constant 0.000000e+00 : f32
    %441 = vector.broadcast %cst_124 : f32 to vector<32x16xf32>
    %442 = arith.select %115, %440, %441 : vector<32x16xi1>, vector<32x16xf32>
    %443 = vector.extract_strided_slice %411 {offsets = [12, 0], sizes = [32, 16], strides = [1, 1]} : vector<48x64xf32> to vector<32x16xf32>
    %cst_125 = arith.constant 0.000000e+00 : f32
    %444 = vector.broadcast %cst_125 : f32 to vector<32x16xf32>
    %445 = arith.select %129, %443, %444 : vector<32x16xi1>, vector<32x16xf32>
    %446 = vector.extract_strided_slice %411 {offsets = [12, 16], sizes = [32, 16], strides = [1, 1]} : vector<48x64xf32> to vector<32x16xf32>
    %cst_126 = arith.constant 0.000000e+00 : f32
    %447 = vector.broadcast %cst_126 : f32 to vector<32x16xf32>
    %448 = arith.select %129, %446, %447 : vector<32x16xi1>, vector<32x16xf32>
    %449 = vector.extract_strided_slice %411 {offsets = [13, 0], sizes = [32, 16], strides = [1, 1]} : vector<48x64xf32> to vector<32x16xf32>
    %cst_127 = arith.constant 0.000000e+00 : f32
    %450 = vector.broadcast %cst_127 : f32 to vector<32x16xf32>
    %451 = arith.select %143, %449, %450 : vector<32x16xi1>, vector<32x16xf32>
    %452 = tpu.concatenate %414, %417, %420, %423, %426, %427, %428, %431, %434, %435, %436, %439, %442, %445, %448, %451 in 1 : vector<32x16xf32>, vector<32x16xf32>, vector<32x16xf32>, vector<32x16xf32>, vector<32x16xf32>, vector<32x16xf32>, vector<32x16xf32>, vector<32x16xf32>, vector<32x16xf32>, vector<32x16xf32>, vector<32x16xf32>, vector<32x16xf32>, vector<32x16xf32>, vector<32x16xf32>, vector<32x16xf32>, vector<32x16xf32> -> vector<32x256xf32>
    %c0_128 = arith.constant 0 : index
    %c0_129 = arith.constant 0 : index
    %453 = vector.load %arg10[%c0_128, %c0_129] : memref<256x16xf32, #tpu.memory_space<vmem>>, vector<256x16xf32>
    %cst_130 = arith.constant dense<0.000000e+00> : vector<32x16xf32>
    %454 = tpu.matmul %452, %453, %cst_130 {dimension_numbers = #tpu.dot_dimension_numbers<[1], [0], [0], [1], [0, 0, 1, 1], [], []>} : vector<32x256xf32>, vector<256x16xf32>, vector<32x16xf32> -> vector<32x16xf32>
    %c0_131 = arith.constant 0 : index
    %c0_132 = arith.constant 0 : index
    %455 = memref.load %arg11[%c0_131, %c0_132] : memref<1x1xf32, #tpu.memory_space<smem>>
    %456 = vector.broadcast %455 : f32 to vector<32x16xf32>
    %457 = arith.addf %454, %456 : vector<32x16xf32>
    %458 = math.tanh %457 : vector<32x16xf32>
    %c0_133 = arith.constant 0 : index
    %c0_134 = arith.constant 0 : index
    %459 = vector.load %arg12[%c0_133, %c0_134] : memref<32x16xf32, #tpu.memory_space<vmem>>, vector<32x16xf32>
    tpu.vector_store %arg12[%c0_133, %c0_134], %458 {strides = array<i32>} : memref<32x16xf32, #tpu.memory_space<vmem>>, vector<32x16xf32>,
    return
  }
}

</mosaic_0001>

<bundles_post_ra>
// kernel: vqvae_forward.1
= control target key start
LH: loop header
LB: loop body
LE: loop exit
PB: predicated region body
PF: predicated region fallthrough
CT: control target
= control target key end

     0   :  { %vm5044_vm0 = vcmask 523264   ;;  %s5030_s0 = inlined_call_operand.vmem [shape: f32[32,64], index: 0, kind: input, shape index: {}]   ;;  %s5031_s1 = inlined_call_operand.vmem [shape: f32[64,64], index: 1, kind: input, shape index: {}]   ;;  %s5032_s2 = inlined_call_operand.vmem [shape: f32[2,16], index: 2, kind: input, shape index: {}]   ;;  %s5033_s3 = inlined_call_operand.vmem [shape: f32[256,4], index: 3, kind: input, shape index: {}]   ;;  %s5034_s4 = inlined_call_operand.vmem [shape: f32[2,4], index: 4, kind: input, shape index: {}]   ;;  %s5035_s5 = inlined_call_operand.vmem [shape: f32[2,4], index: 5, kind: input, shape index: {}]   ;;  %s5036_s6 = inlined_call_operand.vmem [shape: f32[1,2], index: 6, kind: input, shape index: {}]   ;;  %s5037_s7 = inlined_call_operand.vmem [shape: f32[3,2], index: 7, kind: input, shape index: {}]   ;;  %s5038_s8 = inlined_call_operand.vmem [shape: f32[24,64], index: 8, kind: input, shape index: {}]   ;;  %s5039_s9 = inlined_call_operand.vmem [shape: f32[2,16], index: 9, kind: input, shape index: {}]   ;;  %s5040_s10 = inlined_call_operand.vmem [shape: f32[256,16], index: 10, kind: input, shape index: {}]   ;;  %s5041_s11 = inlined_call_operand.<no memory space> [shape: f32[1,1], index: 11, kind: input, shape index: {}]   ;;  %s5042_s12 = inlined_call_operand.vmem [shape: f32[32,16], index: 12, kind: output, shape index: {0}]   ;;  %s5043_s13 = inlined_call_operand.hbm [shape: f32[1,1], index: 13, kind: output, shape index: {1}]  }
   0x1   :  { %v270_v0 = vld [vmem:[%s5031_s1] sm:$0xff]  ;;  %v271_v1 = vld [vmem:[%s5031_s1 + $0x8] sm:$0xff]  ;;  %v272_v2 = vld [vmem:[%s5031_s1 + $0x10] sm:$0xff] }
   0x2   :  { %v2592_v3 = vpack.c.bf16 %v271_v1, %v270_v0  ;;  %v273_v4 = vld [vmem:[%s5031_s1 + $0x18] sm:$0xff]  ;;  %v274_v6 = vld [vmem:[%s5031_s1 + $0x20] sm:$0xff]  ;;  %v275_v7 = vld [vmem:[%s5031_s1 + $0x28] sm:$0xff] }
   0x3   :  { %v2596_v5 = vpack.c.bf16 %v273_v4, %v272_v2  ;;  %v266_v8 = vld [vmem:[%s5030_s0] sm:$0xff] }
   0x4   :  { %2593 = vmatprep.subr.bf16.mxu1 %v2592_v3  ;;  %2574 = vmatprep.mubr.msk.f32.mxu1 %vm5044_vm0, %v266_v8 }
   0x5   :  { %2595 = vmatpush3.bf16.msra.mxu1 %v2592_v3 }
   0x6   :  { %20 = vsyncpa [#allocation4], 0  ;;  %2597 = vmatprep.subr.bf16.mxu1 %v2596_v5  ;;  %v2600_v9 = vpack.c.bf16 %v275_v7, %v274_v6  ;;  %v276_v10 = vld [vmem:[%s5031_s1 + $0x30] sm:$0xff]  ;;  %v277_v11 = vld [vmem:[%s5031_s1 + $0x38] sm:$0xff]  ;;  %s3131_s14 = smov 64   ;;  %s3133_s15 = smov 112   ;;  %v45_v60 = vlaneseq }
   0x7   :  { %v2604_v12 = vpack.c.bf16 %v277_v11, %v276_v10  ;;  %v267_v13 = vld [vmem:[%s5030_s0 + $0x8] sm:$0xff]  ;;  %v268_v14 = vld [vmem:[%s5030_s0 + $0x10] sm:$0xff]  ;;  %v269_v15 = vld [vmem:[%s5030_s0 + $0x18] sm:$0xff]  ;;  %s3132_s0 = smov 96   ;;  %s3134_s16 = smov 80   ;;  %vm5047_vm1 = vcmask 130048  }
   0x8   :  { %v376_v54 = vld [vmem:[%s5032_s2] sm:$0x3]  ;;  %s3135_s19 = smov 32   ;;  %s3136_s20 = smov 16   ;;  %v3300_v61 = vshrl.u32 %v45_v60, 7  ;;  %vm5046_vm2 = vcmask 261120  }
   0x9   :  { %2599 = vmatpush3.bf16.msra.mxu1 %v2596_v5  ;;  %s3137_s21 = smov 48   ;;  %vm5045_vm3 = vcmask 392192   ;;  %vm5050_vm4 = vcmask 1043456   ;;  %vm5060_vm5 = vcmask 1046528   ;;  %vm5065_vm6 = vcmask 1042432   ;;  %s3140_s18 = smov 124  }
   0xa   :  { %2601 = vmatprep.subr.bf16.mxu1 %v2600_v9  ;;  %v3303_v62 = vadd.s32 8, %v3300_v61  ;;  %v3306_v63 = vadd.s32 16, %v3300_v61  ;;  %v50_v3 = vshra.s32 %v3300_v61, 2  ;;  %v3313_v6 = vadd.s32 24, %v3300_v61  ;;  %s3143_s27 = smov 6   ;;  %s3144_s28 = smov 10  }
   0xb   :  { %v3316_v7 = vsub.s32 0, %v3300_v61  ;;  %vm5054_vm7 = vcmask 1044480   ;;  %vm5073_vm8 = vcmask 1040384  }
   0xc   :  { %v51_v4 = vshra.s32 %v3303_v62, 2  ;;  %v52_v5 = vshra.s32 %v3306_v63, 2  ;;  %v3320_v11 = vand.u32 3, %v50_v3 }
   0xd   :  { %2603 = vmatpush3.bf16.msra.mxu1 %v2600_v9  ;;  %5176 = vst [vmem:[#allocation6_spill] sm:$0xff] %v3316_v7 }
   0xe   :  { %2605 = vmatprep.subr.bf16.mxu1 %v2604_v12  ;;  %vm158_vm9 = vcmp.ge.s32.totalorder %v3320_v11, 0  ;;  %vm162_vm11 = vcmp.lt.s32.totalorder %v3320_v11, 4 }
   0xf   :  { %vm3413_vm15 = vmand %vm158_vm9, %vm162_vm11 }
  0x11   :  { %2607 = vmatpush3.bf16.msra.mxu1 %v2604_v12  ;;  %v5053_v12 = vand.u32 3, %v3300_v61 }
  0x14   :  { %2575 = vmatmul.mubr.msk.f32.vlgmr.msra.gmra.mrb[0].mxu1 %vm5044_vm0, %v267_v13  ;;  %v3323_v13 = vand.u32 3, %v51_v4 }
  0x15   :  { %2577 = vmatprep.mubr.msk.f32.mxu1 %vm5044_vm0, %v268_v14 }
  0x18   :  { %2578 = vmatmul.mubr.msk.f32.gmra.mrb[2].mxu1 %vm5044_vm0, %v269_v15  ;;  %v3325_v15 = vand.u32 3, %v52_v5 }
  0xe7   :  { %v3258_v16 = vpop.f32.mrb[0].mxu1 }
  0xe8   :  { %v3260_v17 = vpop.f32.mrb[1].mxu1  ;;  %v378_v21 = vmul.f32 %v3258_v16, %v3258_v16 }
  0xe9   :  { %v377_v18 = vmul.f32 %v3260_v17, %v3260_v17 }
  0xeb   :  { %385 = vrot.lane.b32.xlu0 %v377_v18, %s3131_s14  ;;  %v3265_v19 = vpop.f32.mrb[2].mxu1  ;;  %v5049_v18 = vand.u32 3, %v3306_v63 }
  0xec   :  { %v3267_v20 = vpop.f32.mrb[3].mxu1  ;;  %v380_v23 = vmul.f32 %v3265_v19, %v3265_v19 }
  0xed   :  { %v379_v22 = vmul.f32 %v3267_v20, %v3267_v20 }
  0xef   :  { %387 = vrot.lane.b32.xlu0 %v378_v21, %s3131_s14  ;;  %389 = vrot.lane.b32.xlu1 %v379_v22, %s3131_s14  ;;  %v53_v21 = vshra.s32 %v3313_v6, 2 }
  0xf3   :  { %391 = vrot.lane.b32.xlu1 %v380_v23, %s3131_s14 }
 0x15d   :  { %v386_v24 = vpop.permute.xlu0 %385 }
 0x15e   :  { %v397_v27 = vsel %vm5044_vm0, %v3260_v17, %v386_v24  ;;  %v3332_v24 = vsub.s32 1, %v3300_v61 }
 0x160   :  { %5177 = vst [vmem:[#allocation7_spill] sm:$0xff] %v3332_v24 }
 0x161   :  { %v388_v25 = vpop.permute.xlu0 %387  ;;  %v390_v26 = vpop.permute.xlu1 %389 }
 0x162   :  { %v398_v28 = vsel %vm5044_vm0, %v3258_v16, %v388_v25  ;;  %v399_v30 = vsel %vm5044_vm0, %v3267_v20, %v390_v26  ;;  %v3138_v25 = vmov 0.0  }
 0x163   :  { %v401_v29 = vadd.f32 %v398_v28, %v397_v27  ;;  %v3334_v26 = vrot.slane %v3138_v25, 4  ;;  %v3336_v28 = vrot.slane %v3138_v25, 5 }
 0x165   :  { %v402_v31 = vadd.f32 %v401_v29, %v399_v30  ;;  %v392_v32 = vpop.permute.xlu1 %391  ;;  %5178 = vst [vmem:[#allocation8_spill] sm:$0xff] %v3334_v26  ;;  %v3338_v29 = vrot.slane %v3138_v25, 7  ;;  %v3340_v30 = vrot.slane %v3138_v25, 3 }
 0x166   :  { %v400_v33 = vsel %vm5044_vm0, %v3265_v19, %v392_v32  ;;  %vm160_vm0 = vcmp.ge.s32.totalorder %v3325_v15, 0 }
 0x167   :  { %v403_v34 = vadd.f32 %v402_v31, %v400_v33  ;;  %5179 = vst [vmem:[#allocation9_spill] sm:$0xff] %v3338_v29  ;;  %v3342_v31 = vrot.slane %v3138_v25, 1  ;;  %v3347_v33 = vadd.s32 1, %v5053_v12 }
 0x169   :  { %v404_v35 = vrot.slane %v403_v34, 4  ;;  %5180 = vst [vmem:[#allocation10_spill] sm:$0xff] %v3342_v31  ;;  %vm5048_vm10 = vcmp.lt.s32.totalorder %v3347_v33, 4 }
 0x16b   :  { %v405_v36 = vadd.f32 %v404_v35, %v403_v34  ;;  %v202_v34 = vadd.s32 1, %v3320_v11  ;;  %v3351_v35 = vadd.s32 1, %v3323_v13 }
 0x16d   :  { %v406_v37 = vrot.slane %v405_v36, 2  ;;  %vm206_vm12 = vcmp.ge.s32.totalorder %v202_v34, 0  ;;  %vm210_vm13 = vcmp.lt.s32.totalorder %v202_v34, 4  ;;  %v5185_v34 = vmov 0 }
 0x16e   :  { %vm5193_vm9 = vcmp.ge.s32.totalorder %v3351_v35, 0 }
 0x16f   :  { %v407_v38 = vadd.f32 %v406_v37, %v405_v36  ;;  %v3355_v37 = vadd.s32 1, %v5049_v18 }
 0x171   :  { %v408_v39 = vrot.slane %v407_v38, 1 }
 0x173   :  { %v409_v40 = vadd.f32 %v408_v39, %v407_v38  ;;  %v3358_v38 = vadd.s32 1, %v3325_v15  ;;  %v5052_v39 = vand.u32 3, %v3303_v62 }
 0x175   :  { %v411_v41 = vmul.f32 0.03125, %v409_v40  ;;  %v3361_v40 = vand.u32 3, %v53_v21  ;;  %vm212_vm14 = vcmp.lt.s32.totalorder %v3358_v38, 4 }
 0x177   :  { %418 = vrot.lane.b32.xlu1 %v411_v41, %s3132_s0  ;;  %414 = vrot.lane.b32.xlu0 %v411_v41, %s3133_s15 }
 0x17b   :  { %422 = vrot.lane.b32.xlu0 %v411_v41, %s3134_s16 }
 0x1e9   :  { %v415_v42 = vpop.permute.xlu0 %414  ;;  %v419_v44 = vpop.permute.xlu1 %418 }
 0x1ea   :  { %v417_v43 = vadd.f32 %v415_v42, %v411_v41 }
 0x1ec   :  { %v421_v45 = vadd.f32 %v419_v44, %v417_v43  ;;  %v5051_v43 = vand.u32 3, %v3313_v6 }
 0x1ed   :  { %v423_v46 = vpop.permute.xlu0 %422 }
 0x1ee   :  { %v425_v47 = vadd.f32 %v423_v46, %v421_v45 }
 0x1f0   :  { %v427_v48 = vmul.f32 0.25, %v425_v47 }
 0x1f2   :  { %v428_v49 = vmul.f32 %v427_v48, %v427_v48 }
 0x1f4   :  { %430 = vrot.lane.b32.xlu1 %v428_v49, %s3131_s14 }
 0x266   :  { %v431_v50 = vpop.permute.xlu1 %430 }
 0x267   :  { %v433_v51 = vsub.f32 %v427_v48, %v431_v50 }
 0x269   :  { %v434_v52 = vadd.f32 1e-05, %v433_v51 }
 0x26b   :  { %3105 = vrsqrt.f32 %v434_v52 }
 0x275   :  { %v3106_v53 = vpop.eup %3105 }
 0x276   :  { %437 = vrot.lane.b32.xlu0 %v3106_v53, %s3131_s14  ;;  %v3396_v53 = vadd.s32 1, %v5051_v43  ;;  %v5260_v43 = vmov 0 }
 0x2e8   :  { %v438_v55 = vpop.permute.xlu0 %437 }
 0x2e9   :  { %v440_v56 = vmul.f32 %v438_v55, %v376_v54 }
 0x2eb   :  { %v441_v57 = vmul.f32 %v440_v56, %v427_v48  ;;  %450 = vrot.lane.b32.xlu0 %v440_v56, %s3135_s19  ;;  %447 = vrot.lane.b32.xlu1 %v440_v56, %s3136_s20 }
 0x2ed   :  { %v443_v58 = vrot.slane %v441_v57, 7 }
 0x2ef   :  { %v445_v59 = vsub.f32 %v376_v54, %v443_v58  ;;  %453 = vrot.lane.b32.xlu1 %v440_v56, %s3137_s21  ;;  %v3399_v54 = vadd.s32 1, %v3361_v40 }
 0x2f1   :  { %463 = vrot.lane.b32.xlu0 %v445_v59, %s3136_s20 }
 0x2f3   :  { %466 = vrot.lane.b32.xlu1 %v445_v59, %s3135_s19 }
 0x2f5   :  { %469 = vrot.lane.b32.xlu0 %v445_v59, %s3137_s21 }
 0x35d   :  { %v448_v0 = vpop.permute.xlu1 %447  ;;  %v451_v1 = vpop.permute.xlu0 %450 }
 0x35e   :  { %v457_v2 = vsel %vm5047_vm1, %v440_v56, %v448_v0 }
 0x35f   :  { %v459_v8 = vsel %vm5046_vm2, %v457_v2, %v451_v1  ;;  %v5181_v2 = vmov 0 }
 0x360   :  { %v5182_v2 = vsel %vm3413_vm15, 4294967295, %v5181_v2 }
 0x361   :  { %v454_v9 = vpop.permute.xlu1 %453 }
 0x362   :  { %v461_v10 = vsel %vm5045_vm3, %v459_v8, %v454_v9  ;;  %v5183_v9 = vmov 0 }
 0x363   :  { %v464_v14 = vpop.permute.xlu0 %463  ;;  %v478_v22 = vrot.slane %v461_v10, %v3316_v7 }
 0x364   :  { %v472_v23 = vsel %vm5047_vm1, %v445_v59, %v464_v14  ;;  %vm3429_vm1 = vmand %vm206_vm12, %vm210_vm13 }
 0x365   :  { %v467_v27 = vpop.permute.xlu1 %466  ;;  %v479_v41 = vmul.f32 %v478_v22, %v3260_v17  ;;  %v480_v44 = vmul.f32 %v3258_v16, %v478_v22  ;;  %v481_v45 = vmul.f32 %v478_v22, %v3267_v20  ;;  %v482_v46 = vmul.f32 %v3265_v19, %v478_v22  ;;  %vm3457_vm12 = vmand %vm3413_vm15, %vm5048_vm10 }
 0x366   :  { %v473_v32 = vsel %vm5046_vm2, %v472_v23, %v467_v27  ;;  %v3380_v16 = vadd.s32 1, %v5052_v39  ;;  %v5184_v9 = vsel %vm3429_vm1, 4294967295, %v5183_v9  ;;  %v5186_v34 = vsel %vm3457_vm12, 4294967295, %v5185_v34  ;;  %vm3473_vm13 = vmand %vm3429_vm1, %vm5048_vm10 }
 0x367   :  { %v470_v36 = vpop.permute.xlu0 %469  ;;  %vm5192_vm10 = vcmp.lt.s32.totalorder %v3351_v35, 4  ;;  %v5197_v35 = vmov 0 }
 0x368   :  { %v474_v42 = vsel %vm5045_vm3, %v473_v32, %v470_v36  ;;  %vm164_vm3 = vcmp.lt.s32.totalorder %v3325_v15, 4  ;;  %vm3502_vm2 = vmand %vm5193_vm9, %vm5192_vm10  ;;  %vm5199_vm10 = vcmp.lt.s32.totalorder %v3355_v37, 4  ;;  %vm5202_vm9 = vcmp.lt.s32.totalorder %v3323_v13, 4 }
 0x369   :  { %v486_v47 = vrot.slane %v474_v42, %v3332_v24  ;;  %vm3486_vm11 = vmand %vm160_vm0, %vm164_vm3  ;;  %vm5196_vm0 = vcmp.ge.s32.totalorder %v3358_v38, 0  ;;  %v5200_v38 = vmov 0 }
 0x36a   :  { %vm3518_vm3 = vmand %vm5196_vm0, %vm212_vm14  ;;  %vm5203_vm0 = vcmp.ge.s32.totalorder %v3323_v13, 0 }
 0x36b   :  { %v487_v17 = vadd.f32 %v486_v47, %v479_v41  ;;  %v488_v48 = vadd.f32 %v486_v47, %v480_v44  ;;  %v489_v49 = vadd.f32 %v486_v47, %v481_v45  ;;  %v490_v50 = vadd.f32 %v486_v47, %v482_v46  ;;  %vm3534_vm14 = vmand %vm3486_vm11, %vm5199_vm10 }
 0x36c   :  { %v5187_v45 = vmov 0  ;;  %v5198_v35 = vsel %vm3518_vm3, 4294967295, %v5197_v35  ;;  %v5201_v38 = vsel %vm3534_vm14, 4294967295, %v5200_v38 }
 0x36d   :  { %v3382_v19 = vmax.f32 %v487_v17, 0.0  ;;  %v3384_v20 = vmax.f32 %v488_v48, 0.0  ;;  %v3386_v51 = vmax.f32 %v489_v49, 0.0  ;;  %v3390_v52 = vmax.f32 %v490_v50, 0.0 }
 0x36e   :  { %v5188_v45 = vsel %vm3473_vm13, 4294967295, %v5187_v45  ;;  %v5189_v49 = vmov 0 }
 0x36f   :  { %v528_v55 = vrot.slane %v3382_v19, 4  ;;  %v530_v56 = vrot.slane %v3384_v20, 4  ;;  %v621_v57 = vrot.slane %v3382_v19, 1  ;;  %v622_v58 = vrot.slane %v3384_v20, 1 }
 0x370   :  { %v570_v59 = vrot.slane %v3382_v19, 5  ;;  %v5055_v60 = vrot.slane %v3382_v19, 3  ;;  %v504_v0 = vrot.slane %v3384_v20, 3  ;;  %v596_v1 = vrot.slane %v3382_v19, 7 }
 0x371   :  { %v529_v3 = vsel %vm5050_vm4, %v3334_v26, %v528_v55  ;;  %v3421_v4 = vsel %vm5050_vm4, %v528_v55, %v530_v56  ;;  %v3424_v5 = vsel %vm5060_vm5, %v621_v57, %v622_v58  ;;  %v506_v8 = vrot.slane %v3386_v51, 3 }
 0x372   :  { %v2700_v10 = vpack.i.bf16 %v3421_v4, %v529_v3  ;;  %v2695_v14 = vpack.i.bf16 %v3424_v5, %v529_v3  ;;  %v571_v21 = vsel %vm5065_vm6, %v3336_v28, %v570_v59  ;;  %v3440_v22 = vsel %vm5054_vm7, %v5055_v60, %v504_v0 }
 0x373   :  { %v2705_v23 = vpack.i.bf16 %v3421_v4, %v571_v21  ;;  %v3447_v25 = vsel %vm5073_vm8, %v3338_v29, %v596_v1  ;;  %v3450_v27 = vsel %vm5054_vm7, %v504_v0, %v506_v8  ;;  %v572_v32 = vrot.slane %v3384_v20, 5 }
 0x374   :  { %2701 = vrot.lane.b32.xlu0 %v2700_v10, %s3134_s16  ;;  %2696 = vrot.lane.b32.xlu1 %v2695_v14, %s3132_s0  ;;  %v2710_v36 = vpack.i.bf16 %v3447_v25, %v3440_v22  ;;  %v2715_v41 = vpack.i.bf16 %v3450_v27, %v3421_v4  ;;  %v624_v42 = vrot.slane %v3386_v51, 1  ;;  %v532_v44 = vrot.slane %v3386_v51, 4 }
 0x375   :  { %v573_v46 = vsel %vm5065_vm6, %v570_v59, %v572_v32  ;;  %v598_v47 = vrot.slane %v3384_v20, 7  ;;  %v626_v17 = vrot.slane %v3390_v52, 1  ;;  %v534_v48 = vrot.slane %v3390_v52, 4 }
 0x376   :  { %v5190_v49 = vsel %vm3486_vm11, 4294967295, %v5189_v49  ;;  %v3491_v50 = vsel %vm5060_vm5, %v622_v58, %v624_v42  ;;  %v3494_v55 = vsel %vm5050_vm4, %v530_v56, %v532_v44  ;;  %v574_v57 = vrot.slane %v3386_v51, 5 }
 0x377   :  { %5191 = vst [vmem:[#allocation11_spill] sm:$0xff] %v5190_v49  ;;  %v508_v59 = vrot.slane %v3390_v52, 3  ;;  %v5194_v0 = vmov 0  ;;  %v2720_v3 = vpack.i.bf16 %v573_v46, %v3491_v50  ;;  %v3508_v58 = vsel %vm5073_vm8, %v596_v1, %v598_v47 }
 0x378   :  { %v5195_v0 = vsel %vm3502_vm2, 4294967295, %v5194_v0  ;;  %v627_v56 = vsel %vm5060_vm5, %v624_v42, %v626_v17  ;;  %v3512_v10 = vsel %vm5050_vm4, %v532_v44, %v534_v48  ;;  %2706 = vrot.lane.b32.xlu1 %v2705_v23, %s3132_s0  ;;  %2711 = vrot.lane.b32.xlu0 %v2710_v36, %s3133_s15  ;;  %v2725_v1 = vpack.i.bf16 %v3494_v55, %v3508_v58  ;;  %vm3549_vm4 = vmand %vm5203_vm0, %vm5202_vm9 }
 0x379   :  { %v2730_v14 = vpack.i.bf16 %v627_v56, %v3494_v55  ;;  %v2735_v21 = vpack.i.bf16 %v3512_v10, %v3494_v55  ;;  %v600_v42 = vrot.slane %v3386_v51, 7  ;;  %v575_v23 = vsel %vm5065_vm6, %v572_v32, %v574_v57 }
 0x37a   :  { %v3540_v36 = vsel %vm5054_vm7, %v506_v8, %v508_v59  ;;  %v670_v44 = vsel %vm5054_vm7, %v508_v59, %v3340_v30  ;;  %v576_v18 = vrot.slane %v3390_v52, 5  ;;  %v2740_v39 = vpack.i.bf16 %v3512_v10, %v575_v23  ;;  %vm3562_vm7 = vmand %vm3518_vm3, %vm5199_vm10 }
 0x37b   :  { %v601_v32 = vsel %vm5073_vm8, %v598_v47, %v600_v42  ;;  %v2750_v8 = vpack.i.bf16 %v670_v44, %v3512_v10  ;;  %v629_v12 = vsel %vm5060_vm5, %v626_v17, %v3342_v31  ;;  %v5206_v59 = vmov 0 }
 0x37c   :  { %v5207_v59 = vsel %vm3562_vm7, 4294967295, %v5206_v59  ;;  %v2745_v60 = vpack.i.bf16 %v601_v32, %v3540_v36  ;;  %v577_v29 = vsel %vm5065_vm6, %v574_v57, %v576_v18  ;;  %v602_v24 = vrot.slane %v3390_v52, 7  ;;  %2716 = vrot.lane.b32.xlu1 %v2715_v41, %s3133_s15  ;;  %2721 = vrot.lane.b32.xlu0 %v2720_v3, %s3132_s0 }
 0x37d   :  { %5208 = vst [vmem:[#allocation12_spill] sm:$0xff] %v5207_v59  ;;  %vm5209_vm9 = vcmask 1043456   ;;  %vm5210_vm0 = vcmp.lt.s32.totalorder %v3380_v16, 4  ;;  %v5211_v17 = vmov 0  ;;  %v2755_v44 = vpack.i.bf16 %v577_v29, %v629_v12 }
 0x37e   :  { %v687_v47 = vsel %vm5209_vm9, %v534_v48, %v3334_v26  ;;  %vm3575_vm5 = vmand %vm3502_vm2, %vm5210_vm0  ;;  %v2765_v57 = vpack.i.bf16 %v3384_v20, %v3382_v19  ;;  %v634_v48 = vsel %vm3457_vm12, %v3424_v5, 0.0  ;;  %v5214_v31 = vmov 0 }
 0x37f   :  { %v5212_v17 = vsel %vm3575_vm5, 4294967295, %v5211_v17  ;;  %vm5213_vm10 = vmmov %vm5210_vm0  ;;  %vm213_vm0 = vcmp.lt.s32.totalorder %v3399_v54, 4  ;;  %v603_v41 = vsel %vm5073_vm8, %v600_v42, %v602_v24  ;;  %v2775_v3 = vpack.i.bf16 %v3440_v22, %v3508_v58 }
 0x380   :  { %vm3590_vm9 = vmand %vm3549_vm4, %vm5213_vm10  ;;  %v2780_v26 = vpack.i.bf16 %v3450_v27, %v601_v32  ;;  %vm5074_vm6 = vcmp.lt.s32.totalorder %v3396_v53, 4  ;;  %vm5216_vm11 = vcmp.lt.s32.totalorder %v3361_v40, 4  ;;  %vm5217_vm12 = vcmp.ge.s32.totalorder %v3361_v40, 0  ;;  %2726 = vrot.lane.b32.xlu1 %v2725_v1, %s3133_s15  ;;  %2731 = vrot.lane.b32.xlu0 %v2730_v14, %s3132_s0 }
 0x381   :  { %v5215_v31 = vsel %vm3590_vm9, 4294967295, %v5214_v31  ;;  %vm3604_vm15 = vmand %vm5217_vm12, %vm5216_vm11  ;;  %v2760_v7 = vpack.i.bf16 %v687_v47, %v603_v41  ;;  %v2785_v49 = vpack.i.bf16 %v3540_v36, %v603_v41  ;;  %v717_v24 = vsel %vm3473_vm13, %v573_v46, 0.0 }
 0x382   :  { %v692_v22 = vsel %vm3429_vm1, %v3421_v4, 0.0  ;;  %v2795_v27 = vpack.i.bf16 %v634_v48, %v717_v24  ;;  %v693_v42 = vsel %vm3502_vm2, %v3494_v55, 0.0  ;;  %v636_v32 = vsel %vm3534_vm14, %v627_v56, 0.0  ;;  %vm3640_vm10 = vmand %vm3604_vm15, %vm5074_vm6 }
 0x383   :  { %v2790_v58 = vpack.i.bf16 %v3382_v19, %v692_v22  ;;  %vm5220_vm11 = vcmp.ge.s32.totalorder %v3399_v54, 0  ;;  %v5221_v36 = vmov 0  ;;  %v2805_v4 = vpack.i.bf16 %v3384_v20, %v693_v42  ;;  %v968_v42 = vld [vmem:[%s5033_s3 + $0x20] sm:$0xff] }
 0x384   :  { %vm3622_vm12 = vmand %vm5220_vm11, %vm213_vm0  ;;  %v719_v46 = vsel %vm3562_vm7, %v577_v29, 0.0  ;;  %v718_v55 = vsel %vm3575_vm5, %v575_v23, 0.0  ;;  %v635_v54 = vsel %vm3590_vm9, %v3491_v50, 0.0  ;;  %v5224_v56 = vmov 0  ;;  %2736 = vrot.lane.b32.xlu1 %v2735_v21, %s3134_s16  ;;  %2741 = vrot.lane.b32.xlu0 %v2740_v39, %s3132_s0  ;;  %v983_v21 = vld [vmem:[%s5033_s3 + $0x98] sm:$0xff] }
 0x385   :  { %v5222_v36 = vsel %vm3622_vm12, 4294967295, %v5221_v36  ;;  %v5225_v56 = vsel %vm3640_vm10, 4294967295, %v5224_v56  ;;  %v2820_v1 = vpack.i.bf16 %v636_v32, %v719_v46  ;;  %v2800_v20 = vpack.i.bf16 %v718_v55, %v3386_v51  ;;  %vm3654_vm0 = vmand %vm3622_vm12, %vm5074_vm6  ;;  %v969_v32 = vld [vmem:[%s5033_s3 + $0x28] sm:$0xff] }
 0x386   :  { %5223 = vst [vmem:[#allocation13_spill] sm:$0xff] %v5222_v36  ;;  %v2810_v29 = vpack.i.bf16 %v3390_v52, %v635_v54  ;;  %v694_v14 = vsel %vm3518_vm3, %v3512_v10, 0.0  ;;  %v5226_v50 = vmov 0  ;;  %v695_v48 = vsel %vm3622_vm12, %v687_v47, 0.0  ;;  %v967_v47 = vld [vmem:[%s5033_s3 + $0x18] sm:$0xff]  ;;  %v986_v54 = vld [vmem:[%s5033_s3 + $0xb0] sm:$0xff] }
 0x387   :  { %v2815_v23 = vpack.i.bf16 %v3386_v51, %v694_v14  ;;  %v5227_v50 = vsel %vm3654_vm0, 4294967295, %v5226_v50  ;;  %v637_v41 = vsel %vm3640_vm10, %v629_v12, 0.0  ;;  %vm5229_vm11 = vcmask 1042432   ;;  %v971_v14 = vld [vmem:[%s5033_s3 + $0x38] sm:$0xff] }
 0x388   :  { %5228 = vst [vmem:[#allocation14_spill] sm:$0xff] %v5227_v50  ;;  %v712_v24 = vsel %vm5229_vm11, %v576_v18, %v3336_v28  ;;  %v3667_v51 = vpack.i.bf16 %v3390_v52, %v695_v48  ;;  %2746 = vrot.lane.b32.xlu1 %v2745_v60, %s3133_s15  ;;  %2751 = vrot.lane.b32.xlu0 %v2750_v8, %s3133_s15  ;;  %v5230_v12 = vrot.slane %v3382_v19, 3  ;;  %vm5231_vm11 = vcmask 1044480   ;;  %v980_v19 = vld [vmem:[%s5033_s3 + $0x80] sm:$0xff]  ;;  %v966_v8 = vld [vmem:[%s5033_s3 + $0x10] sm:$0xff] }
 0x389   :  { %v720_v10 = vsel %vm3654_vm0, %v712_v24, 0.0  ;;  %v964_v52 = vld [vmem:[%s5033_s3] sm:$0xff]  ;;  %v62_v46 = vadd.s32 4294967295, %v3320_v11  ;;  %v63_v55 = vadd.s32 4294967295, %v3323_v13  ;;  %v5232_v13 = vmov 0  ;;  %v989_v48 = vld [vmem:[%s5033_s3 + $0xc8] sm:$0xff] }
 0x38a   :  { %v3671_v22 = vpack.i.bf16 %v637_v41, %v720_v10  ;;  %v503_v18 = vsel %vm5231_vm11, %v3340_v30, %v5230_v12  ;;  %v972_v41 = vld [vmem:[%s5033_s3 + $0x40] sm:$0xff]  ;;  %v5234_v12 = vmov 0  ;;  %v5280_v5 = vmov 0 }
 0x38b   :  { %v2770_v39 = vpack.i.bf16 %v503_v18, %v3447_v25  ;;  %v982_v25 = vld [vmem:[%s5033_s3 + $0x90] sm:$0xff]  ;;  %vm66_vm11 = vcmp.ge.s32.totalorder %v62_v46, 0  ;;  %vm70_vm8 = vcmp.lt.s32.totalorder %v62_v46, 4  ;;  %vm67_vm6 = vcmp.ge.s32.totalorder %v63_v55, 0 }
 0x38c   :  { %2756 = vrot.lane.b32.xlu1 %v2755_v44, %s3132_s0  ;;  %2761 = vrot.lane.b32.xlu0 %v2760_v7, %s3133_s15  ;;  %v981_v7 = vld [vmem:[%s5033_s3 + $0x88] sm:$0xff]  ;;  %v2612_v44 = vpack.c.bf16 %v983_v21, %v982_v25  ;;  %vm71_vm0 = vcmp.lt.s32.totalorder %v63_v55, 4  ;;  %vm3744_vm7 = vmand %vm66_vm11, %vm70_vm8  ;;  %v5238_v46 = vmov 0  ;;  %v64_v55 = vadd.s32 4294967295, %v3325_v15 }
 0x38d   :  { %v2608_v60 = vpack.c.bf16 %v981_v7, %v980_v19  ;;  %v5233_v13 = vsel %vm3744_vm7, 4294967295, %v5232_v13  ;;  %vm3757_vm5 = vmand %vm67_vm6, %vm71_vm0  ;;  %vm5237_vm6 = vcmp.lt.s32.totalorder %v3347_v33, 4  ;;  %vm5240_vm11 = vcmp.lt.s32.totalorder %v3380_v16, 4 }
 0x38e   :  { %v5235_v12 = vsel %vm3757_vm5, 4294967295, %v5234_v12  ;;  %vm3789_vm8 = vmand %vm3744_vm7, %vm5237_vm6 }
 0x38f   :  { %2609 = vmatprep.subr.bf16.mxu1 %v2608_v60  ;;  %v5239_v46 = vsel %vm3789_vm8, 4294967295, %v5238_v46  ;;  %vm3812_vm6 = vmand %vm3757_vm5, %vm5240_vm11  ;;  %vm5243_vm11 = vnez %v5182_v2 }
 0x390   :  { %2766 = vrot.lane.b32.xlu0 %v2765_v57, %s3133_s15  ;;  %2771 = vrot.lane.b32.xlu1 %v2770_v39, %s3134_s16  ;;  %v984_v57 = vld [vmem:[%s5033_s3 + $0xa0] sm:$0xff]  ;;  %v973_v39 = vld [vmem:[%s5033_s3 + $0x48] sm:$0xff] }
 0x394   :  { %2776 = vrot.lane.b32.xlu0 %v2775_v3, %s3134_s16  ;;  %2786 = vrot.lane.b32.xlu1 %v2785_v49, %s3134_s16  ;;  %v985_v3 = vld [vmem:[%s5033_s3 + $0xa8] sm:$0xff] }
 0x398   :  { %2781 = vrot.lane.b32.xlu0 %v2780_v26, %s3134_s16  ;;  %2796 = vrot.lane.b32.xlu1 %v2795_v27, %s3133_s15  ;;  %v965_v26 = vld [vmem:[%s5033_s3 + $0x8] sm:$0xff]  ;;  %v2614_v27 = vpack.c.bf16 %v967_v47, %v966_v8  ;;  %v990_v8 = vld [vmem:[%s5033_s3 + $0xd0] sm:$0xff] }
 0x399   :  { %v2610_v49 = vpack.c.bf16 %v965_v26, %v964_v52  ;;  %v5236_v52 = vand.u32 3, %v3300_v61  ;;  %v2626_v26 = vpack.c.bf16 %v973_v39, %v972_v41  ;;  %v991_v47 = vld [vmem:[%s5033_s3 + $0xd8] sm:$0xff]  ;;  %v5241_v41 = vmov 0 }
 0x39a   :  { %v5242_v41 = vsel %vm3812_vm6, 4294967295, %v5241_v41 }
 0x39b   :  { %2611 = vmatpush3.bf16.msra.mxu1 %v2610_v49  ;;  %v3766_v60 = vadd.s32 4294967295, %v5236_v52  ;;  %v5244_v52 = vmov 0 }
 0x39c   :  { %2791 = vrot.lane.b32.xlu0 %v2790_v58, %s3134_s16  ;;  %2806 = vrot.lane.b32.xlu1 %v2805_v4, %s3134_s16  ;;  %v2616_v58 = vpack.c.bf16 %v985_v3, %v984_v57  ;;  %v2618_v4 = vpack.c.bf16 %v969_v32, %v968_v42  ;;  %v975_v42 = vld [vmem:[%s5033_s3 + $0x58] sm:$0xff] }
 0x39d   :  { %2613 = vmatprep.subr.bf16.mxu1 %v2612_v44  ;;  %vm5089_vm0 = vcmp.ge.s32.totalorder %v3766_v60, 0 }
 0x39e   :  { %vm3828_vm13 = vmand %vm5243_vm11, %vm5089_vm0  ;;  %vm5249_vm11 = vnez %v5186_v34 }
 0x39f   :  { %2615 = vmatpush3.bf16.msra.mxu1 %v2614_v27  ;;  %v2628_v27 = vpack.c.bf16 %v991_v47, %v990_v8  ;;  %v5245_v52 = vsel %vm3828_vm13, 4294967295, %v5244_v52 }
 0x3a0   :  { %2821 = vrot.lane.b32.xlu1 %v2820_v1, %s3133_s15  ;;  %2801 = vrot.lane.b32.xlu0 %v2800_v20, %s3133_s15  ;;  %v987_v1 = vld [vmem:[%s5033_s3 + $0xb8] sm:$0xff]  ;;  %v970_v20 = vld [vmem:[%s5033_s3 + $0x30] sm:$0xff] }
 0x3a1   :  { %2617 = vmatprep.subr.bf16.mxu1 %v2616_v58  ;;  %v2622_v11 = vpack.c.bf16 %v971_v14, %v970_v20  ;;  %v974_v58 = vld [vmem:[%s5033_s3 + $0x50] sm:$0xff]  ;;  %v992_v14 = vld [vmem:[%s5033_s3 + $0xe0] sm:$0xff] }
 0x3a3   :  { %2619 = vmatpush3.bf16.msra.mxu1 %v2618_v4 }
 0x3a4   :  { %2811 = vrot.lane.b32.xlu0 %v2810_v29, %s3133_s15  ;;  %v2620_v29 = vpack.c.bf16 %v987_v1, %v986_v54  ;;  %v65_v54 = vadd.s32 4294967295, %v3361_v40  ;;  %v2630_v1 = vpack.c.bf16 %v975_v42, %v974_v58 }
 0x3a6   :  { %2621 = vmatprep.subr.bf16.mxu1 %v2620_v29 }
 0x3a7   :  { %2623 = vmatpush3.bf16.msra.mxu1 %v2622_v11  ;;  %v993_v11 = vld [vmem:[%s5033_s3 + $0xe8] sm:$0xff] }
 0x3a8   :  { %2816 = vrot.lane.b32.xlu0 %v2815_v23, %s3134_s16  ;;  %v988_v23 = vld [vmem:[%s5033_s3 + $0xc0] sm:$0xff] }
 0x3a9   :  { %v2624_v18 = vpack.c.bf16 %v989_v48, %v988_v23 }
 0x3ab   :  { %2625 = vmatprep.subr.bf16.mxu1 %v2624_v18  ;;  %v977_v18 = vld [vmem:[%s5033_s3 + $0x68] sm:$0xff] }
 0x3ac   :  { %2627 = vmatpush3.bf16.msra.mxu1 %v2626_v26  ;;  %v5246_v26 = vmov 0 }
 0x3ad   :  { %2629 = vmatprep.subr.bf16.mxu1 %v2628_v27 }
 0x3b0   :  { %2631 = vmatpush3.bf16.msra.mxu1 %v2630_v1 }
 0x3e6   :  { %v2702_v24 = vpop.permute.xlu0 %2701  ;;  %v2697_v10 = vpop.permute.xlu1 %2696 }
 0x3e7   :  { %v2704_v19 = vunpack.i.h.bf16 %v2702_v24  ;;  %v2703_v7 = vunpack.i.l.bf16 %v2702_v24  ;;  %v2698_v25 = vunpack.i.l.bf16 %v2697_v10  ;;  %v2699_v20 = vunpack.i.h.bf16 %v2697_v10  ;;  %v976_v10 = vld [vmem:[%s5033_s3 + $0x60] sm:$0xff] }
 0x3e8   :  { %v2632_v24 = vpack.c.bf16 %v993_v11, %v992_v14  ;;  %v2634_v2 = vpack.c.bf16 %v977_v18, %v976_v10  ;;  %v5250_v14 = vmov 0 }
 0x3e9   :  { %v564_v49 = vsel %vm3744_vm7, %v2703_v7, 0.0  ;;  %v565_v21 = vsel %vm3757_vm5, %v2704_v19, 0.0  ;;  %v548_v29 = vsel %vm3744_vm7, %v2698_v25, 0.0  ;;  %vm68_vm7 = vcmp.ge.s32.totalorder %v64_v55, 0 }
 0x3ea   :  { %v2707_v44 = vpop.permute.xlu1 %2706  ;;  %v2712_v57 = vpop.permute.xlu0 %2711  ;;  %v2830_v3 = vpack.i.bf16 %v565_v21, %v564_v49  ;;  %v5248_v25 = vand.u32 3, %v3303_v62  ;;  %2633 = vmatprep.subr.bf16.mxu1 %v2632_v24  ;;  %v666_v21 = vsel %vm5249_vm11, %v2699_v20, 0.0  ;;  %v995_v62 = vld [vmem:[%s5033_s3 + $0xf8] sm:$0xff]  ;;  %vm5253_vm11 = vcmp.ge.s32.totalorder %v65_v54, 0 }
 0x3eb   :  { %v2709_v32 = vunpack.i.h.bf16 %v2707_v44  ;;  %v2708_v4 = vunpack.i.l.bf16 %v2707_v44  ;;  %v2714_v15 = vunpack.i.h.bf16 %v2712_v57  ;;  %v2713_v39 = vunpack.i.l.bf16 %v2712_v57  ;;  %v994_v44 = vld [vmem:[%s5033_s3 + $0xf0] sm:$0xff]  ;;  %2635 = vmatpush3.bf16.msra.mxu1 %v2634_v2 }
 0x3ec   :  { %2831 = vrot.lane.b32.xlu0 %v2830_v3, %s3135_s19  ;;  %v3843_v49 = vadd.s32 4294967295, %v5248_v25  ;;  %v2636_v42 = vpack.c.bf16 %v995_v62, %v994_v44  ;;  %v5263_v25 = vand.u32 3, %v3313_v6  ;;  %v5265_v44 = vmov 0 }
 0x3ed   :  { %v549_v33 = vsel %vm3757_vm5, %v2709_v32, 0.0  ;;  %v590_v16 = vsel %vm3789_vm8, %v2708_v4, 0.0  ;;  %vm3837_vm5 = vmand %vm3429_vm1, %vm5089_vm0  ;;  %vm72_vm0 = vcmp.lt.s32.totalorder %v64_v55, 4  ;;  %v978_v32 = vld [vmem:[%s5033_s3 + $0x70] sm:$0xff]  ;;  %v979_v4 = vld [vmem:[%s5033_s3 + $0x78] sm:$0xff]  ;;  %v616_v20 = vsel %vm3828_vm13, %v2714_v15, 0.0 }
 0x3ee   :  { %v3806_v23 = vpop.permute.xlu1 %2716  ;;  %v2722_v40 = vpop.permute.xlu0 %2721  ;;  %v2825_v48 = vpack.i.bf16 %v549_v33, %v548_v29  ;;  %v5247_v26 = vsel %vm3837_vm5, 4294967295, %v5246_v26  ;;  %v2835_v27 = vpack.i.bf16 %v590_v16, %v666_v21  ;;  %v683_v29 = vsel %vm3837_vm5, %v2713_v39, 0.0  ;;  %vm3872_vm8 = vmand %vm68_vm7, %vm72_vm0  ;;  %2637 = vmatprep.subr.bf16.mxu1 %v2636_v42  ;;  %s3139_s3 = smov 4  }
 0x3ef   :  { %v2724_v19 = vunpack.i.h.bf16 %v2722_v40  ;;  %v2723_v7 = vunpack.i.l.bf16 %v2722_v40  ;;  %v2718_v33 = vunpack.i.l.bf16 %v3806_v23  ;;  %v5251_v14 = vsel %vm3872_vm8, 4294967295, %v5250_v14 }
 0x3f0   :  { %2826 = vrot.lane.b32.xlu1 %v2825_v48, %s3136_s20  ;;  %v2638_v11 = vpack.c.bf16 %v979_v4, %v978_v32  ;;  %v5254_v15 = vmov 0  ;;  %vm5096_vm5 = vcmp.ge.s32.totalorder %v3843_v49, 0  ;;  %v2840_v18 = vpack.i.bf16 %v616_v20, %v683_v29 }
 0x3f1   :  { %v591_v8 = vsel %vm3812_vm6, %v2724_v19, 0.0  ;;  %v667_v47 = vsel %vm3590_vm9, %v2723_v7, 0.0  ;;  %vm5252_vm9 = vcmp.lt.s32.totalorder %v65_v54, 4  ;;  %vm3887_vm7 = vmand %vm3549_vm4, %vm5096_vm5  ;;  %v5257_v55 = vmov 0 }
 0x3f2   :  { %v2727_v57 = vpop.permute.xlu1 %2726  ;;  %v2732_v3 = vpop.permute.xlu0 %2731  ;;  %v2850_v58 = vpack.i.bf16 %v591_v8, %v667_v47  ;;  %vm3878_vm6 = vmand %vm5253_vm11, %vm5252_vm9  ;;  %v5258_v55 = vsel %vm3887_vm7, 4294967295, %v5257_v55  ;;  %2639 = vmatpush3.bf16.msra.mxu1 %v2638_v11  ;;  %v2719_v7 = vunpack.i.h.bf16 %v3806_v23  ;;  %v708_v16 = vsel %vm3429_vm1, %v2718_v33, 0.0 }
 0x3f3   :  { %v2729_v1 = vunpack.i.h.bf16 %v2727_v57  ;;  %v2728_v40 = vunpack.i.l.bf16 %v2727_v57  ;;  %v2733_v48 = vunpack.i.l.bf16 %v2732_v3  ;;  %v5255_v15 = vsel %vm3878_vm6, 4294967295, %v5254_v15  ;;  %vm3921_vm0 = vmand %vm3502_vm2, %vm5096_vm5 }
 0x3f4   :  { %2836 = vrot.lane.b32.xlu1 %v2835_v27, %s3137_s21  ;;  %2851 = vrot.lane.b32.xlu0 %v2850_v58, %s3137_s21  ;;  %5256 = vst [vmem:[#allocation15_spill] sm:$0xff] %v5255_v15  ;;  %vm5259_vm9 = vcmp.lt.s32.totalorder %v3355_v37, 4  ;;  %v3907_v2 = vadd.s32 4294967295, %v5263_v25  ;;  %v5264_v21 = vand.u32 3, %v3306_v63  ;;  %v2734_v8 = vunpack.i.h.bf16 %v2732_v3 }
 0x3f5   :  { %v709_v19 = vsel %vm3502_vm2, %v2729_v1, 0.0  ;;  %vm3901_vm4 = vmand %vm3872_vm8, %vm5259_vm9  ;;  %v550_v47 = vsel %vm3872_vm8, %v2733_v48, 0.0  ;;  %v5266_v44 = vsel %vm3921_vm0, 4294967295, %v5265_v44  ;;  %v617_v63 = vsel %vm3887_vm7, %v2728_v40, 0.0 }
 0x3f6   :  { %v2737_v24 = vpop.permute.xlu1 %2736  ;;  %v2742_v10 = vpop.permute.xlu0 %2741  ;;  %v5261_v43 = vsel %vm3901_vm4, 4294967295, %v5260_v43  ;;  %v3911_v23 = vadd.s32 4294967295, %v5264_v21  ;;  %5267 = vst [vmem:[#allocation17_spill] sm:$0xff] %v5266_v44  ;;  %v2845_v27 = vpack.i.bf16 %v709_v19, %v708_v16  ;;  %v684_v32 = vsel %vm3921_vm0, %v2719_v7, 0.0  ;;  %v5275_v19 = vld [vmem:[#allocation11_spill] sm:$0xff] }
 0x3f7   :  { %v2744_v54 = vunpack.i.h.bf16 %v2742_v10  ;;  %v2743_v39 = vunpack.i.l.bf16 %v2742_v10  ;;  %5262 = vst [vmem:[#allocation16_spill] sm:$0xff] %v5261_v43  ;;  %v2739_v6 = vunpack.i.h.bf16 %v2737_v24  ;;  %v2738_v62 = vunpack.i.l.bf16 %v2737_v24 }
 0x3f8   :  { %2841 = vrot.lane.b32.xlu1 %v2840_v18, %s3131_s14  ;;  %vm5103_vm11 = vcmp.ge.s32.totalorder %v3911_v23, 0  ;;  %v2855_v4 = vpack.i.bf16 %v617_v63, %v684_v32  ;;  %v668_v1 = vsel %vm3534_vm14, %v2734_v8, 0.0  ;;  %vm5268_vm9 = vcmp.lt.s32.totalorder %v3396_v53, 4 }
 0x3f9   :  { %v551_v37 = vsel %vm3878_vm6, %v2744_v54, 0.0  ;;  %v592_v42 = vsel %vm3901_vm4, %v2743_v39, 0.0  ;;  %vm3940_vm5 = vmand %vm3878_vm6, %vm5268_vm9  ;;  %v5269_v20 = vmov 0  ;;  %vm5104_vm2 = vcmp.ge.s32.totalorder %v3907_v2, 0 }
 0x3fa   :  { %v2747_v57 = vpop.permute.xlu1 %2746  ;;  %v2752_v3 = vpop.permute.xlu0 %2751  ;;  %v2860_v58 = vpack.i.bf16 %v551_v37, %v550_v47  ;;  %v5270_v20 = vsel %vm3940_vm5, 4294967295, %v5269_v20  ;;  %v2870_v40 = vpack.i.bf16 %v592_v42, %v668_v1  ;;  %v566_v48 = vsel %vm3872_vm8, %v2738_v62, 0.0  ;;  %vm3953_vm9 = vmand %vm3604_vm15, %vm5104_vm2 }
 0x3fb   :  { %5271 = vst [vmem:[#allocation18_spill] sm:$0xff] %v5270_v20  ;;  %v2749_v29 = vunpack.i.h.bf16 %v2747_v57  ;;  %v567_v24 = vsel %vm3878_vm6, %v2739_v6, 0.0  ;;  %v5272_v53 = vmov 0  ;;  %v2748_v10 = vunpack.i.l.bf16 %v2747_v57  ;;  %vm3971_vm15 = vmand %vm3518_vm3, %vm5103_vm11 }
 0x3fc   :  { %2846 = vrot.lane.b32.xlu1 %v2845_v27, %s3132_s0  ;;  %2861 = vrot.lane.b32.xlu0 %v2860_v58, %s3136_s20  ;;  %v5273_v53 = vsel %vm3953_vm9, 4294967295, %v5272_v53  ;;  %vm5276_vm14 = vnez %v5275_v19  ;;  %v5277_v7 = vmov 0  ;;  %v5281_v5 = vsel %vm3971_vm15, 4294967295, %v5280_v5 }
 0x3fd   :  { %5274 = vst [vmem:[#allocation19_spill] sm:$0xff] %v5273_v53  ;;  %vm3961_vm1 = vmand %vm5276_vm14, %vm5103_vm11  ;;  %v2754_v16 = vunpack.i.h.bf16 %v2752_v3  ;;  %v2865_v8 = vpack.i.bf16 %v567_v24, %v566_v48  ;;  %v5283_v37 = vmov 0  ;;  %v685_v6 = vsel %vm3971_vm15, %v2748_v10, 0.0 }
 0x3fe   :  { %v2757_v33 = vpop.permute.xlu1 %2756  ;;  %v2762_v11 = vpop.permute.xlu0 %2761  ;;  %v5278_v7 = vsel %vm3961_vm1, 4294967295, %v5277_v7  ;;  %5282 = vst [vmem:[#allocation20_spill] sm:$0xff] %v5281_v5  ;;  %vm3983_vm14 = vmand %vm3622_vm12, %vm5104_vm2  ;;  %v618_v63 = vsel %vm3961_vm1, %v2749_v29, 0.0  ;;  %v2753_v42 = vunpack.i.l.bf16 %v2752_v3  ;;  %vm5286_vm11 = vcmp.ge.s32.totalorder %v3766_v60, 0 }
 0x3ff   :  { %v2759_v18 = vunpack.i.h.bf16 %v2757_v33  ;;  %v2758_v54 = vunpack.i.l.bf16 %v2757_v33  ;;  %v2763_v39 = vunpack.i.l.bf16 %v2762_v11  ;;  %5279 = vst [vmem:[#allocation11_spill] sm:$0xff] %v5278_v7  ;;  %v5284_v37 = vsel %vm3983_vm14, 4294967295, %v5283_v37 }
 0x400   :  { %2856 = vrot.lane.b32.xlu1 %v2855_v4, %s3131_s14  ;;  %2871 = vrot.lane.b32.xlu0 %v2870_v40, %s3137_s21  ;;  %5285 = vst [vmem:[#allocation21_spill] sm:$0xff] %v5284_v37  ;;  %v686_v57 = vsel %vm3983_vm14, %v2754_v16, 0.0  ;;  %v2875_v27 = vpack.i.bf16 %v618_v63, %v685_v6  ;;  %v2764_v32 = vunpack.i.h.bf16 %v2762_v11  ;;  %v710_v4 = vsel %vm3518_vm3, %v2753_v42, 0.0 }
 0x401   :  { %v593_v25 = vsel %vm3940_vm5, %v2759_v18, 0.0  ;;  %v669_v21 = vsel %vm3640_vm10, %v2758_v54, 0.0  ;;  %v619_v62 = vsel %vm3953_vm9, %v2763_v39, 0.0  ;;  %vm5287_vm2 = vnez %v5233_v13 }
 0x402   :  { %v2885_v47 = vpack.i.bf16 %v593_v25, %v669_v21  ;;  %v2890_v58 = vpack.i.bf16 %v619_v62, %v686_v57  ;;  %v711_v1 = vsel %vm3622_vm12, %v2764_v32, 0.0  ;;  %v2767_v3 = vpop.permute.xlu0 %2766  ;;  %v2772_v33 = vpop.permute.xlu1 %2771  ;;  %vm4029_vm12 = vmand %vm5287_vm2, %vm5286_vm11  ;;  %v5288_v21 = vmov 0 }
 0x403   :  { %v2773_v39 = vunpack.i.l.bf16 %v2772_v33  ;;  %v2768_v16 = vunpack.i.l.bf16 %v2767_v3  ;;  %v2774_v25 = vunpack.i.h.bf16 %v2772_v33  ;;  %v5289_v21 = vsel %vm4029_vm12, 4294967295, %v5288_v21 }
 0x404   :  { %2866 = vrot.lane.b32.xlu1 %v2865_v8, %s3135_s19  ;;  %2886 = vrot.lane.b32.xlu0 %v2885_v47, %s3137_s21  ;;  %5290 = vst [vmem:[#allocation22_spill] sm:$0xff] %v5289_v21  ;;  %vm5291_vm14 = vcmask 130048   ;;  %vm5293_vm10 = vcmask 261120   ;;  %vm5300_vm11 = vcmask 130048   ;;  %vm5303_vm15 = vcmask 523264  }
 0x405   :  { %v650_v8 = vsel %vm3828_vm13, %v2773_v39, 0.0  ;;  %v522_v57 = vsel %vm4029_vm12, %v2774_v25, 0.0  ;;  %vm5292_vm3 = vmmov %vm5291_vm14  ;;  %vm5294_vm12 = vcmp.ge.s32.totalorder %v3843_v49, 0  ;;  %v5296_v25 = vmov 0 }
 0x406   :  { %v2777_v29 = vpop.permute.xlu0 %2776  ;;  %v4011_v40 = vpop.permute.xlu1 %2786 }
 0x407   :  { %v2778_v63 = vunpack.i.l.bf16 %v2777_v29  ;;  %v2779_v39 = vunpack.i.h.bf16 %v2777_v29  ;;  %v2789_v49 = vunpack.i.h.bf16 %v4011_v40 }
 0x408   :  { %2876 = vrot.lane.b32.xlu1 %v2875_v27, %s3131_s14  ;;  %2891 = vrot.lane.b32.xlu0 %v2890_v58, %s3131_s14  ;;  %v936_v27 = vsel %vm5291_vm14, %v650_v8, %v2768_v16  ;;  %vm5295_vm14 = vnez %v5235_v12 }
 0x409   :  { %v651_v32 = vsel %vm3887_vm7, %v2778_v63, 0.0  ;;  %v940_v33 = vsel %vm5293_vm10, %v936_v27, %v2768_v16  ;;  %vm4046_vm0 = vmand %vm5295_vm14, %vm5294_vm12 }
 0x40a   :  { %v4009_v11 = vpop.permute.xlu0 %2781  ;;  %v4013_v24 = vpop.permute.xlu1 %2796  ;;  %v5297_v25 = vsel %vm4046_vm0, 4294967295, %v5296_v25  ;;  %vm5304_vm12 = vmmov %vm5303_vm15 }
 0x40b   :  { %5298 = vst [vmem:[#allocation23_spill] sm:$0xff] %v5297_v25 }
 0x40c   :  { %881 = vrot.lane.b32.xlu1 %v710_v4, %s3132_s0  ;;  %883 = vrot.lane.b32.xlu0 %v711_v1, %s3132_s0  ;;  %v2769_v1 = vunpack.i.h.bf16 %v2767_v3 }
 0x40e   :  { %v2792_v48 = vpop.permute.xlu0 %2791  ;;  %v4017_v18 = vpop.permute.xlu1 %2806  ;;  %v937_v3 = vsel %vm5300_vm11, %v651_v32, %v2769_v1  ;;  %vm5305_vm11 = vcmask 654336  }
 0x40f   :  { %v2794_v16 = vunpack.i.h.bf16 %v2792_v48 }
 0x410   :  { %2881 = vrot.lane.b32.xlu1 %v3667_v51, %s3134_s16 }
 0x412   :  { %v4015_v10 = vpop.permute.xlu0 %2801  ;;  %v4021_v51 = vpop.permute.xlu1 %2821 }
 0x414   :  { %2896 = vrot.lane.b32.xlu1 %v3671_v22, %s3133_s15 }
 0x416   :  { %v4019_v54 = vpop.permute.xlu0 %2811 }
 0x41a   :  { %v4023_v22 = vpop.permute.xlu0 %2816 }
 0x45e   :  { %v2832_v6 = vpop.permute.xlu0 %2831 }
 0x45f   :  { %v2833_v4 = vunpack.i.l.bf16 %v2832_v6 }
 0x462   :  { %v2827_v19 = vpop.permute.xlu1 %2826 }
 0x463   :  { %v2828_v47 = vunpack.i.l.bf16 %v2827_v19  ;;  %v2829_v8 = vunpack.i.h.bf16 %v2827_v19  ;;  %v523_v19 = vsel %vm4046_vm0, %v2779_v39, 0.0 }
 0x465   :  { %v905_v60 = vsel %vm5292_vm3, %v522_v57, %v2828_v47  ;;  %vm5299_vm3 = vmmov %vm5293_vm10  ;;  %vm5301_vm10 = vcmask 392192  }
 0x466   :  { %v2837_v62 = vpop.permute.xlu1 %2836  ;;  %v2852_v50 = vpop.permute.xlu0 %2851  ;;  %v909_v47 = vsel %vm5299_vm3, %v905_v60, %v2833_v4  ;;  %vm5302_vm5 = vmmov %vm5301_vm10  ;;  %v2788_v60 = vunpack.i.l.bf16 %v4011_v40  ;;  %v5310_v40 = vmov 0 }
 0x467   :  { %v2839_v58 = vunpack.i.h.bf16 %v2837_v62  ;;  %v2838_v42 = vunpack.i.l.bf16 %v2837_v62 }
 0x469   :  { %v913_v29 = vsel %vm5301_vm10, %v909_v47, %v2839_v58  ;;  %v944_v57 = vsel %vm5302_vm5, %v940_v33, %v2838_v42  ;;  %v941_v42 = vsel %vm5299_vm3, %v937_v3, %v2769_v1  ;;  %v2798_v33 = vunpack.i.l.bf16 %v4013_v24 }
 0x46a   :  { %v2842_v36 = vpop.permute.xlu1 %2841  ;;  %vm5306_vm5 = vcmask 130048   ;;  %vm5308_vm10 = vcmask 785408   ;;  %v2799_v1 = vunpack.i.h.bf16 %v4013_v24  ;;  %vm5314_vm3 = vcmp.ge.s32.totalorder %v3911_v23, 0 }
 0x46b   :  { %v2844_v63 = vunpack.i.h.bf16 %v2842_v36  ;;  %v2843_v62 = vunpack.i.l.bf16 %v2842_v36  ;;  %v2793_v36 = vunpack.i.l.bf16 %v2792_v48  ;;  %v906_v47 = vsel %vm5306_vm5, %v523_v19, %v2829_v8  ;;  %vm4084_vm5 = vmand %vm3872_vm8, %vm5314_vm3 }
 0x46c   :  { %v2784_v48 = vunpack.i.h.bf16 %v4009_v11  ;;  %v2834_v8 = vunpack.i.h.bf16 %v2832_v6 }
 0x46d   :  { %v917_v27 = vsel %vm5303_vm15, %v913_v29, %v2844_v63  ;;  %v948_v21 = vsel %vm5304_vm12, %v944_v57, %v2843_v62  ;;  %v2854_v62 = vunpack.i.h.bf16 %v2852_v50  ;;  %v2853_v29 = vunpack.i.l.bf16 %v2852_v50  ;;  %vm5307_vm15 = vmmov %vm5305_vm11 }
 0x46e   :  { %v2847_v4 = vpop.permute.xlu1 %2846  ;;  %v4060_v32 = vpop.permute.xlu0 %2861  ;;  %v922_v58 = vsel %vm5305_vm11, %v917_v27, %v2794_v16  ;;  %v952_v57 = vsel %vm5307_vm15, %v948_v21, %v2793_v36  ;;  %vm5309_vm12 = vcmp.ge.s32.totalorder %v3907_v2, 0  ;;  %vm5313_vm11 = vmmov %vm5308_vm10  ;;  %v2783_v50 = vunpack.i.l.bf16 %v4009_v11 }
 0x46f   :  { %v2848_v63 = vunpack.i.l.bf16 %v2847_v4  ;;  %v927_v39 = vsel %vm5308_vm10, %v922_v58, %v2794_v16  ;;  %vm4072_vm4 = vmand %vm3878_vm6, %vm5309_vm12  ;;  %v5315_v2 = vmov 0  ;;  %v2809_v21 = vunpack.i.h.bf16 %v4017_v18 }
 0x470   :  { %v5311_v40 = vsel %vm4072_vm4, 4294967295, %v5310_v40  ;;  %v5316_v2 = vsel %vm4084_vm5, 4294967295, %v5315_v2  ;;  %v2803_v16 = vunpack.i.l.bf16 %v4015_v10  ;;  %vm5318_vm15 = vcmask 916480  }
 0x471   :  { %5312 = vst [vmem:[#allocation24_spill] sm:$0xff] %v5311_v40  ;;  %v956_v3 = vsel %vm5313_vm11, %v952_v57, %v2848_v63  ;;  %5317 = vst [vmem:[#allocation25_spill] sm:$0xff] %v5316_v2  ;;  %vm5319_vm10 = vcmask 261120   ;;  %v2808_v58 = vunpack.i.l.bf16 %v4017_v18  ;;  %vm5321_vm11 = vcmask 392192  }
 0x472   :  { %v2857_v27 = vpop.permute.xlu1 %2856  ;;  %v2872_v19 = vpop.permute.xlu0 %2871  ;;  %v960_v24 = vsel %vm5318_vm15, %v956_v3, %v2798_v33  ;;  %v910_v6 = vsel %vm5319_vm10, %v906_v47, %v2834_v8  ;;  %vm5320_vm12 = vmmov %vm5318_vm15  ;;  %v2863_v25 = vunpack.i.l.bf16 %v4060_v32  ;;  %v525_v59 = vsel %vm4072_vm4, %v2789_v49, 0.0 }
 0x473   :  { %v2859_v36 = vunpack.i.h.bf16 %v2857_v27  ;;  %v2858_v11 = vunpack.i.l.bf16 %v2857_v27  ;;  %1060 = vmatprep.mubr.f32.mxu1 %v960_v24  ;;  %v932_v23 = vsel %vm5320_vm12, %v927_v39, %v2799_v1  ;;  %v914_v63 = vsel %vm5321_vm11, %v910_v6, %v2854_v62  ;;  %vm5322_vm3 = vmmov %vm5321_vm11 }
 0x474   :  { %v945_v57 = vsel %vm5322_vm3, %v941_v42, %v2853_v29  ;;  %1061 = vmatmul.mubr.f32.vlgmr.msra.gmra.mrb[4].mxu1 %v932_v23  ;;  %v524_v33 = vsel %vm4084_vm5, %v2784_v48, 0.0  ;;  %vm5323_vm15 = vcmask 523264   ;;  %v652_v18 = vsel %vm3961_vm1, %v2783_v50, 0.0 }
 0x475   :  { %v918_v47 = vsel %vm5323_vm15, %v914_v63, %v2859_v36  ;;  %vm5324_vm10 = vmmov %vm5323_vm15  ;;  %v2849_v39 = vunpack.i.h.bf16 %v2847_v4  ;;  %vm5325_vm12 = vcmask 654336   ;;  %v2804_v1 = vunpack.i.h.bf16 %v4015_v10 }
 0x476   :  { %v949_v8 = vsel %vm5324_vm10, %v945_v57, %v2858_v11  ;;  %v2867_v62 = vpop.permute.xlu1 %2866  ;;  %vm5326_vm11 = vmmov %vm5325_vm12  ;;  %vm5327_vm3 = vcmask 130048   ;;  %v2813_v3 = vunpack.i.l.bf16 %v4019_v54  ;;  %v2887_v27 = vpop.permute.xlu0 %2886  ;;  %v2873_v6 = vunpack.i.l.bf16 %v2872_v19 }
 0x477   :  { %v953_v42 = vsel %vm5325_vm12, %v949_v8, %v2808_v58  ;;  %v923_v29 = vsel %vm5326_vm11, %v918_v47, %v2809_v21  ;;  %v938_v49 = vsel %vm5327_vm3, %v652_v18, %v2803_v16  ;;  %v2868_v48 = vunpack.i.l.bf16 %v2867_v62  ;;  %vm5328_vm15 = vmmov %vm5327_vm3 }
 0x478   :  { %v907_v24 = vsel %vm5328_vm15, %v524_v33, %v2863_v25  ;;  %vm5329_vm10 = vcmask 785408   ;;  %v653_v50 = vsel %vm3953_vm9, %v2788_v60, 0.0  ;;  %v2814_v11 = vunpack.i.h.bf16 %v4019_v54 }
 0x479   :  { %v957_v36 = vsel %vm5329_vm10, %v953_v42, %v2849_v39  ;;  %vm5330_vm4 = vmmov %vm5329_vm10  ;;  %vm5331_vm12 = vcmask 261120   ;;  %vm5332_vm11 = vcmask 916480   ;;  %v2824_v58 = vunpack.i.h.bf16 %v4021_v51 }
 0x47a   :  { %v928_v4 = vsel %vm5330_vm4, %v923_v29, %v2809_v21  ;;  %v911_v10 = vsel %vm5331_vm12, %v907_v24, %v2868_v48  ;;  %v961_v23 = vsel %vm5332_vm11, %v957_v36, %v2804_v1  ;;  %v2864_v63 = vunpack.i.h.bf16 %v4060_v32  ;;  %v2877_v25 = vpop.permute.xlu1 %2876  ;;  %vm5333_vm3 = vmmov %vm5332_vm11  ;;  %v2892_v1 = vpop.permute.xlu0 %2891 }
 0x47b   :  { %v2874_v57 = vunpack.i.h.bf16 %v2872_v19  ;;  %1065 = vmatprep.mubr.f32.mxu1 %v961_v23  ;;  %v933_v33 = vsel %vm5333_vm3, %v928_v4, %v2813_v3  ;;  %vm5334_vm15 = vmmov %vm5331_vm12  ;;  %v2869_v47 = vunpack.i.h.bf16 %v2867_v62  ;;  %v2879_v8 = vunpack.i.h.bf16 %v2877_v25 }
 0x47c   :  { %v942_v21 = vsel %vm5334_vm15, %v938_v49, %v2803_v16  ;;  %v2878_v60 = vunpack.i.l.bf16 %v2877_v25  ;;  %1066 = vmatmul.mubr.f32.gmra.mrb[6].mxu1 %v933_v33  ;;  %v2819_v54 = vunpack.i.h.bf16 %v4023_v22  ;;  %v2818_v18 = vunpack.i.l.bf16 %v4023_v22 }
 0x47d   :  { %vm5335_vm4 = vcmask 392192   ;;  %v2823_v32 = vunpack.i.l.bf16 %v4021_v51  ;;  %vm5337_vm12 = vcmask 130048   ;;  %vm5338_vm11 = vcmask 523264  }
 0x47e   :  { %v946_v39 = vsel %vm5335_vm4, %v942_v21, %v2873_v6  ;;  %vm5336_vm10 = vmmov %vm5335_vm4  ;;  %v939_v19 = vsel %vm5337_vm12, %v653_v50, %v2814_v11  ;;  %v2889_v49 = vunpack.i.h.bf16 %v2887_v27  ;;  %v882_v3 = vpop.permute.xlu1 %881  ;;  %vm5341_vm5 = vcmask 654336  }
 0x47f   :  { %v915_v42 = vsel %vm5336_vm10, %v911_v10, %v2874_v57  ;;  %vm5339_vm3 = vmmov %vm5338_vm11  ;;  %vm5343_vm4 = vcmask 261120   ;;  %v2888_v6 = vunpack.i.l.bf16 %v2887_v27  ;;  %vm5344_vm10 = vcmask 785408  }
 0x480   :  { %v919_v29 = vsel %vm5338_vm11, %v915_v42, %v2879_v8  ;;  %v950_v16 = vsel %vm5339_vm3, %v946_v39, %v2878_v60  ;;  %vm5340_vm15 = vmmov %vm5337_vm12  ;;  %v2894_v4 = vunpack.i.h.bf16 %v2892_v1  ;;  %v2893_v50 = vunpack.i.l.bf16 %v2892_v1 }
 0x481   :  { %v908_v62 = vsel %vm5340_vm15, %v525_v59, %v2864_v63  ;;  %v954_v48 = vsel %vm5341_vm5, %v950_v16, %v2818_v18  ;;  %vm5342_vm0 = vmmov %vm5341_vm5  ;;  %vm5346_vm12 = vcmask 916480   ;;  %vm5349_vm5 = vcmask 392192  }
 0x482   :  { %v924_v22 = vsel %vm5342_vm0, %v919_v29, %v2819_v54  ;;  %v912_v24 = vsel %vm5343_vm4, %v908_v62, %v2869_v47  ;;  %v958_v51 = vsel %vm5344_vm10, %v954_v48, %v882_v3  ;;  %vm5345_vm9 = vmmov %vm5344_vm10  ;;  %v2882_v63 = vpop.permute.xlu1 %2881  ;;  %vm5351_vm15 = vcmask 523264  }
 0x483   :  { %v929_v36 = vsel %vm5345_vm9, %v924_v22, %v2819_v54  ;;  %v962_v10 = vsel %vm5346_vm12, %v958_v51, %v2823_v32  ;;  %vm5347_vm11 = vmmov %vm5346_vm12  ;;  %v916_v57 = vsel %vm5349_vm5, %v912_v24, %v2889_v49  ;;  %v2884_v27 = vunpack.i.h.bf16 %v2882_v63  ;;  %v884_v54 = vpop.permute.xlu0 %883 }
 0x484   :  { %v934_v23 = vsel %vm5347_vm11, %v929_v36, %v2824_v58  ;;  %1070 = vmatprep.mubr.f32.mxu1 %v962_v10  ;;  %vm5348_vm3 = vmmov %vm5343_vm4  ;;  %v2883_v33 = vunpack.i.l.bf16 %v2882_v63  ;;  %v920_v21 = vsel %vm5351_vm15, %v916_v57, %v2894_v4  ;;  %vm5353_vm4 = vcmask 654336  }
 0x485   :  { %v943_v59 = vsel %vm5348_vm3, %v939_v19, %v2814_v11  ;;  %1071 = vmatmul.mubr.f32.gmra.mrb[8].mxu1 %v934_v23  ;;  %vm5350_vm0 = vmmov %vm5349_vm5  ;;  %vm5355_vm12 = vcmask 785408   ;;  %vm5357_vm3 = vcmask 916480  }
 0x486   :  { %v947_v25 = vsel %vm5350_vm0, %v943_v59, %v2888_v6  ;;  %vm5352_vm9 = vmmov %vm5351_vm15  ;;  %v2897_v58 = vpop.permute.xlu1 %2896  ;;  %vm5142_vm0 = vcmask 31744   ;;  %vm5141_vm15 = vcmask 64512  }
 0x487   :  { %v951_v47 = vsel %vm5352_vm9, %v947_v25, %v2893_v50  ;;  %vm5354_vm10 = vmmov %vm5353_vm4  ;;  %v2899_v18 = vunpack.i.h.bf16 %v2897_v58  ;;  %v2898_v11 = vunpack.i.l.bf16 %v2897_v58  ;;  %vm1201_vm9 = vcmask 7168  }
 0x488   :  { %v955_v8 = vsel %vm5353_vm4, %v951_v47, %v2883_v33  ;;  %v925_v60 = vsel %vm5354_vm10, %v920_v21, %v2884_v27  ;;  %vm5356_vm11 = vmmov %vm5355_vm12  ;;  %vm5143_vm4 = vcmask 15360  }
 0x489   :  { %v959_v39 = vsel %vm5355_vm12, %v955_v8, %v884_v54  ;;  %v930_v42 = vsel %vm5356_vm11, %v925_v60, %v2884_v27  ;;  %vm5358_vm5 = vmmov %vm5357_vm3 }
 0x48a   :  { %v963_v32 = vsel %vm5357_vm3, %v959_v39, %v2898_v11  ;;  %v935_v19 = vsel %vm5358_vm5, %v930_v42, %v2899_v18 }
 0x48b   :  { %1075 = vmatprep.mubr.f32.mxu1 %v963_v32 }
 0x48c   :  { %1076 = vmatmul.mubr.f32.gmra.mrb[10].mxu1 %v935_v19 }
 0x547   :  { %v2495_v29 = vpop.f32.mrb[4].mxu1 }
 0x548   :  { %v2496_v1 = vpop.f32.mrb[5].mxu1 }
 0x549   :  { %v2497_v16 = vadd.f32 %v2496_v1, %v2495_v29 }
 0x54b   :  { %v1082_v62 = vmul.f32 %v2497_v16, %v2497_v16 }
 0x54d   :  { %1090 = vrot.lane.b32.xlu0 %v1082_v62, %s3139_s3 }
 0x54f   :  { %v2498_v49 = vpop.f32.mrb[6].mxu1 }
 0x550   :  { %v2499_v3 = vpop.f32.mrb[7].mxu1 }
 0x551   :  { %v2500_v48 = vadd.f32 %v2499_v3, %v2498_v49 }
 0x553   :  { %v1083_v22 = vmul.f32 %v2500_v48, %v2500_v48 }
 0x555   :  { %1092 = vrot.lane.b32.xlu1 %v1083_v22, %s3139_s3 }
 0x558   :  { %v2501_v24 = vpop.f32.mrb[8].mxu1 }
 0x559   :  { %v2502_v6 = vpop.f32.mrb[9].mxu1 }
 0x55a   :  { %v2503_v51 = vadd.f32 %v2502_v6, %v2501_v24 }
 0x55c   :  { %v1084_v36 = vmul.f32 %v2503_v51, %v2503_v51 }
 0x55e   :  { %1094 = vrot.lane.b32.xlu0 %v1084_v36, %s3139_s3 }
 0x55f   :  { %v2504_v4 = vpop.f32.mrb[10].mxu1 }
 0x560   :  { %v2505_v50 = vpop.f32.mrb[11].mxu1 }
 0x561   :  { %v2506_v10 = vadd.f32 %v2505_v50, %v2504_v4  ;;  %v1081_v4 = vld [vmem:[%s5034_s4] sm:$0x3] }
 0x563   :  { %v1085_v23 = vmul.f32 %v2506_v10, %v2506_v10 }
 0x565   :  { %1096 = vrot.lane.b32.xlu1 %v1085_v23, %s3139_s3 }
 0x5bf   :  { %v1091_v59 = vpop.permute.xlu0 %1090 }
 0x5c0   :  { %v1103_v27 = vsel %vm5142_vm0, %v2497_v16, %v1091_v59 }
 0x5c1   :  { %v1108_v47 = vsel %vm5141_vm15, %v1103_v27, 0.0 }
 0x5c7   :  { %v1093_v63 = vpop.permute.xlu1 %1092 }
 0x5c8   :  { %v1104_v25 = vsel %vm5142_vm0, %v2500_v48, %v1093_v63 }
 0x5c9   :  { %v1109_v21 = vsel %vm5141_vm15, %v1104_v25, 0.0 }
 0x5ca   :  { %v1110_v60 = vadd.f32 %v1109_v21, %v1108_v47  ;;  %v5360_v21 = vld [vmem:[#allocation7_spill] sm:$0xff] }
 0x5d0   :  { %v1095_v57 = vpop.permute.xlu0 %1094 }
 0x5d1   :  { %v1105_v33 = vsel %vm5142_vm0, %v2503_v51, %v1095_v57  ;;  %v5359_v57 = vld [vmem:[#allocation6_spill] sm:$0xff] }
 0x5d2   :  { %v1111_v8 = vsel %vm5141_vm15, %v1105_v33, 0.0  ;;  %v1160_v33 = vld [vmem:[%s5035_s5] sm:$0x3] }
 0x5d3   :  { %v1112_v54 = vadd.f32 %v1111_v8, %v1110_v60 }
 0x5d7   :  { %v1097_v58 = vpop.permute.xlu1 %1096 }
 0x5d8   :  { %v1106_v18 = vsel %vm5142_vm0, %v2506_v10, %v1097_v58 }
 0x5d9   :  { %v1113_v11 = vsel %vm5141_vm15, %v1106_v18, 0.0 }
 0x5da   :  { %v1114_v39 = vadd.f32 %v1113_v11, %v1112_v54  ;;  %v1184_v54 = vrot.slane %v1160_v33, %v5360_v21 }
 0x5dc   :  { %v1115_v42 = vrot.slane %v1114_v39, 4 }
 0x5de   :  { %v1116_v32 = vadd.f32 %v1115_v42, %v1114_v39  ;;  %v1164_v39 = vrot.slane %v1160_v33, %v5359_v57  ;;  %v1269_v33 = vsub.s32 2, %v3300_v61 }
 0x5e0   :  { %v1117_v19 = vrot.slane %v1116_v32, 2 }
 0x5e2   :  { %v1118_v29 = vadd.f32 %v1117_v19, %v1116_v32 }
 0x5e4   :  { %v1119_v1 = vrot.slane %v1118_v29, 1 }
 0x5e6   :  { %v1120_v62 = vadd.f32 %v1119_v1, %v1118_v29 }
 0x5e8   :  { %v1121_v49 = vmul.f32 0.03125, %v1120_v62 }
 0x5ea   :  { %v1122_v3 = vmul.f32 %v1121_v49, %v1121_v49 }
 0x5ec   :  { %1124 = vrot.lane.b32.xlu0 %v1122_v3, %s3139_s3 }
 0x65e   :  { %v1125_v22 = vpop.permute.xlu0 %1124 }
 0x65f   :  { %v1127_v24 = vsub.f32 %v1121_v49, %v1125_v22 }
 0x661   :  { %v1128_v6 = vadd.f32 1e-05, %v1127_v24 }
 0x663   :  { %3107 = vrsqrt.f32 %v1128_v6 }
 0x66d   :  { %v3108_v36 = vpop.eup %3107 }
 0x66e   :  { %1131 = vrot.lane.b32.xlu1 %v3108_v36, %s3140_s18  ;;  %s3145_s18 = smov 12  }
 0x6e0   :  { %v1132_v50 = vpop.permute.xlu1 %1131 }
 0x6e1   :  { %v1134_v23 = vmul.f32 %v1132_v50, %v1081_v4 }
 0x6e3   :  { %v1135_v59 = vmul.f32 %v1134_v23, %v1121_v49  ;;  %v1143_v25 = vrot.slane %v1134_v23, %v5359_v57 }
 0x6e5   :  { %v1137_v63 = vrot.slane %v1135_v59, 7  ;;  %v1144_v8 = vmul.f32 %v2497_v16, %v1143_v25  ;;  %v1146_v60 = vmul.f32 %v2503_v51, %v1143_v25  ;;  %v1145_v58 = vmul.f32 %v2500_v48, %v1143_v25 }
 0x6e6   :  { %v1147_v18 = vmul.f32 %v2506_v10, %v1143_v25 }
 0x6e7   :  { %v1139_v27 = vsub.f32 %v1081_v4, %v1137_v63 }
 0x6e9   :  { %v1151_v47 = vrot.slane %v1139_v27, %v5360_v21 }
 0x6eb   :  { %v1152_v11 = vadd.f32 %v1151_v47, %v1144_v8  ;;  %v1154_v42 = vadd.f32 %v1151_v47, %v1146_v60  ;;  %v1153_v32 = vadd.f32 %v1151_v47, %v1145_v58  ;;  %v1155_v19 = vadd.f32 %v1151_v47, %v1147_v18  ;;  %v1217_v47 = vld [vmem:[%s5037_s7] sm:$0x7]  ;;  %s3142_s7 = smov 2  }
 0x6ec   :  { %v2446_v8 = vld [vmem:[%s5036_s6] ss:$0 sm:$0xff]  ;;  %v4188_v60 = vrot.slane %v1217_v47, %v5359_v57  ;;  %v4190_v58 = vrot.slane %v1217_v47, %v1269_v33  ;;  %s3141_s6 = smov 8  }
 0x6ed   :  { %v1156_v29 = vmax.f32 %v1152_v11, 0.0  ;;  %v1158_v1 = vmax.f32 %v1154_v42, 0.0  ;;  %v1157_v62 = vmax.f32 %v1153_v32, 0.0  ;;  %v1159_v22 = vmax.f32 %v1155_v19, 0.0 }
 0x6ef   :  { %v1185_v49 = vmul.f32 %v1184_v54, %v1156_v29  ;;  %v1165_v3 = vmul.f32 %v1164_v39, %v1156_v29  ;;  %v1167_v48 = vmul.f32 %v1164_v39, %v1158_v1  ;;  %v1166_v51 = vmul.f32 %v1164_v39, %v1157_v62 }
 0x6f0   :  { %v1168_v36 = vmul.f32 %v1164_v39, %v1159_v22  ;;  %v1186_v4 = vmul.f32 %v1184_v54, %v1157_v62  ;;  %v1187_v59 = vmul.f32 %v1184_v54, %v1158_v1  ;;  %v1188_v25 = vmul.f32 %v1184_v54, %v1159_v22 }
 0x6f1   :  { %v1189_v24 = vsel %vm5142_vm0, %v1185_v49, 0.0  ;;  %v1169_v16 = vsel %vm5142_vm0, %v1165_v3, 0.0  ;;  %v1175_v10 = vsel %vm5142_vm0, %v1167_v48, 0.0  ;;  %v1172_v6 = vsel %vm5142_vm0, %v1166_v51, 0.0 }
 0x6f2   :  { %1190 = vadd.xlane.f32.xlu1 %v1189_v24  ;;  %1170 = vadd.xlane.f32.xlu0 %v1169_v16  ;;  %v1178_v50 = vsel %vm5142_vm0, %v1168_v36, 0.0  ;;  %v1192_v23 = vsel %vm5142_vm0, %v1186_v4, 0.0  ;;  %v1195_v63 = vsel %vm5142_vm0, %v1187_v59, 0.0  ;;  %v1198_v27 = vsel %vm5142_vm0, %v1188_v25, 0.0 }
 0x6f3   :  { %v4193_v54 = vrot.slane %v1217_v47, %v5360_v21 }
 0x6f6   :  { %1176 = vadd.xlane.f32.xlu1 %v1175_v10  ;;  %1173 = vadd.xlane.f32.xlu0 %v1172_v6 }
 0x6fa   :  { %1179 = vadd.xlane.f32.xlu1 %v1178_v50  ;;  %1193 = vadd.xlane.f32.xlu0 %v1192_v23 }
 0x6fe   :  { %1196 = vadd.xlane.f32.xlu0 %v1195_v63 }
 0x702   :  { %1199 = vadd.xlane.f32.xlu0 %v1198_v27 }
 0x77f   :  { %v1191_v18 = vpop.xlane.xlu1 %1190  ;;  %v1171_v11 = vpop.xlane.xlu0 %1170 }
 0x780   :  { %v1202_v61 = vsel %vm1201_vm9, %v1171_v11, %v1191_v18 }
 0x781   :  { %v4196_v39 = vadd.f32 %v2446_v8, %v1202_v61 }
 0x783   :  { %v1174_v42 = vpop.xlane.xlu0 %1173  ;;  %v1247_v32 = vsub.f32 %v4196_v39, %v4193_v54  ;;  %v1222_v19 = vsub.f32 %v4196_v39, %v4188_v60  ;;  %v1271_v29 = vsub.f32 %v4196_v39, %v4190_v58  ;;  %v1177_v48 = vpop.xlane.xlu1 %1176 }
 0x785   :  { %v1251_v1 = vmul.f32 %v1247_v32, %v1247_v32  ;;  %v1226_v62 = vmul.f32 %v1222_v19, %v1222_v19  ;;  %v1275_v24 = vmul.f32 %v1271_v29, %v1271_v29 }
 0x787   :  { %v1194_v49 = vpop.xlane.xlu0 %1193  ;;  %v1255_v3 = vsel %vm5143_vm4, %v1251_v1, 0.0  ;;  %v1231_v22 = vsel %vm5143_vm4, %v1226_v62, 0.0  ;;  %v1279_v6 = vsel %vm5143_vm4, %v1275_v24, 0.0  ;;  %v1180_v33 = vpop.xlane.xlu1 %1179 }
 0x788   :  { %v1203_v16 = vsel %vm1201_vm9, %v1174_v42, %v1194_v49  ;;  %1256 = vadd.xlane.f32.xlu0 %v1255_v3  ;;  %1232 = vadd.xlane.f32.xlu1 %v1231_v22 }
 0x789   :  { %v4207_v51 = vadd.f32 %v2446_v8, %v1203_v16 }
 0x78b   :  { %v1197_v10 = vpop.xlane.xlu0 %1196  ;;  %v1248_v36 = vsub.f32 %v4207_v51, %v4193_v54  ;;  %v1223_v4 = vsub.f32 %v4207_v51, %v4188_v60  ;;  %v1272_v50 = vsub.f32 %v4207_v51, %v4190_v58 }
 0x78c   :  { %v1204_v23 = vsel %vm1201_vm9, %v1177_v48, %v1197_v10  ;;  %1280 = vadd.xlane.f32.xlu1 %v1279_v6 }
 0x78d   :  { %v4217_v59 = vadd.f32 %v2446_v8, %v1204_v23  ;;  %v1252_v63 = vmul.f32 %v1248_v36, %v1248_v36  ;;  %v1227_v25 = vmul.f32 %v1223_v4, %v1223_v4  ;;  %v1276_v27 = vmul.f32 %v1272_v50, %v1272_v50 }
 0x78f   :  { %v1200_v47 = vpop.xlane.xlu0 %1199  ;;  %v1258_v18 = vsel %vm5143_vm4, %v1252_v63, 0.0  ;;  %v1234_v11 = vsel %vm5143_vm4, %v1227_v25, 0.0  ;;  %v1224_v61 = vsub.f32 %v4217_v59, %v4188_v60  ;;  %v1249_v32 = vsub.f32 %v4217_v59, %v4193_v54 }
 0x790   :  { %v1205_v42 = vsel %vm1201_vm9, %v1180_v33, %v1200_v47  ;;  %1259 = vadd.xlane.f32.xlu1 %v1258_v18  ;;  %1235 = vadd.xlane.f32.xlu0 %v1234_v11  ;;  %v1273_v19 = vsub.f32 %v4217_v59, %v4190_v58  ;;  %v1282_v62 = vsel %vm5143_vm4, %v1276_v27, 0.0 }
 0x791   :  { %v4228_v29 = vadd.f32 %v2446_v8, %v1205_v42  ;;  %v1228_v1 = vmul.f32 %v1224_v61, %v1224_v61  ;;  %v1253_v49 = vmul.f32 %v1249_v32, %v1249_v32 }
 0x792   :  { %v1277_v22 = vmul.f32 %v1273_v19, %v1273_v19 }
 0x793   :  { %v1237_v3 = vsel %vm5143_vm4, %v1228_v1, 0.0  ;;  %v1250_v24 = vsub.f32 %v4228_v29, %v4193_v54  ;;  %v1225_v16 = vsub.f32 %v4228_v29, %v4188_v60  ;;  %v1274_v48 = vsub.f32 %v4228_v29, %v4190_v58 }
 0x794   :  { %1283 = vadd.xlane.f32.xlu0 %v1282_v62  ;;  %1238 = vadd.xlane.f32.xlu1 %v1237_v3  ;;  %v1261_v8 = vsel %vm5143_vm4, %v1253_v49, 0.0  ;;  %v1285_v10 = vsel %vm5143_vm4, %v1277_v22, 0.0 }
 0x795   :  { %v1254_v6 = vmul.f32 %v1250_v24, %v1250_v24  ;;  %v1229_v36 = vmul.f32 %v1225_v16, %v1225_v16  ;;  %v1278_v23 = vmul.f32 %v1274_v48, %v1274_v48  ;;  %v5361_v48 = vld [vmem:[#allocation8_spill] sm:$0xff] }
 0x797   :  { %v1264_v4 = vsel %vm5143_vm4, %v1254_v6, 0.0  ;;  %v1240_v50 = vsel %vm5143_vm4, %v1229_v36, 0.0  ;;  %v1288_v63 = vsel %vm5143_vm4, %v1278_v23, 0.0 }
 0x798   :  { %1262 = vadd.xlane.f32.xlu0 %v1261_v8  ;;  %1286 = vadd.xlane.f32.xlu1 %v1285_v10 }
 0x79c   :  { %1265 = vadd.xlane.f32.xlu1 %v1264_v4  ;;  %1241 = vadd.xlane.f32.xlu0 %v1240_v50 }
 0x7a0   :  { %1289 = vadd.xlane.f32.xlu0 %v1288_v63 }
 0x815   :  { %v1233_v25 = vpop.xlane.xlu1 %1232  ;;  %v1257_v27 = vpop.xlane.xlu0 %1256 }
 0x816   :  { %vm1291_vm10 = vcmp.le.f32.partialorder %v1233_v25, %v1257_v27 }
 0x819   :  { %v1281_v33 = vpop.xlane.xlu1 %1280 }
 0x81a   :  { %vm1295_vm12 = vcmp.le.f32.partialorder %v1233_v25, %v1281_v33  ;;  %vm1303_vm11 = vcmp.le.f32.partialorder %v1257_v27, %v1281_v33 }
 0x81b   :  { %vm1299_vm3 = vmand %vm1291_vm10, %vm1295_vm12  ;;  %v1315_v47 = vsel %vm1303_vm11, %v4193_v54, %v4190_v58 }
 0x81c   :  { %v4246_v18 = vsel %vm1299_vm3, %v4188_v60, %v1315_v47 }
 0x81d   :  { %v1260_v11 = vpop.xlane.xlu1 %1259  ;;  %1511 = vrot.lane.b32.xlu0 %v4246_v18, %s3141_s6  ;;  %v1236_v61 = vpop.xlane.xlu0 %1235  ;;  %v1381_v3 = vrot.slane %v4246_v18, 4  ;;  %v1397_v10 = vrot.slane %v4246_v18, 5  ;;  %v1331_v27 = vsub.f32 %v4246_v18, %v4196_v39 }
 0x81e   :  { %vm1292_vm5 = vcmp.le.f32.partialorder %v1236_v61, %v1260_v11 }
 0x821   :  { %v1239_v42 = vpop.xlane.xlu1 %1238  ;;  %v1284_v32 = vpop.xlane.xlu0 %1283 }
 0x822   :  { %vm1296_vm9 = vcmp.le.f32.partialorder %v1236_v61, %v1284_v32  ;;  %vm1304_vm15 = vcmp.le.f32.partialorder %v1260_v11, %v1284_v32  ;;  %v1413_v11 = vrot.slane %v4246_v18, 7  ;;  %v1335_v61 = vmul.f32 %v1331_v27, %v1331_v27 }
 0x823   :  { %vm1300_vm0 = vmand %vm1292_vm5, %vm1296_vm9  ;;  %v1316_v19 = vsel %vm1304_vm15, %v4193_v54, %v4190_v58  ;;  %vm5363_vm15 = vcmask 1042432  }
 0x824   :  { %v4253_v1 = vsel %vm1300_vm0, %v4188_v60, %v1316_v19  ;;  %vm5362_vm0 = vcmask 1043456   ;;  %v1398_v50 = vsel %vm5363_vm15, %v3336_v28, %v1397_v10  ;;  %v5367_v19 = vld [vmem:[#allocation9_spill] sm:$0xff] }
 0x825   :  { %v1287_v62 = vpop.xlane.xlu1 %1286  ;;  %1513 = vrot.lane.b32.xlu0 %v4253_v1, %s3141_s6  ;;  %v1263_v49 = vpop.xlane.xlu0 %1262  ;;  %v1382_v8 = vsel %vm5362_vm0, %v5361_v48, %v1381_v3  ;;  %v1399_v23 = vrot.slane %v4253_v1, 5  ;;  %v1383_v63 = vrot.slane %v4253_v1, 4  ;;  %v1332_v39 = vsub.f32 %v4253_v1, %v4207_v51 }
 0x826   :  { %vm1297_vm10 = vcmp.le.f32.partialorder %v1239_v42, %v1287_v62  ;;  %vm1293_vm12 = vcmp.le.f32.partialorder %v1239_v42, %v1263_v49  ;;  %vm1305_vm11 = vcmp.le.f32.partialorder %v1263_v49, %v1287_v62  ;;  %v1393_v36 = vsel %vm5287_vm2, %v1382_v8, 0.0 }
 0x827   :  { %vm1301_vm3 = vmand %vm1293_vm12, %vm1297_vm10  ;;  %v1317_v22 = vsel %vm1305_vm11, %v4193_v54, %v4190_v58  ;;  %vm5364_vm11 = vnez %v5239_v46  ;;  %vm5413_vm2 = vcmask 15360  }
 0x828   :  { %v4261_v24 = vsel %vm1301_vm3, %v4188_v60, %v1317_v22  ;;  %v1409_v47 = vsel %vm5364_vm11, %v1398_v50, 0.0  ;;  %vm5365_vm3 = vmmov %vm5363_vm15  ;;  %vm5366_vm15 = vnez %v5242_v41 }
 0x829   :  { %1515 = vrot.lane.b32.xlu1 %v4261_v24, %s3141_s6  ;;  %v1242_v16 = vpop.xlane.xlu0 %1241  ;;  %v1266_v6 = vpop.xlane.xlu1 %1265  ;;  %v1333_v49 = vsub.f32 %v4261_v24, %v4217_v59  ;;  %v1339_v59 = vsel %vm5143_vm4, %v1335_v61, 0.0  ;;  %v1429_v61 = vrot.slane %v4246_v18, 1 }
 0x82a   :  { %vm1294_vm5 = vcmp.le.f32.partialorder %v1242_v16, %v1266_v6 }
 0x82b   :  { %v1337_v50 = vmul.f32 %v1333_v49, %v1333_v49 }
 0x82d   :  { %1467 = vrot.lane.b32.xlu1 %v1393_v36, %s3142_s7  ;;  %v1290_v4 = vpop.xlane.xlu0 %1289  ;;  %v1430_v36 = vrot.slane %v4253_v1, 1 }
 0x82e   :  { %vm1298_vm9 = vcmp.le.f32.partialorder %v1242_v16, %v1290_v4  ;;  %vm1306_vm10 = vcmp.le.f32.partialorder %v1266_v6, %v1290_v4  ;;  %v1432_v4 = vrot.slane %v4261_v24, 1 }
 0x82f   :  { %vm1302_vm12 = vmand %vm1294_vm5, %vm1298_vm9  ;;  %v1318_v25 = vsel %vm1306_vm10, %v4193_v54, %v4190_v58  ;;  %v4291_v58 = vsel %vm5365_vm3, %v1397_v10, %v1399_v23  ;;  %v4294_v54 = vsel %vm5362_vm0, %v1381_v3, %v1383_v63  ;;  %vm5368_vm5 = vcmask 1040384  }
 0x830   :  { %v4280_v33 = vsel %vm1302_vm12, %v4188_v60, %v1318_v25  ;;  %v1415_v60 = vrot.slane %v4253_v1, 7  ;;  %v1410_v42 = vsel %vm5366_vm15, %v4291_v58, 0.0  ;;  %v1394_v32 = vsel %vm5295_vm14, %v4294_v54, 0.0  ;;  %vm5369_vm9 = vmmov %vm5368_vm5 }
 0x831   :  { %1483 = vrot.lane.b32.xlu1 %v1409_v47, %s3139_s3  ;;  %1517 = vrot.lane.b32.xlu0 %v4280_v33, %s3141_s6  ;;  %v1414_v62 = vsel %vm5368_vm5, %v5367_v19, %v1413_v11  ;;  %v1385_v3 = vrot.slane %v4261_v24, 4  ;;  %v1387_v22 = vrot.slane %v4280_v33, 4  ;;  %v1334_v16 = vsub.f32 %v4280_v33, %v4228_v29  ;;  %vm5370_vm10 = vmmov %vm5362_vm0 }
 0x832   :  { %v1416_v51 = vsel %vm5369_vm9, %v1413_v11, %v1415_v60  ;;  %v1425_v8 = vsel %vm3828_vm13, %v1414_v62, 0.0  ;;  %v1336_v10 = vmul.f32 %v1332_v39, %v1332_v39  ;;  %vm5371_vm12 = vmmov %vm5362_vm0  ;;  %v1342_v39 = vsel %vm5143_vm4, %v1337_v50, 0.0 }
 0x833   :  { %v1426_v6 = vsel %vm3887_vm7, %v1416_v51, 0.0  ;;  %v1386_v29 = vsel %vm5370_vm10, %v1383_v63, %v1385_v3  ;;  %v4331_v25 = vsel %vm5371_vm12, %v1385_v3, %v1387_v22  ;;  %v1338_v27 = vmul.f32 %v1334_v16, %v1334_v16 }
 0x834   :  { %v1340_v47 = vsel %vm5143_vm4, %v1336_v10, 0.0  ;;  %v1396_v63 = vsel %vm3878_vm6, %v4331_v25, 0.0  ;;  %vm5372_vm3 = vcmask 1046528   ;;  %v1401_v3 = vrot.slane %v4261_v24, 5 }
 0x835   :  { %1485 = vrot.lane.b32.xlu1 %v1410_v42, %s3139_s3  ;;  %1469 = vrot.lane.b32.xlu0 %v1394_v32, %s3142_s7  ;;  %v1341_v11 = vadd.f32 %v1340_v47, %v1339_v59  ;;  %v1344_v42 = vsel %vm5143_vm4, %v1338_v27, 0.0  ;;  %v1395_v32 = vsel %vm3872_vm8, %v1386_v29, 0.0  ;;  %v1431_v49 = vsel %vm5372_vm3, %v1429_v61, %v1430_v36  ;;  %vm5373_vm0 = vmmov %vm5372_vm3 }
 0x836   :  { %v1433_v51 = vsel %vm5373_vm0, %v1430_v36, %v1432_v4  ;;  %v1403_v16 = vrot.slane %v4280_v33, 5  ;;  %vm5375_vm5 = vnez %v5186_v34  ;;  %vm5376_vm9 = vnez %v5215_v31 }
 0x837   :  { %v1343_v62 = vadd.f32 %v1342_v39, %v1341_v11  ;;  %v1441_v10 = vsel %vm5375_vm5, %v1431_v49, 0.0  ;;  %v1442_v59 = vsel %vm5376_vm9, %v1433_v51, 0.0  ;;  %vm5377_vm10 = vcmask 1042432  }
 0x838   :  { %v1402_v36 = vsel %vm5377_vm10, %v1399_v23, %v1401_v3  ;;  %vm5378_vm12 = vmmov %vm5377_vm10  ;;  %v1369_v27 = vrot.slane %v4261_v24, 3  ;;  %v1365_v47 = vrot.slane %v4246_v18, 3  ;;  %vm5379_vm3 = vnez %v5261_v43  ;;  %v1628_v23 = vld [vmem:[%s5038_s8] sm:$0xff] }
 0x839   :  { %1501 = vrot.lane.b32.xlu1 %v1426_v6, %s3143_s27  ;;  %1499 = vrot.lane.b32.xlu0 %v1425_v8, %s3143_s27  ;;  %v4350_v8 = vadd.f32 %v1344_v42, %v1343_v62  ;;  %v1367_v6 = vrot.slane %v4253_v1, 3  ;;  %v1404_v50 = vsel %vm5378_vm12, %v1401_v3, %v1403_v16  ;;  %v1411_v11 = vsel %vm5379_vm3, %v1402_v36, 0.0  ;;  %v1629_v42 = vld [vmem:[%s5038_s8 + $0x8] sm:$0xff] }
 0x83a   :  { %vm5380_vm0 = vnez %v5270_v20  ;;  %vm5381_vm4 = vcmask 1044480   ;;  %v1419_v62 = vrot.slane %v4280_v33, 7  ;;  %v2640_v49 = vpack.c.bf16 %v1629_v42, %v1628_v23 }
 0x83b   :  { %5374 = vst [vmem:[#allocation6_spill] sm:$0xff] %v4350_v8  ;;  %v1412_v39 = vsel %vm5380_vm0, %v1404_v50, 0.0  ;;  %v4374_v61 = vsel %vm5381_vm4, %v1365_v47, %v1367_v6  ;;  %vm5382_vm10 = vmmov %vm5381_vm4  ;;  %vm5383_vm4 = vnez %v5247_v26  ;;  %vm5384_vm12 = vnez %v5266_v44 }
 0x83c   :  { %2641 = vmatprep.subr.bf16.mxu0 %v2640_v49  ;;  %v1447_v51 = vsel %vm5383_vm4, %v4374_v61, 0.0  ;;  %v1434_v23 = vrot.slane %v4280_v33, 1  ;;  %v1371_v42 = vrot.slane %v4280_v33, 3  ;;  %vm5392_vm3 = vcmask 1046528  }
 0x83d   :  { %1471 = vrot.lane.b32.xlu1 %v1395_v32, %s3142_s7  ;;  %1473 = vrot.lane.b32.xlu0 %v1396_v63, %s3142_s7  ;;  %v4385_v32 = vsel %vm5382_vm10, %v1367_v6, %v1369_v27  ;;  %v1417_v63 = vrot.slane %v4261_v24, 7  ;;  %vm5385_vm10 = vcmask 1040384   ;;  %v1630_v6 = vld [vmem:[%s5038_s8 + $0x10] sm:$0xff]  ;;  %s3146_s8 = smov 14   ;;  %vm5393_vm6 = vcmask 1044480   ;;  %vm5397_vm4 = vmmov %vm5392_vm3 }
 0x83e   :  { %v1448_v3 = vsel %vm5384_vm12, %v4385_v32, 0.0  ;;  %2643 = vmatpush3.bf16.msra.mxu0 %v2640_v49  ;;  %vm5386_vm0 = vmmov %vm5385_vm10  ;;  %vm5387_vm12 = vnez %v5273_v53  ;;  %vm5394_vm8 = vnez %v5201_v38  ;;  %vm5395_vm7 = vnez %v5281_v5 }
 0x83f   :  { %2584 = vmatprep.subr.mxu0 %v1630_v6  ;;  %vm5398_vm13 = vnez %v5225_v56  ;;  %vm5167_vm9 = vcmask 113664  }
 0x841   :  { %1527 = vrot.lane.b32.xlu1 %v1441_v10, %s3144_s28  ;;  %1529 = vrot.lane.b32.xlu0 %v1442_v59, %s3144_s28  ;;  %v1418_v10 = vsel %vm5385_vm10, %v1415_v60, %v1417_v63  ;;  %v1420_v59 = vsel %vm5386_vm0, %v1417_v63, %v1419_v62  ;;  %vm5388_vm10 = vnez %v5184_v9  ;;  %vm5389_vm0 = vnez %v5195_v0  ;;  %v5488_v9 = vld [vmem:[#allocation16_spill] sm:$0xff] }
 0x842   :  { %2585 = vmatpush3.msra.mxu0 %v1630_v6  ;;  %v1453_v1 = vsel %vm5388_vm10, %v4294_v54, 0.0  ;;  %v1454_v60 = vsel %vm5389_vm0, %v1386_v29, 0.0  ;;  %v1435_v54 = vsel %vm5392_vm3, %v1432_v4, %v1434_v23  ;;  %v4428_v29 = vsel %vm5393_vm6, %v1369_v27, %v1371_v42  ;;  %v5405_v6 = vld [vmem:[#allocation13_spill] sm:$0xff] }
 0x843   :  { %v1443_v49 = vsel %vm5394_vm8, %v1435_v54, 0.0  ;;  %vm5399_vm6 = vnez %v5198_v35  ;;  %vm5400_vm3 = vcmask 1044480   ;;  %vm5406_vm11 = vnez %v5405_v6 }
 0x844   :  { %v1455_v4 = vsel %vm5399_vm6, %v4331_v25, 0.0  ;;  %v1445_v27 = vsel %vm5400_vm3, %v1371_v42, %v3340_v30  ;;  %vm5407_vm3 = vcmask 1042432  }
 0x845   :  { %1487 = vrot.lane.b32.xlu1 %v1411_v11, %s3139_s3  ;;  %1489 = vrot.lane.b32.xlu0 %v1412_v39, %s3139_s3  ;;  %v1427_v11 = vsel %vm3961_vm1, %v1418_v10, 0.0  ;;  %v1428_v39 = vsel %vm5387_vm12, %v1420_v59, 0.0  ;;  %vm5390_vm12 = vnez %v5188_v45  ;;  %vm5391_vm1 = vnez %v5212_v17  ;;  %v5402_v10 = vld [vmem:[#allocation12_spill] sm:$0xff] }
 0x846   :  { %v1459_v63 = vsel %vm5390_vm12, %v4291_v58, 0.0  ;;  %v1460_v62 = vsel %vm5391_vm1, %v1402_v36, 0.0  ;;  %v1449_v58 = vsel %vm5395_vm7, %v4428_v29, 0.0  ;;  %v5396_v36 = vld [vmem:[#allocation10_spill] sm:$0xff]  ;;  %vm5401_vm7 = vnez %v5284_v37 }
 0x847   :  { %vm5403_vm15 = vnez %v5402_v10  ;;  %v5414_v37 = vld [vmem:[#allocation22_spill] sm:$0xff] }
 0x848   :  { %v1461_v59 = vsel %vm5403_vm15, %v1404_v50, 0.0  ;;  %vm5415_vm14 = vnez %v5414_v37 }
 0x849   :  { %1543 = vrot.lane.b32.xlu1 %v1447_v51, %s3145_s18  ;;  %1545 = vrot.lane.b32.xlu0 %v1448_v3, %s3145_s18  ;;  %v1436_v51 = vsel %vm5397_vm4, %v1434_v23, %v5396_v36  ;;  %v1450_v3 = vsel %vm5401_vm7, %v1445_v27, 0.0  ;;  %vm5404_vm4 = vcmask 1043456  }
 0x84a   :  { %v1444_v24 = vsel %vm5398_vm13, %v1436_v51, 0.0  ;;  %v1451_v25 = vsel %vm5404_vm4, %v1387_v22, %v5361_v48  ;;  %vm5410_vm4 = vcmask 1044480   ;;  %vm5416_vm13 = vmmov %vm5413_vm2 }
 0x84d   :  { %1503 = vrot.lane.b32.xlu1 %v1427_v11, %s3143_s27  ;;  %1505 = vrot.lane.b32.xlu0 %v1428_v39, %s3143_s27  ;;  %v1456_v11 = vsel %vm5406_vm11, %v1451_v25, 0.0  ;;  %v1457_v39 = vsel %vm5407_vm3, %v1403_v16, %v3336_v28  ;;  %vm5417_vm11 = vcmask 31744  }
 0x84e   :  { %vm5418_vm6 = vmmov %vm5417_vm11 }
 0x851   :  { %1559 = vrot.lane.b32.xlu1 %v1453_v1, %s3146_s8  ;;  %1561 = vrot.lane.b32.xlu0 %v1454_v60, %s3146_s8  ;;  %v5408_v1 = vld [vmem:[#allocation14_spill] sm:$0xff] }
 0x852   :  { %vm5409_vm7 = vnez %v5408_v1 }
 0x853   :  { %v1462_v50 = vsel %vm5409_vm7, %v1457_v39, 0.0  ;;  %v5411_v39 = vld [vmem:[#allocation23_spill] sm:$0xff]  ;;  %vm5170_vm7 = vcmask 48128  }
 0x854   :  { %vm5412_vm3 = vnez %v5411_v39 }
 0x855   :  { %1575 = vrot.lane.b32.xlu1 %v1459_v63, %s3136_s20  ;;  %1577 = vrot.lane.b32.xlu0 %v1460_v62, %s3136_s20 }
 0x859   :  { %1531 = vrot.lane.b32.xlu1 %v1443_v49, %s3144_s28  ;;  %1547 = vrot.lane.b32.xlu0 %v1449_v58, %s3145_s18 }
 0x85d   :  { %1533 = vrot.lane.b32.xlu1 %v1444_v24, %s3144_s28  ;;  %1563 = vrot.lane.b32.xlu0 %v1455_v4, %s3146_s8 }
 0x861   :  { %1549 = vrot.lane.b32.xlu1 %v1450_v3, %s3145_s18  ;;  %1579 = vrot.lane.b32.xlu0 %v1461_v59, %s3136_s20  ;;  %v1366_v59 = vsel %vm5410_vm4, %v3340_v30, %v1365_v47  ;;  %vm5165_vm4 = vcmask 80896  }
 0x862   :  { %v1377_v53 = vsel %vm5415_vm14, %v1366_v59, 0.0 }
 0x865   :  { %1565 = vrot.lane.b32.xlu1 %v1456_v11, %s3146_s8 }
 0x869   :  { %1581 = vrot.lane.b32.xlu1 %v1462_v50, %s3136_s20  ;;  %v1378_v50 = vsel %vm5412_vm3, %v4374_v61, 0.0  ;;  %vm5166_vm3 = vcmask 97280  }
 0x88f   :  { %v1512_v60 = vpop.permute.xlu0 %1511 }
 0x897   :  { %v1514_v42 = vpop.permute.xlu0 %1513 }
 0x89b   :  { %v1516_v23 = vpop.permute.xlu1 %1515 }
 0x89f   :  { %v1468_v63 = vpop.permute.xlu1 %1467 }
 0x8a0   :  { %v1587_v5 = vsel %vm5416_vm13, %v1377_v53, %v1468_v63  ;;  %vm5168_vm13 = vcmask 146432  }
 0x8a3   :  { %v1484_v62 = vpop.permute.xlu1 %1483  ;;  %v4466_v22 = vpop.permute.xlu0 %1517 }
 0x8a4   :  { %v1591_v18 = vsel %vm5417_vm11, %v1587_v5, %v1484_v62  ;;  %vm5169_vm11 = vcmask 195584  }
 0x8a7   :  { %v1486_v54 = vpop.permute.xlu1 %1485  ;;  %v1470_v49 = vpop.permute.xlu0 %1469 }
 0x8a8   :  { %v1588_v8 = vsel %vm5413_vm2, %v1378_v50, %v1470_v49  ;;  %vm5419_vm2 = vcmask 64512  }
 0x8a9   :  { %v1592_v47 = vsel %vm5418_vm6, %v1588_v8, %v1486_v54  ;;  %vm5420_vm14 = vmmov %vm5419_vm2  ;;  %vm5422_vm6 = vcmask 130048  }
 0x8ab   :  { %v1502_v58 = vpop.permute.xlu1 %1501  ;;  %v1500_v51 = vpop.permute.xlu0 %1499 }
 0x8ac   :  { %v1597_v44 = vsel %vm5170_vm7, %v1592_v47, %v1502_v58  ;;  %v1596_v43 = vsel %vm5170_vm7, %v1591_v18, %v1500_v51 }
 0x8ad   :  { %v1600_v50 = vsel %vm5419_vm2, %v1596_v43, %v1512_v60  ;;  %v1601_v59 = vsel %vm5420_vm14, %v1597_v44, %v1514_v42  ;;  %vm5421_vm14 = vnez %v5316_v2  ;;  %vm5423_vm2 = vmmov %vm5422_vm6 }
 0x8ae   :  { %v1379_v43 = vsel %vm5421_vm14, %v4385_v32, 0.0  ;;  %vm5436_vm14 = vcmask 195584  }
 0x8af   :  { %v1472_v24 = vpop.permute.xlu1 %1471  ;;  %v1474_v33 = vpop.permute.xlu0 %1473 }
 0x8b3   :  { %v1528_v4 = vpop.permute.xlu1 %1527  ;;  %v1530_v16 = vpop.permute.xlu0 %1529 }
 0x8b4   :  { %v1605_v53 = vsel %vm5165_vm4, %v1600_v50, %v1528_v4  ;;  %v1606_v63 = vsel %vm5165_vm4, %v1601_v59, %v1530_v16  ;;  %vm5424_vm4 = vcmask 15360  }
 0x8b5   :  { %v1589_v42 = vsel %vm5424_vm4, %v1379_v43, %v1472_v24  ;;  %vm5428_vm4 = vnez %v5311_v40 }
 0x8b6   :  { %v1380_v50 = vsel %vm5428_vm4, %v4428_v29, 0.0  ;;  %vm5437_vm4 = vcmask 64512  }
 0x8b7   :  { %v1488_v27 = vpop.permute.xlu1 %1487  ;;  %v1490_v3 = vpop.permute.xlu0 %1489 }
 0x8bb   :  { %v1544_v25 = vpop.permute.xlu1 %1543  ;;  %v1546_v11 = vpop.permute.xlu0 %1545 }
 0x8bc   :  { %v1610_v5 = vsel %vm5166_vm3, %v1605_v53, %v1544_v25  ;;  %v1611_v8 = vsel %vm5166_vm3, %v1606_v63, %v1546_v11  ;;  %vm5425_vm3 = vcmask 31744  }
 0x8bd   :  { %v1593_v25 = vsel %vm5425_vm3, %v1589_v42, %v1488_v27  ;;  %vm5430_vm3 = vcmask 15360  }
 0x8be   :  { %v1590_v59 = vsel %vm5430_vm3, %v1380_v50, %v1474_v33  ;;  %vm5439_vm3 = vcmask 97280  }
 0x8bf   :  { %v1504_v7 = vpop.permute.xlu1 %1503  ;;  %v1506_v20 = vpop.permute.xlu0 %1505 }
 0x8c0   :  { %v1598_v11 = vsel %vm5170_vm7, %v1593_v25, %v1504_v7  ;;  %vm5433_vm7 = vcmask 130048  }
 0x8c3   :  { %v1560_v61 = vpop.permute.xlu1 %1559  ;;  %v1562_v49 = vpop.permute.xlu0 %1561 }
 0x8c4   :  { %v1615_v62 = vsel %vm5167_vm9, %v1610_v5, %v1560_v61  ;;  %v1616_v54 = vsel %vm5167_vm9, %v1611_v8, %v1562_v49  ;;  %vm5426_vm9 = vcmask 64512  }
 0x8c5   :  { %v1602_v47 = vsel %vm5426_vm9, %v1598_v11, %v1516_v23  ;;  %vm5434_vm9 = vcmask 48128  }
 0x8c7   :  { %v1576_v58 = vpop.permute.xlu1 %1575  ;;  %v1578_v51 = vpop.permute.xlu0 %1577 }
 0x8c8   :  { %v1620_v44 = vsel %vm5422_vm6, %v1616_v54, %v1578_v51  ;;  %v1619_v60 = vsel %vm5423_vm2, %v1615_v62, %v1576_v58  ;;  %vm5427_vm6 = vcmask 80896   ;;  %vm5429_vm2 = vcmask 97280  }
 0x8c9   :  { %v1625_v4 = vsel %vm5168_vm13, %v1620_v44, 0.0  ;;  %v1624_v16 = vsel %vm5168_vm13, %v1619_v60, 0.0  ;;  %vm5431_vm13 = vcmask 113664  }
 0x8ca   :  { %2586 = vmatprep.mubr.msk.f32.mxu0 %vm5169_vm11, %v1624_v16 }
 0x8cb   :  { %v1532_v18 = vpop.permute.xlu1 %1531  ;;  %2587 = vmatmul.mubr.msk.f32.vlgmr.msra.gmra.mrb[0].mxu0 %vm5169_vm11, %v1625_v4  ;;  %v1548_v32 = vpop.permute.xlu0 %1547  ;;  %vm5432_vm11 = vcmask 31744  }
 0x8cc   :  { %v1607_v61 = vsel %vm5427_vm6, %v1602_v47, %v1532_v18  ;;  %v1594_v5 = vsel %vm5432_vm11, %v1590_v59, %v1490_v3  ;;  %vm5435_vm6 = vcmask 146432   ;;  %vm5440_vm11 = vmmov %vm5433_vm7 }
 0x8cd   :  { %v1612_v27 = vsel %vm5429_vm2, %v1607_v61, %v1548_v32  ;;  %v1599_v8 = vsel %vm5434_vm9, %v1594_v5, %v1506_v20  ;;  %vm5438_vm2 = vcmask 80896   ;;  %vm5442_vm9 = vmmov %vm5436_vm14 }
 0x8ce   :  { %v1603_v29 = vsel %vm5437_vm4, %v1599_v8, %v4466_v22 }
 0x8cf   :  { %v1534_v49 = vpop.permute.xlu1 %1533  ;;  %v1564_v24 = vpop.permute.xlu0 %1563 }
 0x8d0   :  { %v1617_v7 = vsel %vm5431_vm13, %v1612_v27, %v1564_v24  ;;  %v1608_v33 = vsel %vm5438_vm2, %v1603_v29, %v1534_v49 }
 0x8d3   :  { %v1550_v53 = vpop.permute.xlu1 %1549  ;;  %v1580_v63 = vpop.permute.xlu0 %1579 }
 0x8d4   :  { %v1621_v23 = vsel %vm5433_vm7, %v1617_v7, %v1580_v63  ;;  %v1613_v58 = vsel %vm5439_vm3, %v1608_v33, %v1550_v53  ;;  %vm5441_vm7 = vmmov %vm5435_vm6 }
 0x8d5   :  { %v1626_v62 = vsel %vm5435_vm6, %v1621_v23, 0.0  ;;  %vm5447_vm3 = vmmov %vm5440_vm11 }
 0x8d6   :  { %2589 = vmatprep.mubr.msk.f32.mxu0 %vm5436_vm14, %v1626_v62  ;;  %vm5443_vm14 = vcmask 523264  }
 0x8d7   :  { %v1566_v54 = vpop.permute.xlu1 %1565  ;;  %vm5444_vm4 = vmmov %vm5443_vm14 }
 0x8d8   :  { %v1618_v51 = vsel %vm5431_vm13, %v1613_v58, %v1566_v54  ;;  %vm5445_vm6 = vmmov %vm5444_vm4  ;;  %vm5448_vm13 = vcmask 261120  }
 0x8d9   :  { %vm5446_vm2 = vmmov %vm5444_vm4 }
 0x8db   :  { %v1582_v43 = vpop.permute.xlu1 %1581 }
 0x8dc   :  { %v1622_v3 = vsel %vm5440_vm11, %v1618_v51, %v1582_v43  ;;  %vm5449_vm11 = vcmask 392192  }
 0x8dd   :  { %v1627_v44 = vsel %vm5441_vm7, %v1622_v3, 0.0  ;;  %vm5450_vm7 = vmmov %vm5447_vm3 }
 0x8de   :  { %2590 = vmatmul.mubr.msk.f32.gmra.mrb[2].mxu0 %vm5442_vm9, %v1627_v44  ;;  %vm5451_vm9 = vmmov %vm5448_vm13 }
 0x99e   :  { %v4524_v20 = vpop.f32.mrb[0].mxu0 }
 0x99f   :  { %v1731_v60 = vmul.f32 %v4524_v20, %v4524_v20  ;;  %v4528_v42 = vpop.f32.mrb[1].mxu0 }
 0x9a0   :  { %v1730_v22 = vmul.f32 %v4528_v42, %v4528_v42 }
 0x9a1   :  { %1740 = vrot.lane.b32.xlu1 %v1731_v60, %s3131_s14 }
 0x9a2   :  { %1738 = vrot.lane.b32.xlu0 %v1730_v22, %s3131_s14 }
 0x9b1   :  { %v4534_v4 = vpop.f32.mrb[2].mxu0 }
 0x9b2   :  { %v1733_v16 = vmul.f32 %v4534_v4, %v4534_v4  ;;  %v4538_v25 = vpop.f32.mrb[3].mxu0 }
 0x9b3   :  { %v1732_v11 = vmul.f32 %v4538_v25, %v4538_v25 }
 0x9b4   :  { %1744 = vrot.lane.b32.xlu1 %v1733_v16, %s3131_s14 }
 0x9b5   :  { %1742 = vrot.lane.b32.xlu0 %v1732_v11, %s3131_s14 }
 0xa13   :  { %v1741_v18 = vpop.permute.xlu1 %1740 }
 0xa14   :  { %v1751_v32 = vsel %vm5443_vm14, %v4524_v20, %v1741_v18  ;;  %v1739_v47 = vpop.permute.xlu0 %1738  ;;  %vm5452_vm14 = vmmov %vm5449_vm11 }
 0xa15   :  { %v1750_v61 = vsel %vm5444_vm4, %v4528_v42, %v1739_v47  ;;  %v1729_v47 = vld [vmem:[%s5039_s9] sm:$0x3]  ;;  %vm5453_vm4 = vcmask 1043456  }
 0xa16   :  { %v1754_v49 = vadd.f32 %v1751_v32, %v1750_v61 }
 0xa26   :  { %v1745_v24 = vpop.permute.xlu1 %1744 }
 0xa27   :  { %v1743_v50 = vpop.permute.xlu0 %1742  ;;  %v1753_v7 = vsel %vm5446_vm2, %v4534_v4, %v1745_v24  ;;  %vm5455_vm2 = vcmask 1046528  }
 0xa28   :  { %v1752_v27 = vsel %vm5445_vm6, %v4538_v25, %v1743_v50  ;;  %vm5454_vm6 = vmmov %vm5453_vm4 }
 0xa29   :  { %v1755_v59 = vadd.f32 %v1754_v49, %v1752_v27 }
 0xa2b   :  { %v1756_v53 = vadd.f32 %v1755_v59, %v1753_v7 }
 0xa2d   :  { %v1757_v63 = vrot.slane %v1756_v53, 4 }
 0xa2f   :  { %v1758_v5 = vadd.f32 %v1757_v63, %v1756_v53 }
 0xa31   :  { %v1759_v23 = vrot.slane %v1758_v5, 2 }
 0xa33   :  { %v1760_v8 = vadd.f32 %v1759_v23, %v1758_v5 }
 0xa35   :  { %v1761_v62 = vrot.slane %v1760_v8, 1 }
 0xa37   :  { %v1762_v54 = vadd.f32 %v1761_v62, %v1760_v8 }
 0xa39   :  { %v1763_v29 = vmul.f32 0.03125, %v1762_v54 }
 0xa3b   :  { %1770 = vrot.lane.b32.xlu1 %v1763_v29, %s3132_s0  ;;  %1766 = vrot.lane.b32.xlu0 %v1763_v29, %s3133_s15 }
 0xa3f   :  { %1774 = vrot.lane.b32.xlu0 %v1763_v29, %s3134_s16 }
 0xaad   :  { %v1767_v33 = vpop.permute.xlu0 %1766  ;;  %v1771_v51 = vpop.permute.xlu1 %1770 }
 0xaae   :  { %v1769_v58 = vadd.f32 %v1767_v33, %v1763_v29 }
 0xab0   :  { %v1773_v43 = vadd.f32 %v1771_v51, %v1769_v58 }
 0xab1   :  { %v1775_v3 = vpop.permute.xlu0 %1774 }
 0xab2   :  { %v1777_v44 = vadd.f32 %v1775_v3, %v1773_v43 }
 0xab4   :  { %v1778_v60 = vmul.f32 0.25, %v1777_v44 }
 0xab6   :  { %v1779_v22 = vmul.f32 %v1778_v60, %v1778_v60 }
 0xab8   :  { %1781 = vrot.lane.b32.xlu1 %v1779_v22, %s3131_s14 }
 0xb2a   :  { %v1782_v16 = vpop.permute.xlu1 %1781 }
 0xb2b   :  { %v1784_v11 = vsub.f32 %v1778_v60, %v1782_v16 }
 0xb2d   :  { %v1785_v18 = vadd.f32 1e-05, %v1784_v11 }
 0xb2f   :  { %3109 = vrsqrt.f32 %v1785_v18 }
 0xb39   :  { %v3110_v32 = vpop.eup %3109 }
 0xb3a   :  { %1788 = vrot.lane.b32.xlu0 %v3110_v32, %s3131_s14 }
 0xbac   :  { %v1789_v61 = vpop.permute.xlu0 %1788 }
 0xbad   :  { %v1791_v49 = vmul.f32 %v1789_v61, %v1729_v47 }
 0xbaf   :  { %v1792_v24 = vmul.f32 %v1791_v49, %v1778_v60  ;;  %1801 = vrot.lane.b32.xlu0 %v1791_v49, %s3135_s19  ;;  %1798 = vrot.lane.b32.xlu1 %v1791_v49, %s3136_s20 }
 0xbb1   :  { %v1794_v50 = vrot.slane %v1792_v24, 7 }
 0xbb3   :  { %v1796_v27 = vsub.f32 %v1729_v47, %v1794_v50  ;;  %1804 = vrot.lane.b32.xlu1 %v1791_v49, %s3137_s21 }
 0xbb5   :  { %1811 = vrot.lane.b32.xlu0 %v1796_v27, %s3136_s20 }
 0xbb7   :  { %1814 = vrot.lane.b32.xlu1 %v1796_v27, %s3135_s19 }
 0xbb9   :  { %1817 = vrot.lane.b32.xlu0 %v1796_v27, %s3137_s21 }
 0xc21   :  { %v1799_v59 = vpop.permute.xlu1 %1798  ;;  %v1802_v7 = vpop.permute.xlu0 %1801 }
 0xc22   :  { %v1807_v53 = vsel %vm5447_vm3, %v1791_v49, %v1799_v59  ;;  %vm5456_vm3 = vcmask 1042432  }
 0xc23   :  { %v1808_v63 = vsel %vm5448_vm13, %v1807_v53, %v1802_v7  ;;  %vm5457_vm13 = vcmask 1044480  }
 0xc25   :  { %v1805_v5 = vpop.permute.xlu1 %1804 }
 0xc26   :  { %v1809_v23 = vsel %vm5449_vm11, %v1808_v63, %v1805_v5  ;;  %vm5458_vm11 = vcmask 1040384  }
 0xc27   :  { %v1812_v8 = vpop.permute.xlu0 %1811  ;;  %v1826_v62 = vrot.slane %v1809_v23, %v5359_v57 }
 0xc28   :  { %v1820_v54 = vsel %vm5450_vm7, %v1796_v27, %v1812_v8  ;;  %vm5459_vm7 = vmmov %vm5457_vm13 }
 0xc29   :  { %v1815_v29 = vpop.permute.xlu1 %1814  ;;  %v1827_v51 = vmul.f32 %v1826_v62, %v4528_v42  ;;  %v1828_v3 = vmul.f32 %v4524_v20, %v1826_v62  ;;  %v1829_v44 = vmul.f32 %v1826_v62, %v4538_v25  ;;  %v1830_v60 = vmul.f32 %v4534_v4, %v1826_v62 }
 0xc2a   :  { %v1821_v33 = vsel %vm5451_vm9, %v1820_v54, %v1815_v29  ;;  %vm5460_vm9 = vmmov %vm5456_vm3 }
 0xc2b   :  { %v1818_v58 = vpop.permute.xlu0 %1817 }
 0xc2c   :  { %v1822_v43 = vsel %vm5452_vm14, %v1821_v33, %v1818_v58  ;;  %vm5461_vm14 = vmmov %vm5455_vm2 }
 0xc2d   :  { %v1834_v22 = vrot.slane %v1822_v43, %v5360_v21 }
 0xc2f   :  { %v1835_v16 = vadd.f32 %v1834_v22, %v1827_v51  ;;  %v1836_v57 = vadd.f32 %v1834_v22, %v1828_v3  ;;  %v1837_v11 = vadd.f32 %v1834_v22, %v1829_v44  ;;  %v1838_v18 = vadd.f32 %v1834_v22, %v1830_v60 }
 0xc31   :  { %v4578_v32 = vmax.f32 %v1835_v16, 0.0  ;;  %v4580_v47 = vmax.f32 %v1836_v57, 0.0  ;;  %v4582_v61 = vmax.f32 %v1837_v11, 0.0  ;;  %v4584_v42 = vmax.f32 %v1838_v18, 0.0 }
 0xc33   :  { %v1871_v20 = vrot.slane %v4578_v32, 4  ;;  %v1873_v25 = vrot.slane %v4580_v47, 4  ;;  %v1959_v4 = vrot.slane %v4578_v32, 1  ;;  %v1960_v21 = vrot.slane %v4580_v47, 1 }
 0xc34   :  { %v1911_v49 = vrot.slane %v4578_v32, 5  ;;  %v5171_v24 = vrot.slane %v4578_v32, 3  ;;  %v1849_v50 = vrot.slane %v4580_v47, 3  ;;  %v1935_v27 = vrot.slane %v4578_v32, 7 }
 0xc35   :  { %v1872_v59 = vsel %vm5453_vm4, %v5361_v48, %v1871_v20  ;;  %v1874_v7 = vsel %vm5454_vm6, %v1871_v20, %v1873_v25  ;;  %v1961_v53 = vsel %vm5455_vm2, %v1959_v4, %v1960_v21  ;;  %v1851_v63 = vrot.slane %v4582_v61, 3  ;;  %vm5462_vm6 = vmmov %vm5458_vm11 }
 0xc36   :  { %v2905_v5 = vpack.i.bf16 %v1874_v7, %v1872_v59  ;;  %v2900_v23 = vpack.i.bf16 %v1961_v53, %v1872_v59  ;;  %v1912_v8 = vsel %vm5456_vm3, %v3336_v28, %v1911_v49  ;;  %v4604_v62 = vsel %vm5457_vm13, %v5171_v24, %v1849_v50  ;;  %vm5463_vm3 = vmmov %vm5453_vm4 }
 0xc37   :  { %v2910_v54 = vpack.i.bf16 %v1874_v7, %v1912_v8  ;;  %v4608_v29 = vsel %vm5458_vm11, %v5367_v19, %v1935_v27  ;;  %v4611_v33 = vsel %vm5459_vm7, %v1849_v50, %v1851_v63  ;;  %v1913_v58 = vrot.slane %v4580_v47, 5  ;;  %vm5464_vm13 = vmmov %vm5460_vm9 }
 0xc38   :  { %2906 = vrot.lane.b32.xlu0 %v2905_v5, %s3134_s16  ;;  %2901 = vrot.lane.b32.xlu1 %v2900_v23, %s3132_s0  ;;  %v2915_v51 = vpack.i.bf16 %v4608_v29, %v4604_v62  ;;  %v2920_v43 = vpack.i.bf16 %v4611_v33, %v1874_v7  ;;  %v1962_v3 = vrot.slane %v4582_v61, 1  ;;  %v1875_v44 = vrot.slane %v4582_v61, 4  ;;  %vm5465_vm11 = vmmov %vm5459_vm7 }
 0xc39   :  { %v1914_v19 = vsel %vm5460_vm9, %v1911_v49, %v1913_v58  ;;  %v1937_v60 = vrot.slane %v4580_v47, 7  ;;  %v1964_v22 = vrot.slane %v4584_v42, 1  ;;  %v1877_v16 = vrot.slane %v4584_v42, 4  ;;  %vm5466_vm9 = vmmov %vm5462_vm6 }
 0xc3a   :  { %v1963_v57 = vsel %vm5461_vm14, %v1960_v21, %v1962_v3  ;;  %v1876_v11 = vsel %vm5453_vm4, %v1873_v25, %v1875_v44  ;;  %v1915_v18 = vrot.slane %v4582_v61, 5  ;;  %v1853_v20 = vrot.slane %v4584_v42, 3  ;;  %vm5467_vm14 = vmmov %vm5455_vm2 }
 0xc3b   :  { %v2925_v4 = vpack.i.bf16 %v1914_v19, %v1963_v57  ;;  %v4630_v50 = vsel %vm5462_vm6, %v1935_v27, %v1937_v60  ;;  %v1965_v49 = vsel %vm5455_vm2, %v1962_v3, %v1964_v22  ;;  %v1878_v59 = vsel %vm5463_vm3, %v1875_v44, %v1877_v16  ;;  %vm5468_vm4 = vmmov %vm5464_vm13 }
 0xc3c   :  { %2911 = vrot.lane.b32.xlu1 %v2910_v54, %s3132_s0  ;;  %2916 = vrot.lane.b32.xlu0 %v2915_v51, %s3133_s15  ;;  %v2930_v21 = vpack.i.bf16 %v1876_v11, %v4630_v50  ;;  %v2935_v5 = vpack.i.bf16 %v1965_v49, %v1876_v11  ;;  %v2940_v25 = vpack.i.bf16 %v1878_v59, %v1876_v11  ;;  %v1939_v23 = vrot.slane %v4582_v61, 7  ;;  %vm5469_vm6 = vmmov %vm5463_vm3 }
 0xc3d   :  { %v1916_v8 = vsel %vm5464_vm13, %v1913_v58, %v1915_v18  ;;  %v1854_v24 = vsel %vm5465_vm11, %v1851_v63, %v1853_v20  ;;  %v2007_v27 = vsel %vm5459_vm7, %v1853_v20, %v3340_v30  ;;  %v1917_v3 = vrot.slane %v4584_v42, 5  ;;  %vm5470_vm2 = vmmov %vm5466_vm9 }
 0xc3e   :  { %v2945_v44 = vpack.i.bf16 %v1878_v59, %v1916_v8  ;;  %v1940_v54 = vsel %vm5466_vm9, %v1937_v60, %v1939_v23  ;;  %v2955_v2 = vpack.i.bf16 %v2007_v27, %v1878_v59  ;;  %v1966_v51 = vsel %vm5467_vm14, %v1964_v22, %v5396_v36 }
 0xc3f   :  { %v2950_v40 = vpack.i.bf16 %v1940_v54, %v1854_v24  ;;  %v1918_v39 = vsel %vm5468_vm4, %v1915_v18, %v1917_v3  ;;  %v1941_v37 = vrot.slane %v4584_v42, 7  ;;  %v2024_v63 = vsel %vm5469_vm6, %v1877_v16, %v5361_v48 }
 0xc40   :  { %2921 = vrot.lane.b32.xlu1 %v2920_v43, %s3133_s15  ;;  %2926 = vrot.lane.b32.xlu0 %v2925_v4, %s3132_s0  ;;  %v2960_v58 = vpack.i.bf16 %v1918_v39, %v1966_v51  ;;  %v2970_v60 = vpack.i.bf16 %v4580_v47, %v4578_v32  ;;  %v1971_v20 = vsel %vm5375_vm5, %v1961_v53, 0.0  ;;  %v2980_v22 = vpack.i.bf16 %v4604_v62, %v4630_v50 }
 0xc41   :  { %v1942_v36 = vsel %vm5470_vm2, %v1939_v23, %v1941_v37  ;;  %v2985_v18 = vpack.i.bf16 %v4611_v33, %v1940_v54  ;;  %v2054_v43 = vsel %vm5390_vm12, %v1914_v19, 0.0  ;;  %v2029_v16 = vsel %vm5388_vm10, %v1874_v7, 0.0  ;;  %v2301_v23 = vld [vmem:[%s5040_s10 + $0x18] sm:$0xff] }
 0xc42   :  { %v2965_v27 = vpack.i.bf16 %v2024_v63, %v1942_v36  ;;  %v2990_v48 = vpack.i.bf16 %v1854_v24, %v1942_v36  ;;  %v3000_v4 = vpack.i.bf16 %v1971_v20, %v2054_v43  ;;  %v2995_v15 = vpack.i.bf16 %v4578_v32, %v2029_v16  ;;  %v2321_v20 = vld [vmem:[%s5040_s10 + $0xb8] sm:$0xff]  ;;  %v2304_v36 = vld [vmem:[%s5040_s10 + $0x30] sm:$0xff]  ;;  %v2323_v43 = vld [vmem:[%s5040_s10 + $0xc8] sm:$0xff] }
 0xc43   :  { %v2030_v53 = vsel %vm5389_vm0, %v1876_v11, 0.0  ;;  %v2055_v37 = vsel %vm5391_vm1, %v1916_v8, 0.0  ;;  %v1973_v7 = vsel %vm5394_vm8, %v1965_v49, 0.0  ;;  %v2056_v62 = vsel %vm5403_vm15, %v1918_v39, 0.0  ;;  %vm5475_vm15 = vmmov %vm5468_vm4  ;;  %v2318_v8 = vld [vmem:[%s5040_s10 + $0xa0] sm:$0xff] }
 0xc44   :  { %2931 = vrot.lane.b32.xlu1 %v2930_v21, %s3133_s15  ;;  %2936 = vrot.lane.b32.xlu0 %v2935_v5, %s3132_s0  ;;  %v3010_v24 = vpack.i.bf16 %v4580_v47, %v2030_v53  ;;  %v3005_v45 = vpack.i.bf16 %v2055_v37, %v4582_v61  ;;  %v3025_v33 = vpack.i.bf16 %v1973_v7, %v2056_v62  ;;  %v2306_v16 = vld [vmem:[%s5040_s10 + $0x40] sm:$0xff] }
 0xc45   :  { %vm5471_vm12 = vnez %v5215_v31  ;;  %vm5472_vm1 = vnez %v5198_v35  ;;  %vm5473_vm3 = vnez %v5405_v6  ;;  %vm5474_vm13 = vnez %v5225_v56  ;;  %v2313_v31 = vld [vmem:[%s5040_s10 + $0x78] sm:$0xff] }
 0xc46   :  { %v1972_v19 = vsel %vm5471_vm12, %v1963_v57, 0.0  ;;  %v2031_v17 = vsel %vm5472_vm1, %v1878_v59, 0.0  ;;  %v2032_v11 = vsel %vm5473_vm3, %v2024_v63, 0.0  ;;  %v1974_v10 = vsel %vm5474_vm13, %v1966_v51, 0.0  ;;  %v2302_v51 = vld [vmem:[%s5040_s10 + $0x20] sm:$0xff]  ;;  %v2303_v63 = vld [vmem:[%s5040_s10 + $0x28] sm:$0xff] }
 0xc47   :  { %v3015_v47 = vpack.i.bf16 %v4584_v42, %v1972_v19  ;;  %v3020_v50 = vpack.i.bf16 %v4582_v61, %v2031_v17  ;;  %v4686_v21 = vpack.i.bf16 %v4584_v42, %v2032_v11  ;;  %v2049_v39 = vsel %vm5475_vm15, %v1917_v3, %v3336_v28  ;;  %v2319_v3 = vld [vmem:[%s5040_s10 + $0xa8] sm:$0xff]  ;;  %v2324_v11 = vld [vmem:[%s5040_s10 + $0xd0] sm:$0xff] }
 0xc48   :  { %2941 = vrot.lane.b32.xlu1 %v2940_v25, %s3134_s16  ;;  %2946 = vrot.lane.b32.xlu0 %v2945_v44, %s3132_s0  ;;  %vm5476_vm11 = vnez %v5408_v1  ;;  %v5477_v61 = vrot.slane %v4578_v32, 3  ;;  %v2299_v1 = vld [vmem:[%s5040_s10 + $0x8] sm:$0xff]  ;;  %v2316_v32 = vld [vmem:[%s5040_s10 + $0x90] sm:$0xff]  ;;  %v2652_v54 = vpack.c.bf16 %v2319_v3, %v2318_v8  ;;  %vm5478_vm9 = vnez %v5235_v12 }
 0xc49   :  { %v2057_v57 = vsel %vm5476_vm11, %v2049_v39, 0.0  ;;  %v2300_v25 = vld [vmem:[%s5040_s10 + $0x10] sm:$0xff]  ;;  %vm5479_vm14 = vnez %v5233_v13  ;;  %v2310_v13 = vld [vmem:[%s5040_s10 + $0x60] sm:$0xff]  ;;  %vm5480_vm4 = vnez %v5239_v46  ;;  %vm5481_vm6 = vnez %v5242_v41 }
 0xc4a   :  { %v4696_v49 = vpack.i.bf16 %v1974_v10, %v2057_v57  ;;  %v1848_v42 = vsel %vm5459_vm7, %v3340_v30, %v5477_v61  ;;  %v2314_v30 = vld [vmem:[%s5040_s10 + $0x80] sm:$0xff]  ;;  %v2650_v44 = vpack.c.bf16 %v2301_v23, %v2300_v25  ;;  %v2308_v61 = vld [vmem:[%s5040_s10 + $0x50] sm:$0xff]  ;;  %v2327_v23 = vld [vmem:[%s5040_s10 + $0xe8] sm:$0xff]  ;;  %vm5483_vm2 = vnez %v5247_v26 }
 0xc4b   :  { %v2975_v28 = vpack.i.bf16 %v1848_v42, %v4608_v29  ;;  %v2317_v29 = vld [vmem:[%s5040_s10 + $0x98] sm:$0xff]  ;;  %v2326_v25 = vld [vmem:[%s5040_s10 + $0xe0] sm:$0xff]  ;;  %v2312_v41 = vld [vmem:[%s5040_s10 + $0x70] sm:$0xff]  ;;  %vm5485_vm15 = vnez %v5251_v14 }
 0xc4c   :  { %2951 = vrot.lane.b32.xlu1 %v2950_v40, %s3133_s15  ;;  %2956 = vrot.lane.b32.xlu0 %v2955_v2, %s3133_s15  ;;  %v2315_v40 = vld [vmem:[%s5040_s10 + $0x88] sm:$0xff]  ;;  %v2648_v5 = vpack.c.bf16 %v2317_v29, %v2316_v32  ;;  %v2309_v42 = vld [vmem:[%s5040_s10 + $0x58] sm:$0xff] }
 0xc4d   :  { %v2644_v2 = vpack.c.bf16 %v2315_v40, %v2314_v30  ;;  %v2666_v40 = vpack.c.bf16 %v2309_v42, %v2308_v61 }
 0xc4f   :  { %2645 = vmatprep.subr.bf16.mxu0 %v2644_v2 }
 0xc50   :  { %2961 = vrot.lane.b32.xlu1 %v2960_v58, %s3132_s0  ;;  %2966 = vrot.lane.b32.xlu0 %v2965_v27, %s3133_s15  ;;  %v2654_v58 = vpack.c.bf16 %v2303_v63, %v2302_v51  ;;  %v2668_v51 = vpack.c.bf16 %v2327_v23, %v2326_v25 }
 0xc54   :  { %2971 = vrot.lane.b32.xlu0 %v2970_v60, %s3133_s15  ;;  %2976 = vrot.lane.b32.xlu1 %v2975_v28, %s3134_s16  ;;  %v2320_v60 = vld [vmem:[%s5040_s10 + $0xb0] sm:$0xff] }
 0xc58   :  { %2981 = vrot.lane.b32.xlu0 %v2980_v22, %s3134_s16  ;;  %2991 = vrot.lane.b32.xlu1 %v2990_v48, %s3134_s16  ;;  %v2656_v22 = vpack.c.bf16 %v2321_v20, %v2320_v60  ;;  %v2322_v48 = vld [vmem:[%s5040_s10 + $0xc0] sm:$0xff]  ;;  %v2328_v20 = vld [vmem:[%s5040_s10 + $0xf0] sm:$0xff] }
 0xc59   :  { %v2660_v37 = vpack.c.bf16 %v2323_v43, %v2322_v48 }
 0xc5c   :  { %2986 = vrot.lane.b32.xlu0 %v2985_v18, %s3134_s16  ;;  %3001 = vrot.lane.b32.xlu1 %v3000_v4, %s3133_s15  ;;  %v2305_v18 = vld [vmem:[%s5040_s10 + $0x38] sm:$0xff] }
 0xc5d   :  { %v2658_v27 = vpack.c.bf16 %v2305_v18, %v2304_v36  ;;  %v2329_v36 = vld [vmem:[%s5040_s10 + $0xf8] sm:$0xff] }
 0xc5e   :  { %v2672_v34 = vpack.c.bf16 %v2329_v36, %v2328_v20  ;;  %v5494_v20 = vld [vmem:[#allocation11_spill] sm:$0xff] }
 0xc5f   :  { %vm5495_vm7 = vnez %v5494_v20 }
 0xc60   :  { %2996 = vrot.lane.b32.xlu0 %v2995_v15, %s3134_s16  ;;  %3011 = vrot.lane.b32.xlu1 %v3010_v24, %s3134_s16  ;;  %v2298_v15 = vld [vmem:[%s5040_s10] sm:$0xff]  ;;  %v2307_v24 = vld [vmem:[%s5040_s10 + $0x48] sm:$0xff] }
 0xc61   :  { %v2646_v59 = vpack.c.bf16 %v2299_v1, %v2298_v15  ;;  %v2662_v62 = vpack.c.bf16 %v2307_v24, %v2306_v16 }
 0xc63   :  { %2647 = vmatpush3.bf16.msra.mxu0 %v2646_v59 }
 0xc64   :  { %3006 = vrot.lane.b32.xlu0 %v3005_v45, %s3133_s15  ;;  %3026 = vrot.lane.b32.xlu1 %v3025_v33, %s3133_s15 }
 0xc65   :  { %2649 = vmatprep.subr.bf16.mxu0 %v2648_v5 }
 0xc67   :  { %2651 = vmatpush3.bf16.msra.mxu0 %v2650_v44 }
 0xc68   :  { %3016 = vrot.lane.b32.xlu0 %v3015_v47, %s3133_s15  ;;  %2653 = vmatprep.subr.bf16.mxu0 %v2652_v54  ;;  %v2325_v47 = vld [vmem:[%s5040_s10 + $0xd8] sm:$0xff]  ;;  %v2311_v54 = vld [vmem:[%s5040_s10 + $0x68] sm:$0xff] }
 0xc69   :  { %v2664_v57 = vpack.c.bf16 %v2325_v47, %v2324_v11  ;;  %v2670_v63 = vpack.c.bf16 %v2311_v54, %v2310_v13 }
 0xc6b   :  { %2655 = vmatpush3.bf16.msra.mxu0 %v2654_v58 }
 0xc6c   :  { %3021 = vrot.lane.b32.xlu0 %v3020_v50, %s3134_s16  ;;  %2657 = vmatprep.subr.bf16.mxu0 %v2656_v22 }
 0xc6f   :  { %2659 = vmatpush3.bf16.msra.mxu0 %v2658_v27 }
 0xc70   :  { %2661 = vmatprep.subr.bf16.mxu0 %v2660_v37  ;;  %v2674_v37 = vpack.c.bf16 %v2313_v31, %v2312_v41 }
 0xc73   :  { %2663 = vmatpush3.bf16.msra.mxu0 %v2662_v62 }
 0xc74   :  { %2665 = vmatprep.subr.bf16.mxu0 %v2664_v57  ;;  %v5486_v57 = vld [vmem:[#allocation15_spill] sm:$0xff] }
 0xc75   :  { %vm5487_vm11 = vnez %v5486_v57 }
 0xc77   :  { %2667 = vmatpush3.bf16.msra.mxu0 %v2666_v40 }
 0xc78   :  { %2669 = vmatprep.subr.bf16.mxu0 %v2668_v51 }
 0xc7b   :  { %2671 = vmatpush3.bf16.msra.mxu0 %v2670_v63  ;;  %v5492_v63 = vld [vmem:[#allocation18_spill] sm:$0xff] }
 0xc7c   :  { %2673 = vmatprep.subr.bf16.mxu0 %v2672_v34  ;;  %v5500_v34 = vld [vmem:[#allocation21_spill] sm:$0xff] }
 0xc7f   :  { %2675 = vmatpush3.bf16.msra.mxu0 %v2674_v37  ;;  %v5502_v37 = vld [vmem:[#allocation6_spill] sm:$0xff] }
 0xcaa   :  { %v2907_v4 = vpop.permute.xlu0 %2906  ;;  %v2902_v53 = vpop.permute.xlu1 %2901 }
 0xcab   :  { %v2909_v45 = vunpack.i.h.bf16 %v2907_v4  ;;  %v2908_v7 = vunpack.i.l.bf16 %v2907_v4  ;;  %v2903_v17 = vunpack.i.l.bf16 %v2902_v53  ;;  %v2904_v15 = vunpack.i.h.bf16 %v2902_v53 }
 0xcad   :  { %v1908_v33 = vsel %vm5478_vm9, %v2909_v45, 0.0  ;;  %v1907_v19 = vsel %vm5479_vm14, %v2908_v7, 0.0  ;;  %v1891_v2 = vsel %vm5479_vm14, %v2903_v17, 0.0  ;;  %v2003_v58 = vsel %vm5375_vm5, %v2904_v15, 0.0 }
 0xcae   :  { %v3035_v50 = vpack.i.bf16 %v1908_v33, %v1907_v19  ;;  %v2912_v10 = vpop.permute.xlu1 %2911  ;;  %v2917_v39 = vpop.permute.xlu0 %2916  ;;  %vm5482_vm5 = vnez %v5245_v52 }
 0xcaf   :  { %v2914_v28 = vunpack.i.h.bf16 %v2912_v10  ;;  %v2913_v30 = vunpack.i.l.bf16 %v2912_v10  ;;  %v2919_v29 = vunpack.i.h.bf16 %v2917_v39  ;;  %v2918_v8 = vunpack.i.l.bf16 %v2917_v39 }
 0xcb0   :  { %3036 = vrot.lane.b32.xlu0 %v3035_v50, %s3135_s19 }
 0xcb1   :  { %v1892_v1 = vsel %vm5478_vm9, %v2914_v28, 0.0  ;;  %v1931_v12 = vsel %vm5480_vm4, %v2913_v30, 0.0  ;;  %v1955_v43 = vsel %vm5482_vm5, %v2919_v29, 0.0  ;;  %v2020_v16 = vsel %vm5483_vm2, %v2918_v8, 0.0 }
 0xcb2   :  { %v3030_v32 = vpack.i.bf16 %v1892_v1, %v1891_v2  ;;  %v2922_v59 = vpop.permute.xlu1 %2921  ;;  %v2927_v5 = vpop.permute.xlu0 %2926  ;;  %v3040_v22 = vpack.i.bf16 %v1931_v12, %v2003_v58  ;;  %v3045_v7 = vpack.i.bf16 %v1955_v43, %v2020_v16  ;;  %v5490_v1 = vld [vmem:[#allocation17_spill] sm:$0xff]  ;;  %vm5501_vm4 = vnez %v5500_v34 }
 0xcb3   :  { %v2929_v3 = vunpack.i.h.bf16 %v2927_v5  ;;  %v2928_v44 = vunpack.i.l.bf16 %v2927_v5  ;;  %v2923_v53 = vunpack.i.l.bf16 %v2922_v59  ;;  %v2924_v11 = vunpack.i.h.bf16 %v2922_v59 }
 0xcb4   :  { %3031 = vrot.lane.b32.xlu1 %v3030_v32, %s3136_s20 }
 0xcb5   :  { %v1932_v60 = vsel %vm5481_vm6, %v2929_v3, 0.0  ;;  %v2004_v46 = vsel %vm5471_vm12, %v2928_v44, 0.0  ;;  %v2045_v47 = vsel %vm5388_vm10, %v2923_v53, 0.0  ;;  %vm5484_vm12 = vnez %v5258_v55 }
 0xcb6   :  { %v3055_v18 = vpack.i.bf16 %v1932_v60, %v2004_v46  ;;  %v2932_v27 = vpop.permute.xlu1 %2931  ;;  %v2937_v48 = vpop.permute.xlu0 %2936  ;;  %vm5489_vm10 = vnez %v5488_v9  ;;  %vm5507_vm6 = vcmask 261120  }
 0xcb7   :  { %v2934_v4 = vunpack.i.h.bf16 %v2932_v27  ;;  %v2933_v24 = vunpack.i.l.bf16 %v2932_v27  ;;  %v2938_v45 = vunpack.i.l.bf16 %v2937_v48  ;;  %v2939_v10 = vunpack.i.h.bf16 %v2937_v48  ;;  %v5498_v27 = vld [vmem:[#allocation19_spill] sm:$0xff] }
 0xcb8   :  { %3056 = vrot.lane.b32.xlu0 %v3055_v18, %s3137_s21  ;;  %3041 = vrot.lane.b32.xlu1 %v3040_v22, %s3137_s21  ;;  %v5496_v22 = vld [vmem:[#allocation20_spill] sm:$0xff]  ;;  %vm5499_vm14 = vnez %v5498_v27 }
 0xcb9   :  { %v2046_v19 = vsel %vm5389_vm0, %v2934_v4, 0.0  ;;  %v1956_v50 = vsel %vm5484_vm12, %v2933_v24, 0.0  ;;  %v1893_v39 = vsel %vm5485_vm15, %v2938_v45, 0.0  ;;  %vm5491_vm0 = vnez %v5490_v1 }
 0xcba   :  { %v2942_v62 = vpop.permute.xlu1 %2941  ;;  %v2947_v33 = vpop.permute.xlu0 %2946  ;;  %v3050_v61 = vpack.i.bf16 %v2046_v19, %v2045_v47  ;;  %v2021_v32 = vsel %vm5491_vm0, %v2924_v11, 0.0  ;;  %v2005_v59 = vsel %vm5394_vm8, %v2939_v10, 0.0  ;;  %vm5493_vm8 = vnez %v5492_v63 }
 0xcbb   :  { %v2949_v17 = vunpack.i.h.bf16 %v2947_v33  ;;  %v2948_v26 = vunpack.i.l.bf16 %v2947_v33  ;;  %v2944_v42 = vunpack.i.h.bf16 %v2942_v62  ;;  %v2943_v28 = vunpack.i.l.bf16 %v2942_v62 }
 0xcbc   :  { %3046 = vrot.lane.b32.xlu1 %v3045_v7, %s3131_s14  ;;  %v3060_v29 = vpack.i.bf16 %v1956_v50, %v2021_v32  ;;  %vm5497_vm9 = vnez %v5496_v22 }
 0xcbd   :  { %v1894_v0 = vsel %vm5487_vm11, %v2949_v17, 0.0  ;;  %v1933_v2 = vsel %vm5489_vm10, %v2948_v26, 0.0  ;;  %v1910_v5 = vsel %vm5487_vm11, %v2944_v42, 0.0  ;;  %v1909_v25 = vsel %vm5485_vm15, %v2943_v28, 0.0  ;;  %v5503_v28 = vld [vmem:[#allocation22_spill] sm:$0xff] }
 0xcbe   :  { %v3065_v30 = vpack.i.bf16 %v1894_v0, %v1893_v39  ;;  %v2952_v40 = vpop.permute.xlu1 %2951  ;;  %v2957_v15 = vpop.permute.xlu0 %2956  ;;  %v3075_v23 = vpack.i.bf16 %v1933_v2, %v2005_v59  ;;  %v3070_v60 = vpack.i.bf16 %v1910_v5, %v1909_v25  ;;  %vm5510_vm15 = vcmask 392192  }
 0xcbf   :  { %v2954_v13 = vunpack.i.h.bf16 %v2952_v40  ;;  %v2953_v3 = vunpack.i.l.bf16 %v2952_v40  ;;  %v2959_v38 = vunpack.i.h.bf16 %v2957_v15  ;;  %v2958_v43 = vunpack.i.l.bf16 %v2957_v15  ;;  %vm5511_vm11 = vmmov %vm5510_vm15 }
 0xcc0   :  { %3066 = vrot.lane.b32.xlu0 %v3065_v30, %s3136_s20  ;;  %3051 = vrot.lane.b32.xlu1 %v3050_v61, %s3132_s0 }
 0xcc1   :  { %v1957_v36 = vsel %vm5495_vm7, %v2954_v13, 0.0  ;;  %v2022_v18 = vsel %vm5497_vm9, %v2953_v3, 0.0  ;;  %v2023_v41 = vsel %vm5501_vm4, %v2959_v38, 0.0  ;;  %v2047_v53 = vsel %vm5472_vm1, %v2958_v43, 0.0 }
 0xcc2   :  { %v2962_v12 = vpop.permute.xlu1 %2961  ;;  %v2967_v8 = vpop.permute.xlu0 %2966  ;;  %v3080_v56 = vpack.i.bf16 %v1957_v36, %v2022_v18  ;;  %vm5504_vm1 = vnez %v5503_v28  ;;  %v5525_v28 = vld [vmem:[#allocation24_spill] sm:$0xff] }
 0xcc3   :  { %v2964_v44 = vunpack.i.h.bf16 %v2962_v12  ;;  %v2963_v54 = vunpack.i.l.bf16 %v2962_v12  ;;  %v2968_v51 = vunpack.i.l.bf16 %v2967_v8  ;;  %v2969_v16 = vunpack.i.h.bf16 %v2967_v8 }
 0xcc4   :  { %3076 = vrot.lane.b32.xlu0 %v3075_v23, %s3137_s21  ;;  %3061 = vrot.lane.b32.xlu1 %v3060_v29, %s3131_s14 }
 0xcc5   :  { %v1934_v58 = vsel %vm5493_vm8, %v2964_v44, 0.0  ;;  %v2006_v14 = vsel %vm5474_vm13, %v2963_v54, 0.0  ;;  %v1958_v48 = vsel %vm5499_vm14, %v2968_v51, 0.0  ;;  %v2048_v4 = vsel %vm5473_vm3, %v2969_v16, 0.0 }
 0xcc6   :  { %v3090_v46 = vpack.i.bf16 %v1934_v58, %v2006_v14  ;;  %v3095_v31 = vpack.i.bf16 %v1958_v48, %v2023_v41  ;;  %v2972_v24 = vpop.permute.xlu0 %2971  ;;  %v2977_v7 = vpop.permute.xlu1 %2976  ;;  %vm5505_vm3 = vcmask 130048   ;;  %v5514_v58 = vld [vmem:[#allocation23_spill] sm:$0xff]  ;;  %vm5516_vm8 = vcmask 654336  }
 0xcc7   :  { %v2973_v50 = vunpack.i.l.bf16 %v2972_v24  ;;  %v2979_v10 = vunpack.i.h.bf16 %v2977_v7  ;;  %vm5506_vm13 = vmmov %vm5505_vm3  ;;  %v2974_v29 = vunpack.i.h.bf16 %v2972_v24  ;;  %vm5515_vm0 = vnez %v5514_v58 }
 0xcc8   :  { %3091 = vrot.lane.b32.xlu0 %v3090_v46, %s3137_s21  ;;  %3071 = vrot.lane.b32.xlu1 %v3070_v60, %s3135_s19  ;;  %vm5509_vm2 = vmmov %vm5505_vm3  ;;  %s3119_s19 = scalar_lea.hbm %s5043_s13, 16 }
 0xcc9   :  { %v1867_v30 = vsel %vm5504_vm1, %v2979_v10, 0.0  ;;  %vm5518_vm4 = vmmov %vm5509_vm2  ;;  %p3120_p0 = scmp.ne.s32.totalorder %s5043_s13, %s3119_s19  ;;  %p3123_p1 = scmp.lt.u32.totalorder %s3119_s19, %s5043_s13 }
 0xcca   :  { %v2982_v45 = vpop.permute.xlu0 %2981  ;;  %v4893_v62 = vpop.permute.xlu1 %2991  ;;  %vm5519_vm1 = vmmov %vm5516_vm8 }
 0xccb   :  { %v2983_v0 = vunpack.i.l.bf16 %v2982_v45  ;;  %v2984_v59 = vunpack.i.h.bf16 %v2982_v45  ;;  %v2994_v51 = vunpack.i.h.bf16 %v4893_v62  ;;  %v2993_v60 = vunpack.i.l.bf16 %v4893_v62  ;;  %p3125_p2 = pnand %p3123_p1, %p3120_p0 }
 0xccc   :  { %3096 = vrot.lane.b32.xlu0 %v3095_v31, %s3131_s14  ;;  %3081 = vrot.lane.b32.xlu1 %v3080_v56, %s3131_s14 }
 0xccd   :  { %v1988_v1 = vsel %vm5484_vm12, %v2983_v0, 0.0  ;;  %vm5512_vm12 = vcmask 523264   ;;  %v1868_v14 = vsel %vm5515_vm0, %v2984_v59, 0.0  ;;  %vm5529_vm0 = vcmask 523264  }
 0xcce   :  { %v4891_v6 = vpop.permute.xlu0 %2986  ;;  %v4895_v33 = vpop.permute.xlu1 %3001  ;;  %v2271_v3 = vsel %vm5509_vm2, %v1988_v1, %v2974_v29  ;;  %vm5513_vm10 = vmmov %vm5512_vm12 }
 0xccf   :  { %v3003_v34 = vunpack.i.l.bf16 %v4895_v33 }
 0xcd0   :  { %2220 = vrot.lane.b32.xlu0 %v2048_v4, %s3132_s0  ;;  %2218 = vrot.lane.b32.xlu1 %v2047_v53, %s3132_s0  ;;  %v2989_v53 = vunpack.i.h.bf16 %v4891_v6 }
 0xcd2   :  { %v2997_v35 = vpop.permute.xlu0 %2996  ;;  %v4899_v17 = vpop.permute.xlu1 %3011 }
 0xcd3   :  { %v2999_v44 = vunpack.i.h.bf16 %v2997_v35  ;;  %v2998_v46 = vunpack.i.l.bf16 %v2997_v35  ;;  %v3014_v62 = vunpack.i.h.bf16 %v4899_v17  ;;  %v3013_v0 = vunpack.i.l.bf16 %v4899_v17 }
 0xcd4   :  { %3086 = vrot.lane.b32.xlu1 %v4686_v21, %s3134_s16 }
 0xcd6   :  { %v4897_v19 = vpop.permute.xlu0 %3006  ;;  %v4903_v26 = vpop.permute.xlu1 %3026 }
 0xcd7   :  { %v3008_v35 = vunpack.i.l.bf16 %v4897_v19  ;;  %v3009_v59 = vunpack.i.h.bf16 %v4897_v19 }
 0xcd8   :  { %3101 = vrot.lane.b32.xlu1 %v4696_v49, %s3133_s15  ;;  %v2978_v49 = vunpack.i.l.bf16 %v2977_v7  ;;  %v2988_v7 = vunpack.i.l.bf16 %v4891_v6 }
 0xcda   :  { %v4901_v21 = vpop.permute.xlu0 %3016  ;;  %v1987_v39 = vsel %vm5482_vm5, %v2978_v49, 0.0  ;;  %vm5508_vm5 = vmmov %vm5507_vm6  ;;  %v1989_v17 = vsel %vm5495_vm7, %v2988_v7, 0.0 }
 0xcdb   :  { %v2270_v40 = vsel %vm5505_vm3, %v1987_v39, %v2973_v50  ;;  %vm5517_vm9 = vmmov %vm5508_vm5  ;;  %vm5520_vm3 = vcmask 785408  }
 0xcdc   :  { %v2274_v52 = vsel %vm5507_vm6, %v2270_v40, %v2973_v50  ;;  %v2275_v48 = vsel %vm5517_vm9, %v2271_v3, %v2974_v29  ;;  %vm5522_vm6 = vcmask 916480   ;;  %v5527_v40 = vld [vmem:[#allocation25_spill] sm:$0xff]  ;;  %vm5531_vm9 = vmmov %vm5519_vm1 }
 0xcdd   :  { %vm5523_vm2 = vmmov %vm5522_vm6 }
 0xcde   :  { %v4905_v11 = vpop.permute.xlu0 %3021 }
 0xcef   :  { %1346 = vadd.xlane.f32.xlu0 %v5502_v37  ;;  %v3004_v37 = vunpack.i.h.bf16 %v4895_v33 }
 0xd22   :  { %v3037_v61 = vpop.permute.xlu0 %3036 }
 0xd23   :  { %v3038_v32 = vunpack.i.l.bf16 %v3037_v61  ;;  %v3039_v24 = vunpack.i.h.bf16 %v3037_v61 }
 0xd26   :  { %v3032_v47 = vpop.permute.xlu1 %3031 }
 0xd27   :  { %v3033_v57 = vunpack.i.l.bf16 %v3032_v47  ;;  %v3034_v23 = vunpack.i.h.bf16 %v3032_v47 }
 0xd29   :  { %v2242_v15 = vsel %vm5506_vm13, %v1867_v30, %v3033_v57  ;;  %v2243_v41 = vsel %vm5518_vm4, %v1868_v14, %v3034_v23  ;;  %vm5521_vm13 = vmmov %vm5520_vm3 }
 0xd2a   :  { %v3042_v42 = vpop.permute.xlu1 %3041  ;;  %v3057_v5 = vpop.permute.xlu0 %3056  ;;  %v2246_v13 = vsel %vm5508_vm5, %v2242_v15, %v3038_v32  ;;  %v2247_v10 = vsel %vm5508_vm5, %v2243_v41, %v3039_v24  ;;  %vm5532_vm4 = vmmov %vm5519_vm1 }
 0xd2b   :  { %v3044_v9 = vunpack.i.h.bf16 %v3042_v42  ;;  %v3043_v2 = vunpack.i.l.bf16 %v3042_v42  ;;  %v3059_v31 = vunpack.i.h.bf16 %v3057_v5  ;;  %v3058_v43 = vunpack.i.l.bf16 %v3057_v5  ;;  %vm5535_vm7 = vmmov %vm5521_vm13 }
 0xd2d   :  { %v2250_v54 = vsel %vm5510_vm15, %v2246_v13, %v3044_v9  ;;  %v2278_v55 = vsel %vm5511_vm11, %v2274_v52, %v3043_v2  ;;  %vm5524_vm15 = vmmov %vm5511_vm11  ;;  %v2279_v6 = vsel %vm5511_vm11, %v2275_v48, %v3058_v43 }
 0xd2e   :  { %v3047_v25 = vpop.permute.xlu1 %3046  ;;  %v2251_v61 = vsel %vm5524_vm15, %v2247_v10, %v3059_v31 }
 0xd2f   :  { %v3049_v12 = vunpack.i.h.bf16 %v3047_v25  ;;  %v3048_v8 = vunpack.i.l.bf16 %v3047_v25  ;;  %v3018_v25 = vunpack.i.l.bf16 %v4901_v21 }
 0xd31   :  { %v2254_v38 = vsel %vm5512_vm12, %v2250_v54, %v3049_v12  ;;  %v2282_v63 = vsel %vm5513_vm10, %v2278_v55, %v3048_v8  ;;  %vm5526_vm12 = vnez %v5525_v28  ;;  %vm5528_vm10 = vnez %v5527_v40 }
 0xd32   :  { %v2258_v36 = vsel %vm5516_vm8, %v2254_v38, %v2999_v44  ;;  %v4927_v22 = vpop.permute.xlu0 %3066  ;;  %v3052_v18 = vpop.permute.xlu1 %3051  ;;  %v2286_v16 = vsel %vm5519_vm1, %v2282_v63, %v2998_v46  ;;  %v1870_v30 = vsel %vm5526_vm12, %v2994_v51, 0.0  ;;  %v1869_v15 = vsel %vm5528_vm10, %v2989_v53, 0.0  ;;  %vm5530_vm8 = vmmov %vm5529_vm0 }
 0xd33   :  { %v3053_v56 = vunpack.i.l.bf16 %v3052_v18  ;;  %v2262_v4 = vsel %vm5520_vm3, %v2258_v36, %v2999_v44  ;;  %v3068_v42 = vunpack.i.l.bf16 %v4927_v22  ;;  %v3054_v1 = vunpack.i.h.bf16 %v3052_v18  ;;  %vm5541_vm10 = vmmov %vm5529_vm0 }
 0xd34   :  { %v2266_v33 = vsel %vm5523_vm2, %v2262_v4, %v3004_v37  ;;  %vm5533_vm1 = vcmask 130048   ;;  %v1990_v44 = vsel %vm5499_vm14, %v2993_v60, 0.0  ;;  %v3019_v54 = vunpack.i.h.bf16 %v4901_v21  ;;  %vm5539_vm14 = vmmov %vm5511_vm11 }
 0xd35   :  { %v2290_v45 = vsel %vm5521_vm13, %v2286_v16, %v3053_v56  ;;  %v2272_v5 = vsel %vm5533_vm1, %v1989_v17, %v3008_v35  ;;  %vm5534_vm3 = vmmov %vm5533_vm1  ;;  %v3029_v51 = vunpack.i.h.bf16 %v4903_v26  ;;  %v3069_v38 = vunpack.i.h.bf16 %v4927_v22 }
 0xd36   :  { %v3077_v49 = vpop.permute.xlu0 %3076  ;;  %v3062_v47 = vpop.permute.xlu1 %3061  ;;  %v2294_v50 = vsel %vm5522_vm6, %v2290_v45, %v3003_v34  ;;  %v2244_v12 = vsel %vm5534_vm3, %v1869_v15, %v3068_v42  ;;  %vm5536_vm6 = vmmov %vm5508_vm5  ;;  %v3024_v21 = vunpack.i.h.bf16 %v4905_v11  ;;  %v3023_v18 = vunpack.i.l.bf16 %v4905_v11 }
 0xd37   :  { %v3064_v39 = vunpack.i.h.bf16 %v3062_v47  ;;  %v3063_v57 = vunpack.i.l.bf16 %v3062_v47  ;;  %2396 = vmatprep.mubr.f32.mxu0 %v2294_v50  ;;  %v3078_v8 = vunpack.i.l.bf16 %v3077_v49  ;;  %vm5537_vm5 = vmmov %vm5523_vm2  ;;  %v3079_v63 = vunpack.i.h.bf16 %v3077_v49 }
 0xd38   :  { %2397 = vmatmul.mubr.f32.vlgmr.msra.gmra.mrb[4].mxu0 %v2266_v33  ;;  %vm5538_vm15 = vmmov %vm5536_vm6  ;;  %v3028_v22 = vunpack.i.l.bf16 %v4903_v26 }
 0xd39   :  { %v2255_v9 = vsel %vm5529_vm0, %v2251_v61, %v3064_v39  ;;  %v2283_v2 = vsel %vm5530_vm8, %v2279_v6, %v3063_v57  ;;  %v2276_v46 = vsel %vm5538_vm15, %v2272_v5, %v3008_v35  ;;  %vm5540_vm12 = vmmov %vm5533_vm1 }
 0xd3a   :  { %v3072_v32 = vpop.permute.xlu1 %3071  ;;  %v2287_v29 = vsel %vm5531_vm9, %v2283_v2, %v3013_v0  ;;  %v2259_v52 = vsel %vm5532_vm4, %v2255_v9, %v3014_v62  ;;  %v3092_v23 = vpop.permute.xlu0 %3091  ;;  %v2280_v48 = vsel %vm5539_vm14, %v2276_v46, %v3078_v8  ;;  %v2273_v41 = vsel %vm5540_vm12, %v1990_v44, %v3019_v54  ;;  %vm5542_vm8 = vmmov %vm5533_vm1 }
 0xd3b   :  { %v3073_v13 = vunpack.i.l.bf16 %v3072_v32  ;;  %v2291_v20 = vsel %vm5521_vm13, %v2287_v29, %v3054_v1  ;;  %v2263_v3 = vsel %vm5535_vm7, %v2259_v52, %v3014_v62  ;;  %v3074_v36 = vunpack.i.h.bf16 %v3072_v32  ;;  %vm5543_vm9 = vmmov %vm5532_vm4 }
 0xd3c   :  { %v2295_v55 = vsel %vm5537_vm5, %v2291_v20, %v3009_v59  ;;  %v2267_v14 = vsel %vm5523_vm2, %v2263_v3, %v3018_v25  ;;  %v2245_v16 = vsel %vm5542_vm8, %v1870_v30, %v3069_v38  ;;  %v3094_v4 = vunpack.i.h.bf16 %v3092_v23  ;;  %vm5544_vm1 = vmmov %vm5536_vm6 }
 0xd3d   :  { %v2248_v19 = vsel %vm5536_vm6, %v2244_v12, %v3073_v13  ;;  %2401 = vmatprep.mubr.f32.mxu0 %v2295_v55  ;;  %v3093_v24 = vunpack.i.l.bf16 %v3092_v23  ;;  %v2249_v45 = vsel %vm5544_vm1, %v2245_v16, %v3074_v36  ;;  %vm5545_vm3 = vmmov %vm5535_vm7 }
 0xd3e   :  { %v3082_v58 = vpop.permute.xlu1 %3081  ;;  %2402 = vmatmul.mubr.f32.gmra.mrb[6].mxu0 %v2267_v14  ;;  %v2252_v34 = vsel %vm5511_vm11, %v2248_v19, %v3079_v63  ;;  %v3097_v56 = vpop.permute.xlu0 %3096  ;;  %vm5546_vm13 = vmmov %vm5545_vm3 }
 0xd3f   :  { %v3084_v27 = vunpack.i.h.bf16 %v3082_v58  ;;  %v3083_v60 = vunpack.i.l.bf16 %v3082_v58  ;;  %v3099_v62 = vunpack.i.h.bf16 %v3097_v56  ;;  %v3098_v35 = vunpack.i.l.bf16 %v3097_v56  ;;  %vm5547_vm7 = vmmov %vm5523_vm2 }
 0xd40   :  { %vm5548_vm6 = vmmov %vm5523_vm2 }
 0xd41   :  { %v2256_v31 = vsel %vm5541_vm10, %v2252_v34, %v3084_v27  ;;  %v2284_v43 = vsel %vm5529_vm0, %v2280_v48, %v3083_v60  ;;  %vm5549_vm5 = vmmov %vm5544_vm1 }
 0xd42   :  { %v2219_v53 = vpop.permute.xlu1 %2218  ;;  %v2288_v37 = vsel %vm5543_vm9, %v2284_v43, %v3023_v18  ;;  %v2260_v11 = vsel %vm5532_vm4, %v2256_v31, %v3024_v21  ;;  %v2277_v50 = vsel %vm5549_vm5, %v2273_v41, %v3019_v54  ;;  %vm5550_vm2 = vmmov %vm5511_vm11  ;;  %v2221_v40 = vpop.permute.xlu0 %2220 }
 0xd43   :  { %v2292_v26 = vsel %vm5545_vm3, %v2288_v37, %v2219_v53  ;;  %v2264_v7 = vsel %vm5546_vm13, %v2260_v11, %v3024_v21  ;;  %v2281_v39 = vsel %vm5550_vm2, %v2277_v50, %v3093_v24  ;;  %vm5551_vm15 = vmmov %vm5550_vm2 }
 0xd44   :  { %v2296_v49 = vsel %vm5547_vm7, %v2292_v26, %v3028_v22  ;;  %v2268_v47 = vsel %vm5548_vm6, %v2264_v7, %v3029_v51  ;;  %v2253_v57 = vsel %vm5551_vm15, %v2249_v45, %v3094_v4  ;;  %vm5552_vm14 = vmmov %vm5529_vm0 }
 0xd45   :  { %2406 = vmatprep.mubr.f32.mxu0 %v2296_v49  ;;  %v2257_v61 = vsel %vm5552_vm14, %v2253_v57, %v3099_v62  ;;  %vm5553_vm11 = vmmov %vm5529_vm0 }
 0xd46   :  { %v3087_v10 = vpop.permute.xlu1 %3086  ;;  %2407 = vmatmul.mubr.f32.gmra.mrb[8].mxu0 %v2268_v47  ;;  %v2285_v6 = vsel %vm5553_vm11, %v2281_v39, %v3098_v35  ;;  %vm5554_vm12 = vmmov %vm5532_vm4 }
 0xd47   :  { %v3089_v33 = vunpack.i.h.bf16 %v3087_v10  ;;  %v3088_v0 = vunpack.i.l.bf16 %v3087_v10  ;;  %vm5555_vm10 = vmmov %vm5532_vm4 }
 0xd48   :  { %vm5556_vm0 = vmmov %vm5545_vm3 }
 0xd49   :  { %v2289_v42 = vsel %vm5554_vm12, %v2285_v6, %v3088_v0  ;;  %v2261_v28 = vsel %vm5555_vm10, %v2257_v61, %v3089_v33  ;;  %vm5557_vm8 = vmmov %vm5556_vm0 }
 0xd4a   :  { %v3102_v30 = vpop.permute.xlu1 %3101  ;;  %v2293_v2 = vsel %vm5556_vm0, %v2289_v42, %v2221_v40  ;;  %v2265_v17 = vsel %vm5557_vm8, %v2261_v28, %v3089_v33  ;;  %vm5558_vm9 = vmmov %vm5548_vm6 }
 0xd4b   :  { %v3104_v15 = vunpack.i.h.bf16 %v3102_v30  ;;  %v3103_v9 = vunpack.i.l.bf16 %v3102_v30  ;;  %vm5559_vm4 = vmmov %vm5548_vm6 }
 0xd4d   :  { %v2297_v1 = vsel %vm5558_vm9, %v2293_v2, %v3103_v9  ;;  %v2269_v32 = vsel %vm5559_vm4, %v2265_v17, %v3104_v15 }
 0xd4e   :  { %2411 = vmatprep.mubr.f32.mxu0 %v2297_v1 }
 0xd4f   :  { %2412 = vmatmul.mubr.f32.gmra.mrb[10].mxu0 %v2269_v32 }
 0xd7c   :  { %v1347_v29 = vpop.xlane.xlu0 %1346 }
 0xd7d   :  { %v1348_v52 = vrot.slane %v1347_v29, 4 }
 0xd7f   :  { %v1349_v59 = vadd.f32 %v1348_v52, %v1347_v29 }
 0xd81   :  { %v1350_v5 = vrot.slane %v1349_v59, 2 }
 0xd83   :  { %v1351_v25 = vadd.f32 %v1350_v5, %v1349_v59 }
 0xd85   :  { %v1352_v23 = vrot.slane %v1351_v25, 1 }
 0xd87   :  { %v1353_v13 = vadd.f32 %v1352_v23, %v1351_v25 }
 0xd89   :  { %2676 = vpush %v1353_v13 }
 0xdba   :  { %s2677_s10 = spop %2676 }
 0xdbb   :  { %s1355_s14 = smul.f32 1.2, %s2677_s10 }
 0xdbd   :  { %s1358_s0 = smul.f32 0.015625, %s1355_s14 }
 0xdbf   :  { %1360 = sst [smem:[#allocation3]] %s1358_s0 }
 0xdc0   :  { %3128 = shalt.err (!%p3125_p2)
}
 0xdc1   :  { %s3147_s6 = smov [#allocation3]   ;;  %v2331_v8 = vstv %s5041_s11  ;;  %vm5560_vm1 = vcmask 130048  }
 0xdc2   :  { %2434 = dma.smem_to_hbm %s3147_s6, 16, %s5043_s13, [#allocation4]   ;;  %vm5561_vm3 = vmmov %vm5560_vm1 }
 0xdc3   :  { %vm5562_vm13 = vmmov %vm5560_vm1 }
 0xdc4   :  { %vm5563_vm7 = vmmov %vm5560_vm1 }
 0xe0b   :  { %v2546_v12 = vpop.f32.mrb[4].mxu0 }
 0xe0c   :  { %v2547_v20 = vpop.f32.mrb[5].mxu0 }
 0xe0d   :  { %v2548_v3 = vadd.f32 %v2547_v20, %v2546_v12 }
 0xe0f   :  { %v2399_v44 = vadd.f32 %v2548_v3, %v2331_v8 }
 0xe11   :  { %3111 = vtanh.f32 %v2399_v44  ;;  %v2549_v54 = vpop.f32.mrb[6].mxu0 }
 0xe12   :  { %v2550_v19 = vpop.f32.mrb[7].mxu0 }
 0xe13   :  { %v2551_v55 = vadd.f32 %v2550_v19, %v2549_v54 }
 0xe15   :  { %v2404_v51 = vadd.f32 %v2551_v55, %v2331_v8 }
 0xe17   :  { %3113 = vtanh.f32 %v2404_v51 }
 0xe19   :  { %v2552_v38 = vpop.f32.mrb[8].mxu0 }
 0xe1a   :  { %v2553_v63 = vpop.f32.mrb[9].mxu0 }
 0xe1b   :  { %v3112_v58 = vpop.eup %3111  ;;  %v2554_v14 = vadd.f32 %v2553_v63, %v2552_v38 }
 0xe1c   :  { %2421 = vst.msk [vmem:[%s5042_s12] sm:$0xff] %vm5560_vm1, %v3112_v58 }
 0xe1d   :  { %v2409_v46 = vadd.f32 %v2554_v14, %v2331_v8 }
 0xe1f   :  { %3115 = vtanh.f32 %v2409_v46 }
 0xe21   :  { %v3114_v36 = vpop.eup %3113 }
 0xe22   :  { %v2555_v27 = vpop.f32.mrb[10].mxu0  ;;  %2422 = vst.msk [vmem:[%s5042_s12 + $0x8] sm:$0xff] %vm5561_vm3, %v3114_v36 }
 0xe23   :  { %v2556_v60 = vpop.f32.mrb[11].mxu0 }
 0xe24   :  { %v2557_v21 = vadd.f32 %v2556_v60, %v2555_v27 }
 0xe26   :  { %v2414_v18 = vadd.f32 %v2557_v21, %v2331_v8 }
 0xe28   :  { %3117 = vtanh.f32 %v2414_v18 }
 0xe29   :  { %v3116_v48 = vpop.eup %3115 }
 0xe2a   :  { %2423 = vst.msk [vmem:[%s5042_s12 + $0x10] sm:$0xff] %vm5562_vm13, %v3116_v48 }
 0xe32   :  { %v3118_v34 = vpop.eup %3117 }
 0xe33   :  { %2424 = vst.msk [vmem:[%s5042_s12 + $0x18] sm:$0xff] %vm5563_vm7, %v3118_v34 }
 0xe34   :  { %3129 = dma.done.wait [#allocation4], 16  }
 0xe35   :  { %3130 = vsyncadd [#allocation4], 4294967280 }
 0xe36   :  { %2440 = sfence }
 0xe37   :  { %2441 = vsyncpa [#allocation4], 1 }

</bundles_post_ra>
